<compile_context>
chip_gen: v5e
topology: v5e:2x2
jax: 0.10.0
libtpu: 0.0.40
codegen_flags: <defaults>
</compile_context>

<pallas_src>
import jax
import jax.numpy as jnp
from jax import lax
from jax.experimental import pallas as pl
from jax.experimental.pallas import tpu as pltpu


# ------------------------------ fused kernel --------------------------------

def fused_forward_kernel(g1_ref, w1_ref, b1_ref, w2_ref, b2_ref, wf_ref, bf_ref,
                         out_ref, s1, y1p, g2s, s2, feat):
    # g1_ref : (1, 784, 9)  bf16  im2col of the 28x28 input, rows = h*28+w, cols = dy*3+dx
    # w1_ref : (9, 32) bf16, b1_ref: (1, 32) f32
    # w2_ref : (288, 64) bf16 (rows = (dy*3+dx)*32 + ci), b2_ref: (1, 64) f32
    # wf_ref : (3136, 128) bf16 (rows = n*64 + c, n = h*7+w; cols = 5 heads x 15, zero-padded)
    # bf_ref : (1, 128) f32
    # out_ref: (1, 1, 128) f32
    # scratch: s1 (784,32) f32 | y1p (272,32) f32 | g2s (224,288) bf16 | s2 (224,64) f32
    #          feat (1,3136) f32

    # ---- conv1 (3x3, pad=1) as one GEMM over all 28*28 pixels, + bias + ReLU ----
    a1 = jnp.dot(g1_ref[0], w1_ref[...], preferred_element_type=jnp.float32)   # (784, 32)
    s1[...] = jnp.maximum(a1 + b1_ref[...], 0.0)

    # ---- maxpool 2x2 (28x28 -> 14x14), written into a zero-padded 16x16 buffer ----
    # y1p flat row index = ph*16 + pw (16x16 padded grid); rows 256..271 are overhang pad.
    y1p[...] = jnp.zeros(y1p.shape, y1p.dtype)
    for i in range(14):                                   # pooled output row
        r0 = (2 * i) * 28
        r1 = (2 * i + 1) * 28
        m = jnp.maximum(
            jnp.maximum(s1[pl.ds(r0, 14, stride=2), :], s1[pl.ds(r0 + 1, 14, stride=2), :]),
            jnp.maximum(s1[pl.ds(r1, 14, stride=2), :], s1[pl.ds(r1 + 1, 14, stride=2), :]))
        y1p[pl.ds((i + 1) * 16 + 1, 14), :] = m           # interior rows/cols 1..14

    # ---- in-kernel im2col for conv2: 9 contiguous slices of the padded buffer ----
    # GEMM row r = oh*16 + j (j=0..13 valid, 14..15 are discarded junk columns).
    for t in range(9):
        dy, dx = t // 3, t % 3
        g2s[:, t * 32:(t + 1) * 32] = y1p[pl.ds(dy * 16 + dx, 224), :].astype(g2s.dtype)

    # ---- conv2 (32->64) as one GEMM (224 x 288 x 64) + bias + ReLU ----
    a2 = jnp.dot(g2s[...], w2_ref[...], preferred_element_type=jnp.float32)    # (224, 64)
    s2[...] = jnp.maximum(a2 + b2_ref[...], 0.0)

    # ---- maxpool 2x2 (14x14 -> 7x7) + flatten (layout n*64+c, folded into wf rows) ----
    for ph in range(7):
        base = 32 * ph                                    # row offset of oh = 2*ph
        p = jnp.maximum(
            jnp.maximum(s2[pl.ds(base, 7, stride=2), :], s2[pl.ds(base + 1, 7, stride=2), :]),
            jnp.maximum(s2[pl.ds(base + 16, 7, stride=2), :], s2[pl.ds(base + 17, 7, stride=2), :]))
        for pw in range(7):                               # (7, 64): row pw = pooled col
            n = ph * 7 + pw
            feat[0:1, n * 64:(n + 1) * 64] = p[pw:pw + 1, :]

    # ---- fused 5-head classifier: (1, 3136) @ (3136, 128), lane-dense 128-wide store ----
    logits = jnp.dot(feat[...].astype(jnp.bfloat16), wf_ref[...],
                     preferred_element_type=jnp.float32)                        # (1, 128)
    out_ref[0] = logits + bf_ref[...]


def fused_forward(g1, prep):
    B = g1.shape[0]
    return pl.pallas_call(
        fused_forward_kernel,
        out_shape=jax.ShapeDtypeStruct((B, 1, 128), jnp.float32),
        grid=(B,),
        in_specs=[
            pl.BlockSpec((1, 784, 9), lambda b: (b, 0, 0)),
            pl.BlockSpec((9, 32), lambda b: (0, 0)),       # constant blocks: Pallas only
            pl.BlockSpec((1, 32), lambda b: (0, 0)),       # re-DMAs when the block index
            pl.BlockSpec((288, 64), lambda b: (0, 0)),     # changes, so weights stay in VMEM
            pl.BlockSpec((1, 64), lambda b: (0, 0)),
            pl.BlockSpec((3136, 128), lambda b: (0, 0)),
            pl.BlockSpec((1, 128), lambda b: (0, 0)),
        ],
        out_specs=pl.BlockSpec((1, 1, 128), lambda b: (b, 0, 0)),
        scratch_shapes=[
            pltpu.VMEM((784, 32), jnp.float32),    # s1   conv1 pre-pool
            pltpu.VMEM((272, 32), jnp.float32),    # y1p  zero-padded pooled conv1 (16x16)
            pltpu.VMEM((224, 288), jnp.bfloat16),  # g2s  conv2 im2col
            pltpu.VMEM((224, 64), jnp.float32),    # s2   conv2 pre-pool
            pltpu.VMEM((1, 3136), jnp.float32),    # feat flattened features
        ],
        compiler_params=pltpu.CompilerParams(dimension_semantics=("parallel",)),
    )(g1, prep["w1"], prep["b1"], prep["w2"], prep["b2"], prep["wf"], prep["bf"])


# ------------------------------- JAX glue -----------------------------------

def im2col_3x3(x28):
    """(B,28,28) -> (B, 784, 9) im2col for a 3x3/pad=1 conv (Cin=1)."""
    B = x28.shape[0]
    xp = jnp.pad(x28, ((0, 0), (1, 1), (1, 1)))
    taps = [xp[:, dy:dy + 28, dx:dx + 28] for dy in range(3) for dx in range(3)]
    return jnp.stack(taps, axis=-1).reshape(B, 784, 9)


def init_params(key):
    ks = jax.random.split(key, 14)
    s = 0.1
    p = {
        "conv1_w": s * jax.random.normal(ks[0], (32, 1, 3, 3), jnp.float32),   # OIHW
        "conv1_b": s * jax.random.normal(ks[1], (32,), jnp.float32),
        "conv2_w": s * jax.random.normal(ks[2], (64, 32, 3, 3), jnp.float32),  # OIHW
        "conv2_b": s * jax.random.normal(ks[3], (64,), jnp.float32),
    }
    for i in range(5):
        p[f"fc{i+1}_w"] = s * jax.random.normal(ks[4 + 2 * i], (15, 64 * 7 * 7), jnp.float32)
        p[f"fc{i+1}_b"] = s * jax.random.normal(ks[5 + 2 * i], (15,), jnp.float32)
    return p


def prepare_params(params):
    """One-time weight prep (hoisted out of the forward pass)."""
    w1 = params["conv1_w"].transpose(2, 3, 1, 0).reshape(9, 32).astype(jnp.bfloat16)
    b1 = params["conv1_b"].reshape(1, 32).astype(jnp.float32)
    w2 = params["conv2_w"].transpose(2, 3, 1, 0).reshape(288, 64).astype(jnp.bfloat16)
    b2 = params["conv2_b"].reshape(1, 64).astype(jnp.float32)

    # 5 heads fused: PyTorch flatten order is c*49 + (h*7+w); kernel feat order is
    # (h*7+w)*64 + c  ->  fold the permutation into the weight rows, pad 75 -> 128 cols.
    w_all = jnp.concatenate([params[f"fc{i}_w"].T for i in range(1, 6)], axis=1)  # (3136, 75)
    w_perm = w_all.reshape(64, 49, 75).transpose(1, 0, 2).reshape(3136, 75)
    wf = jnp.zeros((3136, 128), jnp.float32).at[:, :75].set(w_perm).astype(jnp.bfloat16)
    b_all = jnp.concatenate([params[f"fc{i}_b"] for i in range(1, 6)], axis=0)    # (75,)
    bf = jnp.zeros((1, 128), jnp.float32).at[0, :75].set(b_all)
    return {"w1": w1, "b1": b1, "w2": w2, "b2": b2, "wf": wf, "bf": bf}


def equation_model_forward(x_nchw, prep):
    B = x_nchw.shape[0]
    g1 = im2col_3x3(x_nchw.reshape(B, 28, 28)).astype(jnp.bfloat16)   # (B, 784, 9)
    out = fused_forward(g1, prep)                                      # (B, 1, 128)
    logits = out[:, 0, :75]
    return [logits[:, 15 * i:15 * (i + 1)] for i in range(5)]


# ---------------------------- pure-JAX reference ----------------------------

def reference_forward(x_nchw, params):
    dn = ("NCHW", "OIHW", "NCHW")
    hi = lax.Precision.HIGHEST
    y = lax.conv_general_dilated(x_nchw, params["conv1_w"], (1, 1), "SAME",
                                 dimension_numbers=dn, precision=hi)
    y = jax.nn.relu(y + params["conv1_b"][None, :, None, None])
    y = lax.reduce_window(y, -jnp.inf, lax.max, (1, 1, 2, 2), (1, 1, 2, 2), "VALID")
    y = lax.conv_general_dilated(y, params["conv2_w"], (1, 1), "SAME",
                                 dimension_numbers=dn, precision=hi)
    y = jax.nn.relu(y + params["conv2_b"][None, :, None, None])
    y = lax.reduce_window(y, -jnp.inf, lax.max, (1, 1, 2, 2), (1, 1, 2, 2), "VALID")
    flat = y.reshape(y.shape[0], -1)
    return [jnp.dot(flat, params[f"fc{i}_w"].T, precision=hi) + params[f"fc{i}_b"]
            for i in range(1, 6)]


if __name__ == "__main__":
    key = jax.random.PRNGKey(0)
    kx, kp = jax.random.split(key)
    x = jax.random.normal(kx, (2, 1, 28, 28), jnp.float32)   # NCHW like PyTorch
    params = init_params(kp)
    prep = prepare_params(params)

    fwd = jax.jit(equation_model_forward)
    outs = fwd(x, prep)
    outs = jax.block_until_ready(outs)

    refs = reference_forward(x, params)
    for o, r in zip(outs, refs):
        assert o.shape == (2, 15), o.shape
        # bf16 matmul operands (f32 accumulation) per perf review -> modest tolerance.
        assert jnp.allclose(o, r, rtol=5e-2, atol=1e-1), float(jnp.max(jnp.abs(o - r)))

    print("KERNEL_OK")
</pallas_src>

<mosaic_0001>
module attributes {stable_mosaic.version = 11 : i64} {
  func.func @fused_forward_kernel(%arg0: i32, %arg1: memref<1x784x9xbf16, #tpu.memory_space<vmem>>, %arg2: memref<9x32xbf16, #tpu.memory_space<vmem>>, %arg3: memref<1x32xf32, #tpu.memory_space<vmem>>, %arg4: memref<288x64xbf16, #tpu.memory_space<vmem>>, %arg5: memref<1x64xf32, #tpu.memory_space<vmem>>, %arg6: memref<3136x128xbf16, #tpu.memory_space<vmem>>, %arg7: memref<1x128xf32, #tpu.memory_space<vmem>>, %arg8: memref<1x1x128xf32, #tpu.memory_space<vmem>>, %arg9: memref<784x32xf32, #tpu.memory_space<vmem>>, %arg10: memref<272x32xf32, #tpu.memory_space<vmem>>, %arg11: memref<224x288xbf16, #tpu.memory_space<vmem>>, %arg12: memref<224x64xf32, #tpu.memory_space<vmem>>, %arg13: memref<1x3136xf32, #tpu.memory_space<vmem>>) attributes {dimension_semantics = [#tpu.dimension_semantics<parallel>], iteration_bounds = array<i64: 2>, scalar_prefetch = 0 : i64, scratch_operands = 5 : i64, tpu.core_type = #tpu.core_type<tc>, window_params = [{transform_indices = @transform_0, window_bounds = array<i64: 1, 784, 9>}, {pipeline_mode = #tpu.pipeline_mode<synchronous>, transform_indices = @transform_1, window_bounds = array<i64: 9, 32>}, {pipeline_mode = #tpu.pipeline_mode<synchronous>, transform_indices = @transform_2, window_bounds = array<i64: 1, 32>}, {pipeline_mode = #tpu.pipeline_mode<synchronous>, transform_indices = @transform_3, window_bounds = array<i64: 288, 64>}, {pipeline_mode = #tpu.pipeline_mode<synchronous>, transform_indices = @transform_4, window_bounds = array<i64: 1, 64>}, {pipeline_mode = #tpu.pipeline_mode<synchronous>, transform_indices = @transform_5, window_bounds = array<i64: 3136, 128>}, {pipeline_mode = #tpu.pipeline_mode<synchronous>, transform_indices = @transform_6, window_bounds = array<i64: 1, 128>}, {transform_indices = @transform_7, window_bounds = array<i64: 1, 1, 128>}]} {
    %c0 = arith.constant 0 : index
    %c0_0 = arith.constant 0 : index
    %c0_1 = arith.constant 0 : index
    %0 = vector.load %arg1[%c0, %c0_0, %c0_1] : memref<1x784x9xbf16, #tpu.memory_space<vmem>>, vector<1x784x9xbf16>
    %1 = vector.shape_cast %0 : vector<1x784x9xbf16> to vector<784x9xbf16>
    %c0_2 = arith.constant 0 : index
    %c0_3 = arith.constant 0 : index
    %2 = vector.load %arg2[%c0_2, %c0_3] : memref<9x32xbf16, #tpu.memory_space<vmem>>, vector<9x32xbf16>
    %cst = arith.constant dense<0.000000e+00> : vector<784x32xf32>
    %3 = tpu.matmul %1, %2, %cst {dimension_numbers = #tpu.dot_dimension_numbers<[1], [0], [0], [1], [0, 0, 1, 1], [], []>} : vector<784x9xbf16>, vector<9x32xbf16>, vector<784x32xf32> -> vector<784x32xf32>
    %c0_4 = arith.constant 0 : index
    %c0_5 = arith.constant 0 : index
    %4 = vector.load %arg3[%c0_4, %c0_5] : memref<1x32xf32, #tpu.memory_space<vmem>>, vector<1x32xf32>
    %5 = vector.broadcast %4 : vector<1x32xf32> to vector<784x32xf32>
    %6 = arith.addf %3, %5 : vector<784x32xf32>
    %cst_6 = arith.constant 0.000000e+00 : f32
    %7 = vector.broadcast %cst_6 : f32 to vector<784x32xf32>
    %8 = arith.maximumf %6, %7 : vector<784x32xf32>
    %c0_7 = arith.constant 0 : index
    %c0_8 = arith.constant 0 : index
    %9 = vector.load %arg9[%c0_7, %c0_8] : memref<784x32xf32, #tpu.memory_space<vmem>>, vector<784x32xf32>
    tpu.vector_store %arg9[%c0_7, %c0_8], %8 {strides = array<i32>} : memref<784x32xf32, #tpu.memory_space<vmem>>, vector<784x32xf32>,
    %cst_9 = arith.constant 0.000000e+00 : f32
    %10 = vector.broadcast %cst_9 : f32 to vector<272x32xf32>
    %c0_10 = arith.constant 0 : index
    %c0_11 = arith.constant 0 : index
    %11 = vector.load %arg10[%c0_10, %c0_11] : memref<272x32xf32, #tpu.memory_space<vmem>>, vector<272x32xf32>
    tpu.vector_store %arg10[%c0_10, %c0_11], %10 {strides = array<i32>} : memref<272x32xf32, #tpu.memory_space<vmem>>, vector<272x32xf32>,
    %c0_12 = arith.constant 0 : index
    %c0_13 = arith.constant 0 : index
    %12 = tpu.strided_load %arg9[%c0_12, %c0_13] {strides = array<i32: 2, 1>} : memref<784x32xf32, #tpu.memory_space<vmem>>, vector<14x32xf32>
    %c1 = arith.constant 1 : index
    %c0_14 = arith.constant 0 : index
    %13 = tpu.strided_load %arg9[%c1, %c0_14] {strides = array<i32: 2, 1>} : memref<784x32xf32, #tpu.memory_space<vmem>>, vector<14x32xf32>
    %14 = arith.maximumf %12, %13 : vector<14x32xf32>
    %c28 = arith.constant 28 : index
    %c0_15 = arith.constant 0 : index
    %15 = tpu.strided_load %arg9[%c28, %c0_15] {strides = array<i32: 2, 1>} : memref<784x32xf32, #tpu.memory_space<vmem>>, vector<14x32xf32>
    %c29 = arith.constant 29 : index
    %c0_16 = arith.constant 0 : index
    %16 = tpu.strided_load %arg9[%c29, %c0_16] {strides = array<i32: 2, 1>} : memref<784x32xf32, #tpu.memory_space<vmem>>, vector<14x32xf32>
    %17 = arith.maximumf %15, %16 : vector<14x32xf32>
    %18 = arith.maximumf %14, %17 : vector<14x32xf32>
    %c17 = arith.constant 17 : index
    %c0_17 = arith.constant 0 : index
    %19 = vector.load %arg10[%c17, %c0_17] : memref<272x32xf32, #tpu.memory_space<vmem>>, vector<14x32xf32>
    tpu.vector_store %arg10[%c17, %c0_17], %18 {strides = array<i32>} : memref<272x32xf32, #tpu.memory_space<vmem>>, vector<14x32xf32>,
    %c56 = arith.constant 56 : index
    %c0_18 = arith.constant 0 : index
    %20 = tpu.strided_load %arg9[%c56, %c0_18] {strides = array<i32: 2, 1>} : memref<784x32xf32, #tpu.memory_space<vmem>>, vector<14x32xf32>
    %c57 = arith.constant 57 : index
    %c0_19 = arith.constant 0 : index
    %21 = tpu.strided_load %arg9[%c57, %c0_19] {strides = array<i32: 2, 1>} : memref<784x32xf32, #tpu.memory_space<vmem>>, vector<14x32xf32>
    %22 = arith.maximumf %20, %21 : vector<14x32xf32>
    %c84 = arith.constant 84 : index
    %c0_20 = arith.constant 0 : index
    %23 = tpu.strided_load %arg9[%c84, %c0_20] {strides = array<i32: 2, 1>} : memref<784x32xf32, #tpu.memory_space<vmem>>, vector<14x32xf32>
    %c85 = arith.constant 85 : index
    %c0_21 = arith.constant 0 : index
    %24 = tpu.strided_load %arg9[%c85, %c0_21] {strides = array<i32: 2, 1>} : memref<784x32xf32, #tpu.memory_space<vmem>>, vector<14x32xf32>
    %25 = arith.maximumf %23, %24 : vector<14x32xf32>
    %26 = arith.maximumf %22, %25 : vector<14x32xf32>
    %c33 = arith.constant 33 : index
    %c0_22 = arith.constant 0 : index
    %27 = vector.load %arg10[%c33, %c0_22] : memref<272x32xf32, #tpu.memory_space<vmem>>, vector<14x32xf32>
    tpu.vector_store %arg10[%c33, %c0_22], %26 {strides = array<i32>} : memref<272x32xf32, #tpu.memory_space<vmem>>, vector<14x32xf32>,
    %c112 = arith.constant 112 : index
    %c0_23 = arith.constant 0 : index
    %28 = tpu.strided_load %arg9[%c112, %c0_23] {strides = array<i32: 2, 1>} : memref<784x32xf32, #tpu.memory_space<vmem>>, vector<14x32xf32>
    %c113 = arith.constant 113 : index
    %c0_24 = arith.constant 0 : index
    %29 = tpu.strided_load %arg9[%c113, %c0_24] {strides = array<i32: 2, 1>} : memref<784x32xf32, #tpu.memory_space<vmem>>, vector<14x32xf32>
    %30 = arith.maximumf %28, %29 : vector<14x32xf32>
    %c140 = arith.constant 140 : index
    %c0_25 = arith.constant 0 : index
    %31 = tpu.strided_load %arg9[%c140, %c0_25] {strides = array<i32: 2, 1>} : memref<784x32xf32, #tpu.memory_space<vmem>>, vector<14x32xf32>
    %c141 = arith.constant 141 : index
    %c0_26 = arith.constant 0 : index
    %32 = tpu.strided_load %arg9[%c141, %c0_26] {strides = array<i32: 2, 1>} : memref<784x32xf32, #tpu.memory_space<vmem>>, vector<14x32xf32>
    %33 = arith.maximumf %31, %32 : vector<14x32xf32>
    %34 = arith.maximumf %30, %33 : vector<14x32xf32>
    %c49 = arith.constant 49 : index
    %c0_27 = arith.constant 0 : index
    %35 = vector.load %arg10[%c49, %c0_27] : memref<272x32xf32, #tpu.memory_space<vmem>>, vector<14x32xf32>
    tpu.vector_store %arg10[%c49, %c0_27], %34 {strides = array<i32>} : memref<272x32xf32, #tpu.memory_space<vmem>>, vector<14x32xf32>,
    %c168 = arith.constant 168 : index
    %c0_28 = arith.constant 0 : index
    %36 = tpu.strided_load %arg9[%c168, %c0_28] {strides = array<i32: 2, 1>} : memref<784x32xf32, #tpu.memory_space<vmem>>, vector<14x32xf32>
    %c169 = arith.constant 169 : index
    %c0_29 = arith.constant 0 : index
    %37 = tpu.strided_load %arg9[%c169, %c0_29] {strides = array<i32: 2, 1>} : memref<784x32xf32, #tpu.memory_space<vmem>>, vector<14x32xf32>
    %38 = arith.maximumf %36, %37 : vector<14x32xf32>
    %c196 = arith.constant 196 : index
    %c0_30 = arith.constant 0 : index
    %39 = tpu.strided_load %arg9[%c196, %c0_30] {strides = array<i32: 2, 1>} : memref<784x32xf32, #tpu.memory_space<vmem>>, vector<14x32xf32>
    %c197 = arith.constant 197 : index
    %c0_31 = arith.constant 0 : index
    %40 = tpu.strided_load %arg9[%c197, %c0_31] {strides = array<i32: 2, 1>} : memref<784x32xf32, #tpu.memory_space<vmem>>, vector<14x32xf32>
    %41 = arith.maximumf %39, %40 : vector<14x32xf32>
    %42 = arith.maximumf %38, %41 : vector<14x32xf32>
    %c65 = arith.constant 65 : index
    %c0_32 = arith.constant 0 : index
    %43 = vector.load %arg10[%c65, %c0_32] : memref<272x32xf32, #tpu.memory_space<vmem>>, vector<14x32xf32>
    tpu.vector_store %arg10[%c65, %c0_32], %42 {strides = array<i32>} : memref<272x32xf32, #tpu.memory_space<vmem>>, vector<14x32xf32>,
    %c224 = arith.constant 224 : index
    %c0_33 = arith.constant 0 : index
    %44 = tpu.strided_load %arg9[%c224, %c0_33] {strides = array<i32: 2, 1>} : memref<784x32xf32, #tpu.memory_space<vmem>>, vector<14x32xf32>
    %c225 = arith.constant 225 : index
    %c0_34 = arith.constant 0 : index
    %45 = tpu.strided_load %arg9[%c225, %c0_34] {strides = array<i32: 2, 1>} : memref<784x32xf32, #tpu.memory_space<vmem>>, vector<14x32xf32>
    %46 = arith.maximumf %44, %45 : vector<14x32xf32>
    %c252 = arith.constant 252 : index
    %c0_35 = arith.constant 0 : index
    %47 = tpu.strided_load %arg9[%c252, %c0_35] {strides = array<i32: 2, 1>} : memref<784x32xf32, #tpu.memory_space<vmem>>, vector<14x32xf32>
    %c253 = arith.constant 253 : index
    %c0_36 = arith.constant 0 : index
    %48 = tpu.strided_load %arg9[%c253, %c0_36] {strides = array<i32: 2, 1>} : memref<784x32xf32, #tpu.memory_space<vmem>>, vector<14x32xf32>
    %49 = arith.maximumf %47, %48 : vector<14x32xf32>
    %50 = arith.maximumf %46, %49 : vector<14x32xf32>
    %c81 = arith.constant 81 : index
    %c0_37 = arith.constant 0 : index
    %51 = vector.load %arg10[%c81, %c0_37] : memref<272x32xf32, #tpu.memory_space<vmem>>, vector<14x32xf32>
    tpu.vector_store %arg10[%c81, %c0_37], %50 {strides = array<i32>} : memref<272x32xf32, #tpu.memory_space<vmem>>, vector<14x32xf32>,
    %c280 = arith.constant 280 : index
    %c0_38 = arith.constant 0 : index
    %52 = tpu.strided_load %arg9[%c280, %c0_38] {strides = array<i32: 2, 1>} : memref<784x32xf32, #tpu.memory_space<vmem>>, vector<14x32xf32>
    %c281 = arith.constant 281 : index
    %c0_39 = arith.constant 0 : index
    %53 = tpu.strided_load %arg9[%c281, %c0_39] {strides = array<i32: 2, 1>} : memref<784x32xf32, #tpu.memory_space<vmem>>, vector<14x32xf32>
    %54 = arith.maximumf %52, %53 : vector<14x32xf32>
    %c308 = arith.constant 308 : index
    %c0_40 = arith.constant 0 : index
    %55 = tpu.strided_load %arg9[%c308, %c0_40] {strides = array<i32: 2, 1>} : memref<784x32xf32, #tpu.memory_space<vmem>>, vector<14x32xf32>
    %c309 = arith.constant 309 : index
    %c0_41 = arith.constant 0 : index
    %56 = tpu.strided_load %arg9[%c309, %c0_41] {strides = array<i32: 2, 1>} : memref<784x32xf32, #tpu.memory_space<vmem>>, vector<14x32xf32>
    %57 = arith.maximumf %55, %56 : vector<14x32xf32>
    %58 = arith.maximumf %54, %57 : vector<14x32xf32>
    %c97 = arith.constant 97 : index
    %c0_42 = arith.constant 0 : index
    %59 = vector.load %arg10[%c97, %c0_42] : memref<272x32xf32, #tpu.memory_space<vmem>>, vector<14x32xf32>
    tpu.vector_store %arg10[%c97, %c0_42], %58 {strides = array<i32>} : memref<272x32xf32, #tpu.memory_space<vmem>>, vector<14x32xf32>,
    %c336 = arith.constant 336 : index
    %c0_43 = arith.constant 0 : index
    %60 = tpu.strided_load %arg9[%c336, %c0_43] {strides = array<i32: 2, 1>} : memref<784x32xf32, #tpu.memory_space<vmem>>, vector<14x32xf32>
    %c337 = arith.constant 337 : index
    %c0_44 = arith.constant 0 : index
    %61 = tpu.strided_load %arg9[%c337, %c0_44] {strides = array<i32: 2, 1>} : memref<784x32xf32, #tpu.memory_space<vmem>>, vector<14x32xf32>
    %62 = arith.maximumf %60, %61 : vector<14x32xf32>
    %c364 = arith.constant 364 : index
    %c0_45 = arith.constant 0 : index
    %63 = tpu.strided_load %arg9[%c364, %c0_45] {strides = array<i32: 2, 1>} : memref<784x32xf32, #tpu.memory_space<vmem>>, vector<14x32xf32>
    %c365 = arith.constant 365 : index
    %c0_46 = arith.constant 0 : index
    %64 = tpu.strided_load %arg9[%c365, %c0_46] {strides = array<i32: 2, 1>} : memref<784x32xf32, #tpu.memory_space<vmem>>, vector<14x32xf32>
    %65 = arith.maximumf %63, %64 : vector<14x32xf32>
    %66 = arith.maximumf %62, %65 : vector<14x32xf32>
    %c113_47 = arith.constant 113 : index
    %c0_48 = arith.constant 0 : index
    %67 = vector.load %arg10[%c113_47, %c0_48] : memref<272x32xf32, #tpu.memory_space<vmem>>, vector<14x32xf32>
    tpu.vector_store %arg10[%c113_47, %c0_48], %66 {strides = array<i32>} : memref<272x32xf32, #tpu.memory_space<vmem>>, vector<14x32xf32>,
    %c392 = arith.constant 392 : index
    %c0_49 = arith.constant 0 : index
    %68 = tpu.strided_load %arg9[%c392, %c0_49] {strides = array<i32: 2, 1>} : memref<784x32xf32, #tpu.memory_space<vmem>>, vector<14x32xf32>
    %c393 = arith.constant 393 : index
    %c0_50 = arith.constant 0 : index
    %69 = tpu.strided_load %arg9[%c393, %c0_50] {strides = array<i32: 2, 1>} : memref<784x32xf32, #tpu.memory_space<vmem>>, vector<14x32xf32>
    %70 = arith.maximumf %68, %69 : vector<14x32xf32>
    %c420 = arith.constant 420 : index
    %c0_51 = arith.constant 0 : index
    %71 = tpu.strided_load %arg9[%c420, %c0_51] {strides = array<i32: 2, 1>} : memref<784x32xf32, #tpu.memory_space<vmem>>, vector<14x32xf32>
    %c421 = arith.constant 421 : index
    %c0_52 = arith.constant 0 : index
    %72 = tpu.strided_load %arg9[%c421, %c0_52] {strides = array<i32: 2, 1>} : memref<784x32xf32, #tpu.memory_space<vmem>>, vector<14x32xf32>
    %73 = arith.maximumf %71, %72 : vector<14x32xf32>
    %74 = arith.maximumf %70, %73 : vector<14x32xf32>
    %c129 = arith.constant 129 : index
    %c0_53 = arith.constant 0 : index
    %75 = vector.load %arg10[%c129, %c0_53] : memref<272x32xf32, #tpu.memory_space<vmem>>, vector<14x32xf32>
    tpu.vector_store %arg10[%c129, %c0_53], %74 {strides = array<i32>} : memref<272x32xf32, #tpu.memory_space<vmem>>, vector<14x32xf32>,
    %c448 = arith.constant 448 : index
    %c0_54 = arith.constant 0 : index
    %76 = tpu.strided_load %arg9[%c448, %c0_54] {strides = array<i32: 2, 1>} : memref<784x32xf32, #tpu.memory_space<vmem>>, vector<14x32xf32>
    %c449 = arith.constant 449 : index
    %c0_55 = arith.constant 0 : index
    %77 = tpu.strided_load %arg9[%c449, %c0_55] {strides = array<i32: 2, 1>} : memref<784x32xf32, #tpu.memory_space<vmem>>, vector<14x32xf32>
    %78 = arith.maximumf %76, %77 : vector<14x32xf32>
    %c476 = arith.constant 476 : index
    %c0_56 = arith.constant 0 : index
    %79 = tpu.strided_load %arg9[%c476, %c0_56] {strides = array<i32: 2, 1>} : memref<784x32xf32, #tpu.memory_space<vmem>>, vector<14x32xf32>
    %c477 = arith.constant 477 : index
    %c0_57 = arith.constant 0 : index
    %80 = tpu.strided_load %arg9[%c477, %c0_57] {strides = array<i32: 2, 1>} : memref<784x32xf32, #tpu.memory_space<vmem>>, vector<14x32xf32>
    %81 = arith.maximumf %79, %80 : vector<14x32xf32>
    %82 = arith.maximumf %78, %81 : vector<14x32xf32>
    %c145 = arith.constant 145 : index
    %c0_58 = arith.constant 0 : index
    %83 = vector.load %arg10[%c145, %c0_58] : memref<272x32xf32, #tpu.memory_space<vmem>>, vector<14x32xf32>
    tpu.vector_store %arg10[%c145, %c0_58], %82 {strides = array<i32>} : memref<272x32xf32, #tpu.memory_space<vmem>>, vector<14x32xf32>,
    %c504 = arith.constant 504 : index
    %c0_59 = arith.constant 0 : index
    %84 = tpu.strided_load %arg9[%c504, %c0_59] {strides = array<i32: 2, 1>} : memref<784x32xf32, #tpu.memory_space<vmem>>, vector<14x32xf32>
    %c505 = arith.constant 505 : index
    %c0_60 = arith.constant 0 : index
    %85 = tpu.strided_load %arg9[%c505, %c0_60] {strides = array<i32: 2, 1>} : memref<784x32xf32, #tpu.memory_space<vmem>>, vector<14x32xf32>
    %86 = arith.maximumf %84, %85 : vector<14x32xf32>
    %c532 = arith.constant 532 : index
    %c0_61 = arith.constant 0 : index
    %87 = tpu.strided_load %arg9[%c532, %c0_61] {strides = array<i32: 2, 1>} : memref<784x32xf32, #tpu.memory_space<vmem>>, vector<14x32xf32>
    %c533 = arith.constant 533 : index
    %c0_62 = arith.constant 0 : index
    %88 = tpu.strided_load %arg9[%c533, %c0_62] {strides = array<i32: 2, 1>} : memref<784x32xf32, #tpu.memory_space<vmem>>, vector<14x32xf32>
    %89 = arith.maximumf %87, %88 : vector<14x32xf32>
    %90 = arith.maximumf %86, %89 : vector<14x32xf32>
    %c161 = arith.constant 161 : index
    %c0_63 = arith.constant 0 : index
    %91 = vector.load %arg10[%c161, %c0_63] : memref<272x32xf32, #tpu.memory_space<vmem>>, vector<14x32xf32>
    tpu.vector_store %arg10[%c161, %c0_63], %90 {strides = array<i32>} : memref<272x32xf32, #tpu.memory_space<vmem>>, vector<14x32xf32>,
    %c560 = arith.constant 560 : index
    %c0_64 = arith.constant 0 : index
    %92 = tpu.strided_load %arg9[%c560, %c0_64] {strides = array<i32: 2, 1>} : memref<784x32xf32, #tpu.memory_space<vmem>>, vector<14x32xf32>
    %c561 = arith.constant 561 : index
    %c0_65 = arith.constant 0 : index
    %93 = tpu.strided_load %arg9[%c561, %c0_65] {strides = array<i32: 2, 1>} : memref<784x32xf32, #tpu.memory_space<vmem>>, vector<14x32xf32>
    %94 = arith.maximumf %92, %93 : vector<14x32xf32>
    %c588 = arith.constant 588 : index
    %c0_66 = arith.constant 0 : index
    %95 = tpu.strided_load %arg9[%c588, %c0_66] {strides = array<i32: 2, 1>} : memref<784x32xf32, #tpu.memory_space<vmem>>, vector<14x32xf32>
    %c589 = arith.constant 589 : index
    %c0_67 = arith.constant 0 : index
    %96 = tpu.strided_load %arg9[%c589, %c0_67] {strides = array<i32: 2, 1>} : memref<784x32xf32, #tpu.memory_space<vmem>>, vector<14x32xf32>
    %97 = arith.maximumf %95, %96 : vector<14x32xf32>
    %98 = arith.maximumf %94, %97 : vector<14x32xf32>
    %c177 = arith.constant 177 : index
    %c0_68 = arith.constant 0 : index
    %99 = vector.load %arg10[%c177, %c0_68] : memref<272x32xf32, #tpu.memory_space<vmem>>, vector<14x32xf32>
    tpu.vector_store %arg10[%c177, %c0_68], %98 {strides = array<i32>} : memref<272x32xf32, #tpu.memory_space<vmem>>, vector<14x32xf32>,
    %c616 = arith.constant 616 : index
    %c0_69 = arith.constant 0 : index
    %100 = tpu.strided_load %arg9[%c616, %c0_69] {strides = array<i32: 2, 1>} : memref<784x32xf32, #tpu.memory_space<vmem>>, vector<14x32xf32>
    %c617 = arith.constant 617 : index
    %c0_70 = arith.constant 0 : index
    %101 = tpu.strided_load %arg9[%c617, %c0_70] {strides = array<i32: 2, 1>} : memref<784x32xf32, #tpu.memory_space<vmem>>, vector<14x32xf32>
    %102 = arith.maximumf %100, %101 : vector<14x32xf32>
    %c644 = arith.constant 644 : index
    %c0_71 = arith.constant 0 : index
    %103 = tpu.strided_load %arg9[%c644, %c0_71] {strides = array<i32: 2, 1>} : memref<784x32xf32, #tpu.memory_space<vmem>>, vector<14x32xf32>
    %c645 = arith.constant 645 : index
    %c0_72 = arith.constant 0 : index
    %104 = tpu.strided_load %arg9[%c645, %c0_72] {strides = array<i32: 2, 1>} : memref<784x32xf32, #tpu.memory_space<vmem>>, vector<14x32xf32>
    %105 = arith.maximumf %103, %104 : vector<14x32xf32>
    %106 = arith.maximumf %102, %105 : vector<14x32xf32>
    %c193 = arith.constant 193 : index
    %c0_73 = arith.constant 0 : index
    %107 = vector.load %arg10[%c193, %c0_73] : memref<272x32xf32, #tpu.memory_space<vmem>>, vector<14x32xf32>
    tpu.vector_store %arg10[%c193, %c0_73], %106 {strides = array<i32>} : memref<272x32xf32, #tpu.memory_space<vmem>>, vector<14x32xf32>,
    %c672 = arith.constant 672 : index
    %c0_74 = arith.constant 0 : index
    %108 = tpu.strided_load %arg9[%c672, %c0_74] {strides = array<i32: 2, 1>} : memref<784x32xf32, #tpu.memory_space<vmem>>, vector<14x32xf32>
    %c673 = arith.constant 673 : index
    %c0_75 = arith.constant 0 : index
    %109 = tpu.strided_load %arg9[%c673, %c0_75] {strides = array<i32: 2, 1>} : memref<784x32xf32, #tpu.memory_space<vmem>>, vector<14x32xf32>
    %110 = arith.maximumf %108, %109 : vector<14x32xf32>
    %c700 = arith.constant 700 : index
    %c0_76 = arith.constant 0 : index
    %111 = tpu.strided_load %arg9[%c700, %c0_76] {strides = array<i32: 2, 1>} : memref<784x32xf32, #tpu.memory_space<vmem>>, vector<14x32xf32>
    %c701 = arith.constant 701 : index
    %c0_77 = arith.constant 0 : index
    %112 = tpu.strided_load %arg9[%c701, %c0_77] {strides = array<i32: 2, 1>} : memref<784x32xf32, #tpu.memory_space<vmem>>, vector<14x32xf32>
    %113 = arith.maximumf %111, %112 : vector<14x32xf32>
    %114 = arith.maximumf %110, %113 : vector<14x32xf32>
    %c209 = arith.constant 209 : index
    %c0_78 = arith.constant 0 : index
    %115 = vector.load %arg10[%c209, %c0_78] : memref<272x32xf32, #tpu.memory_space<vmem>>, vector<14x32xf32>
    tpu.vector_store %arg10[%c209, %c0_78], %114 {strides = array<i32>} : memref<272x32xf32, #tpu.memory_space<vmem>>, vector<14x32xf32>,
    %c728 = arith.constant 728 : index
    %c0_79 = arith.constant 0 : index
    %116 = tpu.strided_load %arg9[%c728, %c0_79] {strides = array<i32: 2, 1>} : memref<784x32xf32, #tpu.memory_space<vmem>>, vector<14x32xf32>
    %c729 = arith.constant 729 : index
    %c0_80 = arith.constant 0 : index
    %117 = tpu.strided_load %arg9[%c729, %c0_80] {strides = array<i32: 2, 1>} : memref<784x32xf32, #tpu.memory_space<vmem>>, vector<14x32xf32>
    %118 = arith.maximumf %116, %117 : vector<14x32xf32>
    %c756 = arith.constant 756 : index
    %c0_81 = arith.constant 0 : index
    %119 = tpu.strided_load %arg9[%c756, %c0_81] {strides = array<i32: 2, 1>} : memref<784x32xf32, #tpu.memory_space<vmem>>, vector<14x32xf32>
    %c757 = arith.constant 757 : index
    %c0_82 = arith.constant 0 : index
    %120 = tpu.strided_load %arg9[%c757, %c0_82] {strides = array<i32: 2, 1>} : memref<784x32xf32, #tpu.memory_space<vmem>>, vector<14x32xf32>
    %121 = arith.maximumf %119, %120 : vector<14x32xf32>
    %122 = arith.maximumf %118, %121 : vector<14x32xf32>
    %c225_83 = arith.constant 225 : index
    %c0_84 = arith.constant 0 : index
    %123 = vector.load %arg10[%c225_83, %c0_84] : memref<272x32xf32, #tpu.memory_space<vmem>>, vector<14x32xf32>
    tpu.vector_store %arg10[%c225_83, %c0_84], %122 {strides = array<i32>} : memref<272x32xf32, #tpu.memory_space<vmem>>, vector<14x32xf32>,
    %c0_85 = arith.constant 0 : index
    %c0_86 = arith.constant 0 : index
    %124 = vector.load %arg10[%c0_85, %c0_86] : memref<272x32xf32, #tpu.memory_space<vmem>>, vector<224x32xf32>
    %125 = arith.truncf %124 : vector<224x32xf32> to vector<224x32xbf16>
    %c0_87 = arith.constant 0 : index
    %c0_88 = arith.constant 0 : index
    %126 = vector.load %arg11[%c0_87, %c0_88] : memref<224x288xbf16, #tpu.memory_space<vmem>>, vector<224x32xbf16>
    tpu.vector_store %arg11[%c0_87, %c0_88], %125 {strides = array<i32>} : memref<224x288xbf16, #tpu.memory_space<vmem>>, vector<224x32xbf16>,
    %c1_89 = arith.constant 1 : index
    %c0_90 = arith.constant 0 : index
    %127 = vector.load %arg10[%c1_89, %c0_90] : memref<272x32xf32, #tpu.memory_space<vmem>>, vector<224x32xf32>
    %128 = arith.truncf %127 : vector<224x32xf32> to vector<224x32xbf16>
    %c0_91 = arith.constant 0 : index
    %c32 = arith.constant 32 : index
    %129 = vector.load %arg11[%c0_91, %c32] : memref<224x288xbf16, #tpu.memory_space<vmem>>, vector<224x32xbf16>
    tpu.vector_store %arg11[%c0_91, %c32], %128 {strides = array<i32>} : memref<224x288xbf16, #tpu.memory_space<vmem>>, vector<224x32xbf16>,
    %c2 = arith.constant 2 : index
    %c0_92 = arith.constant 0 : index
    %130 = vector.load %arg10[%c2, %c0_92] : memref<272x32xf32, #tpu.memory_space<vmem>>, vector<224x32xf32>
    %131 = arith.truncf %130 : vector<224x32xf32> to vector<224x32xbf16>
    %c0_93 = arith.constant 0 : index
    %c64 = arith.constant 64 : index
    %132 = vector.load %arg11[%c0_93, %c64] : memref<224x288xbf16, #tpu.memory_space<vmem>>, vector<224x32xbf16>
    tpu.vector_store %arg11[%c0_93, %c64], %131 {strides = array<i32>} : memref<224x288xbf16, #tpu.memory_space<vmem>>, vector<224x32xbf16>,
    %c16 = arith.constant 16 : index
    %c0_94 = arith.constant 0 : index
    %133 = vector.load %arg10[%c16, %c0_94] : memref<272x32xf32, #tpu.memory_space<vmem>>, vector<224x32xf32>
    %134 = arith.truncf %133 : vector<224x32xf32> to vector<224x32xbf16>
    %c0_95 = arith.constant 0 : index
    %c96 = arith.constant 96 : index
    %135 = vector.load %arg11[%c0_95, %c96] : memref<224x288xbf16, #tpu.memory_space<vmem>>, vector<224x32xbf16>
    tpu.vector_store %arg11[%c0_95, %c96], %134 {strides = array<i32>} : memref<224x288xbf16, #tpu.memory_space<vmem>>, vector<224x32xbf16>,
    %c17_96 = arith.constant 17 : index
    %c0_97 = arith.constant 0 : index
    %136 = vector.load %arg10[%c17_96, %c0_97] : memref<272x32xf32, #tpu.memory_space<vmem>>, vector<224x32xf32>
    %137 = arith.truncf %136 : vector<224x32xf32> to vector<224x32xbf16>
    %c0_98 = arith.constant 0 : index
    %c128 = arith.constant 128 : index
    %138 = vector.load %arg11[%c0_98, %c128] : memref<224x288xbf16, #tpu.memory_space<vmem>>, vector<224x32xbf16>
    tpu.vector_store %arg11[%c0_98, %c128], %137 {strides = array<i32>} : memref<224x288xbf16, #tpu.memory_space<vmem>>, vector<224x32xbf16>,
    %c18 = arith.constant 18 : index
    %c0_99 = arith.constant 0 : index
    %139 = vector.load %arg10[%c18, %c0_99] : memref<272x32xf32, #tpu.memory_space<vmem>>, vector<224x32xf32>
    %140 = arith.truncf %139 : vector<224x32xf32> to vector<224x32xbf16>
    %c0_100 = arith.constant 0 : index
    %c160 = arith.constant 160 : index
    %141 = vector.load %arg11[%c0_100, %c160] : memref<224x288xbf16, #tpu.memory_space<vmem>>, vector<224x32xbf16>
    tpu.vector_store %arg11[%c0_100, %c160], %140 {strides = array<i32>} : memref<224x288xbf16, #tpu.memory_space<vmem>>, vector<224x32xbf16>,
    %c32_101 = arith.constant 32 : index
    %c0_102 = arith.constant 0 : index
    %142 = vector.load %arg10[%c32_101, %c0_102] : memref<272x32xf32, #tpu.memory_space<vmem>>, vector<224x32xf32>
    %143 = arith.truncf %142 : vector<224x32xf32> to vector<224x32xbf16>
    %c0_103 = arith.constant 0 : index
    %c192 = arith.constant 192 : index
    %144 = vector.load %arg11[%c0_103, %c192] : memref<224x288xbf16, #tpu.memory_space<vmem>>, vector<224x32xbf16>
    tpu.vector_store %arg11[%c0_103, %c192], %143 {strides = array<i32>} : memref<224x288xbf16, #tpu.memory_space<vmem>>, vector<224x32xbf16>,
    %c33_104 = arith.constant 33 : index
    %c0_105 = arith.constant 0 : index
    %145 = vector.load %arg10[%c33_104, %c0_105] : memref<272x32xf32, #tpu.memory_space<vmem>>, vector<224x32xf32>
    %146 = arith.truncf %145 : vector<224x32xf32> to vector<224x32xbf16>
    %c0_106 = arith.constant 0 : index
    %c224_107 = arith.constant 224 : index
    %147 = vector.load %arg11[%c0_106, %c224_107] : memref<224x288xbf16, #tpu.memory_space<vmem>>, vector<224x32xbf16>
    tpu.vector_store %arg11[%c0_106, %c224_107], %146 {strides = array<i32>} : memref<224x288xbf16, #tpu.memory_space<vmem>>, vector<224x32xbf16>,
    %c34 = arith.constant 34 : index
    %c0_108 = arith.constant 0 : index
    %148 = vector.load %arg10[%c34, %c0_108] : memref<272x32xf32, #tpu.memory_space<vmem>>, vector<224x32xf32>
    %149 = arith.truncf %148 : vector<224x32xf32> to vector<224x32xbf16>
    %c0_109 = arith.constant 0 : index
    %c256 = arith.constant 256 : index
    %150 = vector.load %arg11[%c0_109, %c256] : memref<224x288xbf16, #tpu.memory_space<vmem>>, vector<224x32xbf16>
    tpu.vector_store %arg11[%c0_109, %c256], %149 {strides = array<i32>} : memref<224x288xbf16, #tpu.memory_space<vmem>>, vector<224x32xbf16>,
    %c0_110 = arith.constant 0 : index
    %c0_111 = arith.constant 0 : index
    %151 = vector.load %arg11[%c0_110, %c0_111] : memref<224x288xbf16, #tpu.memory_space<vmem>>, vector<224x288xbf16>
    %c0_112 = arith.constant 0 : index
    %c0_113 = arith.constant 0 : index
    %152 = vector.load %arg4[%c0_112, %c0_113] : memref<288x64xbf16, #tpu.memory_space<vmem>>, vector<288x64xbf16>
    %cst_114 = arith.constant dense<0.000000e+00> : vector<224x64xf32>
    %153 = tpu.matmul %151, %152, %cst_114 {dimension_numbers = #tpu.dot_dimension_numbers<[1], [0], [0], [1], [0, 0, 1, 1], [], []>} : vector<224x288xbf16>, vector<288x64xbf16>, vector<224x64xf32> -> vector<224x64xf32>
    %c0_115 = arith.constant 0 : index
    %c0_116 = arith.constant 0 : index
    %154 = vector.load %arg5[%c0_115, %c0_116] : memref<1x64xf32, #tpu.memory_space<vmem>>, vector<1x64xf32>
    %155 = vector.broadcast %154 : vector<1x64xf32> to vector<224x64xf32>
    %156 = arith.addf %153, %155 : vector<224x64xf32>
    %cst_117 = arith.constant 0.000000e+00 : f32
    %157 = vector.broadcast %cst_117 : f32 to vector<224x64xf32>
    %158 = arith.maximumf %156, %157 : vector<224x64xf32>
    %c0_118 = arith.constant 0 : index
    %c0_119 = arith.constant 0 : index
    %159 = vector.load %arg12[%c0_118, %c0_119] : memref<224x64xf32, #tpu.memory_space<vmem>>, vector<224x64xf32>
    tpu.vector_store %arg12[%c0_118, %c0_119], %158 {strides = array<i32>} : memref<224x64xf32, #tpu.memory_space<vmem>>, vector<224x64xf32>,
    %c0_120 = arith.constant 0 : index
    %c0_121 = arith.constant 0 : index
    %160 = tpu.strided_load %arg12[%c0_120, %c0_121] {strides = array<i32: 2, 1>} : memref<224x64xf32, #tpu.memory_space<vmem>>, vector<7x64xf32>
    %c1_122 = arith.constant 1 : index
    %c0_123 = arith.constant 0 : index
    %161 = tpu.strided_load %arg12[%c1_122, %c0_123] {strides = array<i32: 2, 1>} : memref<224x64xf32, #tpu.memory_space<vmem>>, vector<7x64xf32>
    %162 = arith.maximumf %160, %161 : vector<7x64xf32>
    %c16_124 = arith.constant 16 : index
    %c0_125 = arith.constant 0 : index
    %163 = tpu.strided_load %arg12[%c16_124, %c0_125] {strides = array<i32: 2, 1>} : memref<224x64xf32, #tpu.memory_space<vmem>>, vector<7x64xf32>
    %c17_126 = arith.constant 17 : index
    %c0_127 = arith.constant 0 : index
    %164 = tpu.strided_load %arg12[%c17_126, %c0_127] {strides = array<i32: 2, 1>} : memref<224x64xf32, #tpu.memory_space<vmem>>, vector<7x64xf32>
    %165 = arith.maximumf %163, %164 : vector<7x64xf32>
    %166 = arith.maximumf %162, %165 : vector<7x64xf32>
    %167 = vector.extract_strided_slice %166 {offsets = [0, 0], sizes = [1, 64], strides = [1, 1]} : vector<7x64xf32> to vector<1x64xf32>
    %c0_128 = arith.constant 0 : index
    %c0_129 = arith.constant 0 : index
    %168 = vector.load %arg13[%c0_128, %c0_129] : memref<1x3136xf32, #tpu.memory_space<vmem>>, vector<1x64xf32>
    tpu.vector_store %arg13[%c0_128, %c0_129], %167 {strides = array<i32>} : memref<1x3136xf32, #tpu.memory_space<vmem>>, vector<1x64xf32>,
    %169 = vector.extract_strided_slice %166 {offsets = [1, 0], sizes = [1, 64], strides = [1, 1]} : vector<7x64xf32> to vector<1x64xf32>
    %c0_130 = arith.constant 0 : index
    %c64_131 = arith.constant 64 : index
    %170 = vector.load %arg13[%c0_130, %c64_131] : memref<1x3136xf32, #tpu.memory_space<vmem>>, vector<1x64xf32>
    tpu.vector_store %arg13[%c0_130, %c64_131], %169 {strides = array<i32>} : memref<1x3136xf32, #tpu.memory_space<vmem>>, vector<1x64xf32>,
    %171 = vector.extract_strided_slice %166 {offsets = [2, 0], sizes = [1, 64], strides = [1, 1]} : vector<7x64xf32> to vector<1x64xf32>
    %c0_132 = arith.constant 0 : index
    %c128_133 = arith.constant 128 : index
    %172 = vector.load %arg13[%c0_132, %c128_133] : memref<1x3136xf32, #tpu.memory_space<vmem>>, vector<1x64xf32>
    tpu.vector_store %arg13[%c0_132, %c128_133], %171 {strides = array<i32>} : memref<1x3136xf32, #tpu.memory_space<vmem>>, vector<1x64xf32>,
    %173 = vector.extract_strided_slice %166 {offsets = [3, 0], sizes = [1, 64], strides = [1, 1]} : vector<7x64xf32> to vector<1x64xf32>
    %c0_134 = arith.constant 0 : index
    %c192_135 = arith.constant 192 : index
    %174 = vector.load %arg13[%c0_134, %c192_135] : memref<1x3136xf32, #tpu.memory_space<vmem>>, vector<1x64xf32>
    tpu.vector_store %arg13[%c0_134, %c192_135], %173 {strides = array<i32>} : memref<1x3136xf32, #tpu.memory_space<vmem>>, vector<1x64xf32>,
    %175 = vector.extract_strided_slice %166 {offsets = [4, 0], sizes = [1, 64], strides = [1, 1]} : vector<7x64xf32> to vector<1x64xf32>
    %c0_136 = arith.constant 0 : index
    %c256_137 = arith.constant 256 : index
    %176 = vector.load %arg13[%c0_136, %c256_137] : memref<1x3136xf32, #tpu.memory_space<vmem>>, vector<1x64xf32>
    tpu.vector_store %arg13[%c0_136, %c256_137], %175 {strides = array<i32>} : memref<1x3136xf32, #tpu.memory_space<vmem>>, vector<1x64xf32>,
    %177 = vector.extract_strided_slice %166 {offsets = [5, 0], sizes = [1, 64], strides = [1, 1]} : vector<7x64xf32> to vector<1x64xf32>
    %c0_138 = arith.constant 0 : index
    %c320 = arith.constant 320 : index
    %178 = vector.load %arg13[%c0_138, %c320] : memref<1x3136xf32, #tpu.memory_space<vmem>>, vector<1x64xf32>
    tpu.vector_store %arg13[%c0_138, %c320], %177 {strides = array<i32>} : memref<1x3136xf32, #tpu.memory_space<vmem>>, vector<1x64xf32>,
    %179 = vector.extract_strided_slice %166 {offsets = [6, 0], sizes = [1, 64], strides = [1, 1]} : vector<7x64xf32> to vector<1x64xf32>
    %c0_139 = arith.constant 0 : index
    %c384 = arith.constant 384 : index
    %180 = vector.load %arg13[%c0_139, %c384] : memref<1x3136xf32, #tpu.memory_space<vmem>>, vector<1x64xf32>
    tpu.vector_store %arg13[%c0_139, %c384], %179 {strides = array<i32>} : memref<1x3136xf32, #tpu.memory_space<vmem>>, vector<1x64xf32>,
    %c32_140 = arith.constant 32 : index
    %c0_141 = arith.constant 0 : index
    %181 = tpu.strided_load %arg12[%c32_140, %c0_141] {strides = array<i32: 2, 1>} : memref<224x64xf32, #tpu.memory_space<vmem>>, vector<7x64xf32>
    %c33_142 = arith.constant 33 : index
    %c0_143 = arith.constant 0 : index
    %182 = tpu.strided_load %arg12[%c33_142, %c0_143] {strides = array<i32: 2, 1>} : memref<224x64xf32, #tpu.memory_space<vmem>>, vector<7x64xf32>
    %183 = arith.maximumf %181, %182 : vector<7x64xf32>
    %c48 = arith.constant 48 : index
    %c0_144 = arith.constant 0 : index
    %184 = tpu.strided_load %arg12[%c48, %c0_144] {strides = array<i32: 2, 1>} : memref<224x64xf32, #tpu.memory_space<vmem>>, vector<7x64xf32>
    %c49_145 = arith.constant 49 : index
    %c0_146 = arith.constant 0 : index
    %185 = tpu.strided_load %arg12[%c49_145, %c0_146] {strides = array<i32: 2, 1>} : memref<224x64xf32, #tpu.memory_space<vmem>>, vector<7x64xf32>
    %186 = arith.maximumf %184, %185 : vector<7x64xf32>
    %187 = arith.maximumf %183, %186 : vector<7x64xf32>
    %188 = vector.extract_strided_slice %187 {offsets = [0, 0], sizes = [1, 64], strides = [1, 1]} : vector<7x64xf32> to vector<1x64xf32>
    %c0_147 = arith.constant 0 : index
    %c448_148 = arith.constant 448 : index
    %189 = vector.load %arg13[%c0_147, %c448_148] : memref<1x3136xf32, #tpu.memory_space<vmem>>, vector<1x64xf32>
    tpu.vector_store %arg13[%c0_147, %c448_148], %188 {strides = array<i32>} : memref<1x3136xf32, #tpu.memory_space<vmem>>, vector<1x64xf32>,
    %190 = vector.extract_strided_slice %187 {offsets = [1, 0], sizes = [1, 64], strides = [1, 1]} : vector<7x64xf32> to vector<1x64xf32>
    %c0_149 = arith.constant 0 : index
    %c512 = arith.constant 512 : index
    %191 = vector.load %arg13[%c0_149, %c512] : memref<1x3136xf32, #tpu.memory_space<vmem>>, vector<1x64xf32>
    tpu.vector_store %arg13[%c0_149, %c512], %190 {strides = array<i32>} : memref<1x3136xf32, #tpu.memory_space<vmem>>, vector<1x64xf32>,
    %192 = vector.extract_strided_slice %187 {offsets = [2, 0], sizes = [1, 64], strides = [1, 1]} : vector<7x64xf32> to vector<1x64xf32>
    %c0_150 = arith.constant 0 : index
    %c576 = arith.constant 576 : index
    %193 = vector.load %arg13[%c0_150, %c576] : memref<1x3136xf32, #tpu.memory_space<vmem>>, vector<1x64xf32>
    tpu.vector_store %arg13[%c0_150, %c576], %192 {strides = array<i32>} : memref<1x3136xf32, #tpu.memory_space<vmem>>, vector<1x64xf32>,
    %194 = vector.extract_strided_slice %187 {offsets = [3, 0], sizes = [1, 64], strides = [1, 1]} : vector<7x64xf32> to vector<1x64xf32>
    %c0_151 = arith.constant 0 : index
    %c640 = arith.constant 640 : index
    %195 = vector.load %arg13[%c0_151, %c640] : memref<1x3136xf32, #tpu.memory_space<vmem>>, vector<1x64xf32>
    tpu.vector_store %arg13[%c0_151, %c640], %194 {strides = array<i32>} : memref<1x3136xf32, #tpu.memory_space<vmem>>, vector<1x64xf32>,
    %196 = vector.extract_strided_slice %187 {offsets = [4, 0], sizes = [1, 64], strides = [1, 1]} : vector<7x64xf32> to vector<1x64xf32>
    %c0_152 = arith.constant 0 : index
    %c704 = arith.constant 704 : index
    %197 = vector.load %arg13[%c0_152, %c704] : memref<1x3136xf32, #tpu.memory_space<vmem>>, vector<1x64xf32>
    tpu.vector_store %arg13[%c0_152, %c704], %196 {strides = array<i32>} : memref<1x3136xf32, #tpu.memory_space<vmem>>, vector<1x64xf32>,
    %198 = vector.extract_strided_slice %187 {offsets = [5, 0], sizes = [1, 64], strides = [1, 1]} : vector<7x64xf32> to vector<1x64xf32>
    %c0_153 = arith.constant 0 : index
    %c768 = arith.constant 768 : index
    %199 = vector.load %arg13[%c0_153, %c768] : memref<1x3136xf32, #tpu.memory_space<vmem>>, vector<1x64xf32>
    tpu.vector_store %arg13[%c0_153, %c768], %198 {strides = array<i32>} : memref<1x3136xf32, #tpu.memory_space<vmem>>, vector<1x64xf32>,
    %200 = vector.extract_strided_slice %187 {offsets = [6, 0], sizes = [1, 64], strides = [1, 1]} : vector<7x64xf32> to vector<1x64xf32>
    %c0_154 = arith.constant 0 : index
    %c832 = arith.constant 832 : index
    %201 = vector.load %arg13[%c0_154, %c832] : memref<1x3136xf32, #tpu.memory_space<vmem>>, vector<1x64xf32>
    tpu.vector_store %arg13[%c0_154, %c832], %200 {strides = array<i32>} : memref<1x3136xf32, #tpu.memory_space<vmem>>, vector<1x64xf32>,
    %c64_155 = arith.constant 64 : index
    %c0_156 = arith.constant 0 : index
    %202 = tpu.strided_load %arg12[%c64_155, %c0_156] {strides = array<i32: 2, 1>} : memref<224x64xf32, #tpu.memory_space<vmem>>, vector<7x64xf32>
    %c65_157 = arith.constant 65 : index
    %c0_158 = arith.constant 0 : index
    %203 = tpu.strided_load %arg12[%c65_157, %c0_158] {strides = array<i32: 2, 1>} : memref<224x64xf32, #tpu.memory_space<vmem>>, vector<7x64xf32>
    %204 = arith.maximumf %202, %203 : vector<7x64xf32>
    %c80 = arith.constant 80 : index
    %c0_159 = arith.constant 0 : index
    %205 = tpu.strided_load %arg12[%c80, %c0_159] {strides = array<i32: 2, 1>} : memref<224x64xf32, #tpu.memory_space<vmem>>, vector<7x64xf32>
    %c81_160 = arith.constant 81 : index
    %c0_161 = arith.constant 0 : index
    %206 = tpu.strided_load %arg12[%c81_160, %c0_161] {strides = array<i32: 2, 1>} : memref<224x64xf32, #tpu.memory_space<vmem>>, vector<7x64xf32>
    %207 = arith.maximumf %205, %206 : vector<7x64xf32>
    %208 = arith.maximumf %204, %207 : vector<7x64xf32>
    %209 = vector.extract_strided_slice %208 {offsets = [0, 0], sizes = [1, 64], strides = [1, 1]} : vector<7x64xf32> to vector<1x64xf32>
    %c0_162 = arith.constant 0 : index
    %c896 = arith.constant 896 : index
    %210 = vector.load %arg13[%c0_162, %c896] : memref<1x3136xf32, #tpu.memory_space<vmem>>, vector<1x64xf32>
    tpu.vector_store %arg13[%c0_162, %c896], %209 {strides = array<i32>} : memref<1x3136xf32, #tpu.memory_space<vmem>>, vector<1x64xf32>,
    %211 = vector.extract_strided_slice %208 {offsets = [1, 0], sizes = [1, 64], strides = [1, 1]} : vector<7x64xf32> to vector<1x64xf32>
    %c0_163 = arith.constant 0 : index
    %c960 = arith.constant 960 : index
    %212 = vector.load %arg13[%c0_163, %c960] : memref<1x3136xf32, #tpu.memory_space<vmem>>, vector<1x64xf32>
    tpu.vector_store %arg13[%c0_163, %c960], %211 {strides = array<i32>} : memref<1x3136xf32, #tpu.memory_space<vmem>>, vector<1x64xf32>,
    %213 = vector.extract_strided_slice %208 {offsets = [2, 0], sizes = [1, 64], strides = [1, 1]} : vector<7x64xf32> to vector<1x64xf32>
    %c0_164 = arith.constant 0 : index
    %c1024 = arith.constant 1024 : index
    %214 = vector.load %arg13[%c0_164, %c1024] : memref<1x3136xf32, #tpu.memory_space<vmem>>, vector<1x64xf32>
    tpu.vector_store %arg13[%c0_164, %c1024], %213 {strides = array<i32>} : memref<1x3136xf32, #tpu.memory_space<vmem>>, vector<1x64xf32>,
    %215 = vector.extract_strided_slice %208 {offsets = [3, 0], sizes = [1, 64], strides = [1, 1]} : vector<7x64xf32> to vector<1x64xf32>
    %c0_165 = arith.constant 0 : index
    %c1088 = arith.constant 1088 : index
    %216 = vector.load %arg13[%c0_165, %c1088] : memref<1x3136xf32, #tpu.memory_space<vmem>>, vector<1x64xf32>
    tpu.vector_store %arg13[%c0_165, %c1088], %215 {strides = array<i32>} : memref<1x3136xf32, #tpu.memory_space<vmem>>, vector<1x64xf32>,
    %217 = vector.extract_strided_slice %208 {offsets = [4, 0], sizes = [1, 64], strides = [1, 1]} : vector<7x64xf32> to vector<1x64xf32>
    %c0_166 = arith.constant 0 : index
    %c1152 = arith.constant 1152 : index
    %218 = vector.load %arg13[%c0_166, %c1152] : memref<1x3136xf32, #tpu.memory_space<vmem>>, vector<1x64xf32>
    tpu.vector_store %arg13[%c0_166, %c1152], %217 {strides = array<i32>} : memref<1x3136xf32, #tpu.memory_space<vmem>>, vector<1x64xf32>,
    %219 = vector.extract_strided_slice %208 {offsets = [5, 0], sizes = [1, 64], strides = [1, 1]} : vector<7x64xf32> to vector<1x64xf32>
    %c0_167 = arith.constant 0 : index
    %c1216 = arith.constant 1216 : index
    %220 = vector.load %arg13[%c0_167, %c1216] : memref<1x3136xf32, #tpu.memory_space<vmem>>, vector<1x64xf32>
    tpu.vector_store %arg13[%c0_167, %c1216], %219 {strides = array<i32>} : memref<1x3136xf32, #tpu.memory_space<vmem>>, vector<1x64xf32>,
    %221 = vector.extract_strided_slice %208 {offsets = [6, 0], sizes = [1, 64], strides = [1, 1]} : vector<7x64xf32> to vector<1x64xf32>
    %c0_168 = arith.constant 0 : index
    %c1280 = arith.constant 1280 : index
    %222 = vector.load %arg13[%c0_168, %c1280] : memref<1x3136xf32, #tpu.memory_space<vmem>>, vector<1x64xf32>
    tpu.vector_store %arg13[%c0_168, %c1280], %221 {strides = array<i32>} : memref<1x3136xf32, #tpu.memory_space<vmem>>, vector<1x64xf32>,
    %c96_169 = arith.constant 96 : index
    %c0_170 = arith.constant 0 : index
    %223 = tpu.strided_load %arg12[%c96_169, %c0_170] {strides = array<i32: 2, 1>} : memref<224x64xf32, #tpu.memory_space<vmem>>, vector<7x64xf32>
    %c97_171 = arith.constant 97 : index
    %c0_172 = arith.constant 0 : index
    %224 = tpu.strided_load %arg12[%c97_171, %c0_172] {strides = array<i32: 2, 1>} : memref<224x64xf32, #tpu.memory_space<vmem>>, vector<7x64xf32>
    %225 = arith.maximumf %223, %224 : vector<7x64xf32>
    %c112_173 = arith.constant 112 : index
    %c0_174 = arith.constant 0 : index
    %226 = tpu.strided_load %arg12[%c112_173, %c0_174] {strides = array<i32: 2, 1>} : memref<224x64xf32, #tpu.memory_space<vmem>>, vector<7x64xf32>
    %c113_175 = arith.constant 113 : index
    %c0_176 = arith.constant 0 : index
    %227 = tpu.strided_load %arg12[%c113_175, %c0_176] {strides = array<i32: 2, 1>} : memref<224x64xf32, #tpu.memory_space<vmem>>, vector<7x64xf32>
    %228 = arith.maximumf %226, %227 : vector<7x64xf32>
    %229 = arith.maximumf %225, %228 : vector<7x64xf32>
    %230 = vector.extract_strided_slice %229 {offsets = [0, 0], sizes = [1, 64], strides = [1, 1]} : vector<7x64xf32> to vector<1x64xf32>
    %c0_177 = arith.constant 0 : index
    %c1344 = arith.constant 1344 : index
    %231 = vector.load %arg13[%c0_177, %c1344] : memref<1x3136xf32, #tpu.memory_space<vmem>>, vector<1x64xf32>
    tpu.vector_store %arg13[%c0_177, %c1344], %230 {strides = array<i32>} : memref<1x3136xf32, #tpu.memory_space<vmem>>, vector<1x64xf32>,
    %232 = vector.extract_strided_slice %229 {offsets = [1, 0], sizes = [1, 64], strides = [1, 1]} : vector<7x64xf32> to vector<1x64xf32>
    %c0_178 = arith.constant 0 : index
    %c1408 = arith.constant 1408 : index
    %233 = vector.load %arg13[%c0_178, %c1408] : memref<1x3136xf32, #tpu.memory_space<vmem>>, vector<1x64xf32>
    tpu.vector_store %arg13[%c0_178, %c1408], %232 {strides = array<i32>} : memref<1x3136xf32, #tpu.memory_space<vmem>>, vector<1x64xf32>,
    %234 = vector.extract_strided_slice %229 {offsets = [2, 0], sizes = [1, 64], strides = [1, 1]} : vector<7x64xf32> to vector<1x64xf32>
    %c0_179 = arith.constant 0 : index
    %c1472 = arith.constant 1472 : index
    %235 = vector.load %arg13[%c0_179, %c1472] : memref<1x3136xf32, #tpu.memory_space<vmem>>, vector<1x64xf32>
    tpu.vector_store %arg13[%c0_179, %c1472], %234 {strides = array<i32>} : memref<1x3136xf32, #tpu.memory_space<vmem>>, vector<1x64xf32>,
    %236 = vector.extract_strided_slice %229 {offsets = [3, 0], sizes = [1, 64], strides = [1, 1]} : vector<7x64xf32> to vector<1x64xf32>
    %c0_180 = arith.constant 0 : index
    %c1536 = arith.constant 1536 : index
    %237 = vector.load %arg13[%c0_180, %c1536] : memref<1x3136xf32, #tpu.memory_space<vmem>>, vector<1x64xf32>
    tpu.vector_store %arg13[%c0_180, %c1536], %236 {strides = array<i32>} : memref<1x3136xf32, #tpu.memory_space<vmem>>, vector<1x64xf32>,
    %238 = vector.extract_strided_slice %229 {offsets = [4, 0], sizes = [1, 64], strides = [1, 1]} : vector<7x64xf32> to vector<1x64xf32>
    %c0_181 = arith.constant 0 : index
    %c1600 = arith.constant 1600 : index
    %239 = vector.load %arg13[%c0_181, %c1600] : memref<1x3136xf32, #tpu.memory_space<vmem>>, vector<1x64xf32>
    tpu.vector_store %arg13[%c0_181, %c1600], %238 {strides = array<i32>} : memref<1x3136xf32, #tpu.memory_space<vmem>>, vector<1x64xf32>,
    %240 = vector.extract_strided_slice %229 {offsets = [5, 0], sizes = [1, 64], strides = [1, 1]} : vector<7x64xf32> to vector<1x64xf32>
    %c0_182 = arith.constant 0 : index
    %c1664 = arith.constant 1664 : index
    %241 = vector.load %arg13[%c0_182, %c1664] : memref<1x3136xf32, #tpu.memory_space<vmem>>, vector<1x64xf32>
    tpu.vector_store %arg13[%c0_182, %c1664], %240 {strides = array<i32>} : memref<1x3136xf32, #tpu.memory_space<vmem>>, vector<1x64xf32>,
    %242 = vector.extract_strided_slice %229 {offsets = [6, 0], sizes = [1, 64], strides = [1, 1]} : vector<7x64xf32> to vector<1x64xf32>
    %c0_183 = arith.constant 0 : index
    %c1728 = arith.constant 1728 : index
    %243 = vector.load %arg13[%c0_183, %c1728] : memref<1x3136xf32, #tpu.memory_space<vmem>>, vector<1x64xf32>
    tpu.vector_store %arg13[%c0_183, %c1728], %242 {strides = array<i32>} : memref<1x3136xf32, #tpu.memory_space<vmem>>, vector<1x64xf32>,
    %c128_184 = arith.constant 128 : index
    %c0_185 = arith.constant 0 : index
    %244 = tpu.strided_load %arg12[%c128_184, %c0_185] {strides = array<i32: 2, 1>} : memref<224x64xf32, #tpu.memory_space<vmem>>, vector<7x64xf32>
    %c129_186 = arith.constant 129 : index
    %c0_187 = arith.constant 0 : index
    %245 = tpu.strided_load %arg12[%c129_186, %c0_187] {strides = array<i32: 2, 1>} : memref<224x64xf32, #tpu.memory_space<vmem>>, vector<7x64xf32>
    %246 = arith.maximumf %244, %245 : vector<7x64xf32>
    %c144 = arith.constant 144 : index
    %c0_188 = arith.constant 0 : index
    %247 = tpu.strided_load %arg12[%c144, %c0_188] {strides = array<i32: 2, 1>} : memref<224x64xf32, #tpu.memory_space<vmem>>, vector<7x64xf32>
    %c145_189 = arith.constant 145 : index
    %c0_190 = arith.constant 0 : index
    %248 = tpu.strided_load %arg12[%c145_189, %c0_190] {strides = array<i32: 2, 1>} : memref<224x64xf32, #tpu.memory_space<vmem>>, vector<7x64xf32>
    %249 = arith.maximumf %247, %248 : vector<7x64xf32>
    %250 = arith.maximumf %246, %249 : vector<7x64xf32>
    %251 = vector.extract_strided_slice %250 {offsets = [0, 0], sizes = [1, 64], strides = [1, 1]} : vector<7x64xf32> to vector<1x64xf32>
    %c0_191 = arith.constant 0 : index
    %c1792 = arith.constant 1792 : index
    %252 = vector.load %arg13[%c0_191, %c1792] : memref<1x3136xf32, #tpu.memory_space<vmem>>, vector<1x64xf32>
    tpu.vector_store %arg13[%c0_191, %c1792], %251 {strides = array<i32>} : memref<1x3136xf32, #tpu.memory_space<vmem>>, vector<1x64xf32>,
    %253 = vector.extract_strided_slice %250 {offsets = [1, 0], sizes = [1, 64], strides = [1, 1]} : vector<7x64xf32> to vector<1x64xf32>
    %c0_192 = arith.constant 0 : index
    %c1856 = arith.constant 1856 : index
    %254 = vector.load %arg13[%c0_192, %c1856] : memref<1x3136xf32, #tpu.memory_space<vmem>>, vector<1x64xf32>
    tpu.vector_store %arg13[%c0_192, %c1856], %253 {strides = array<i32>} : memref<1x3136xf32, #tpu.memory_space<vmem>>, vector<1x64xf32>,
    %255 = vector.extract_strided_slice %250 {offsets = [2, 0], sizes = [1, 64], strides = [1, 1]} : vector<7x64xf32> to vector<1x64xf32>
    %c0_193 = arith.constant 0 : index
    %c1920 = arith.constant 1920 : index
    %256 = vector.load %arg13[%c0_193, %c1920] : memref<1x3136xf32, #tpu.memory_space<vmem>>, vector<1x64xf32>
    tpu.vector_store %arg13[%c0_193, %c1920], %255 {strides = array<i32>} : memref<1x3136xf32, #tpu.memory_space<vmem>>, vector<1x64xf32>,
    %257 = vector.extract_strided_slice %250 {offsets = [3, 0], sizes = [1, 64], strides = [1, 1]} : vector<7x64xf32> to vector<1x64xf32>
    %c0_194 = arith.constant 0 : index
    %c1984 = arith.constant 1984 : index
    %258 = vector.load %arg13[%c0_194, %c1984] : memref<1x3136xf32, #tpu.memory_space<vmem>>, vector<1x64xf32>
    tpu.vector_store %arg13[%c0_194, %c1984], %257 {strides = array<i32>} : memref<1x3136xf32, #tpu.memory_space<vmem>>, vector<1x64xf32>,
    %259 = vector.extract_strided_slice %250 {offsets = [4, 0], sizes = [1, 64], strides = [1, 1]} : vector<7x64xf32> to vector<1x64xf32>
    %c0_195 = arith.constant 0 : index
    %c2048 = arith.constant 2048 : index
    %260 = vector.load %arg13[%c0_195, %c2048] : memref<1x3136xf32, #tpu.memory_space<vmem>>, vector<1x64xf32>
    tpu.vector_store %arg13[%c0_195, %c2048], %259 {strides = array<i32>} : memref<1x3136xf32, #tpu.memory_space<vmem>>, vector<1x64xf32>,
    %261 = vector.extract_strided_slice %250 {offsets = [5, 0], sizes = [1, 64], strides = [1, 1]} : vector<7x64xf32> to vector<1x64xf32>
    %c0_196 = arith.constant 0 : index
    %c2112 = arith.constant 2112 : index
    %262 = vector.load %arg13[%c0_196, %c2112] : memref<1x3136xf32, #tpu.memory_space<vmem>>, vector<1x64xf32>
    tpu.vector_store %arg13[%c0_196, %c2112], %261 {strides = array<i32>} : memref<1x3136xf32, #tpu.memory_space<vmem>>, vector<1x64xf32>,
    %263 = vector.extract_strided_slice %250 {offsets = [6, 0], sizes = [1, 64], strides = [1, 1]} : vector<7x64xf32> to vector<1x64xf32>
    %c0_197 = arith.constant 0 : index
    %c2176 = arith.constant 2176 : index
    %264 = vector.load %arg13[%c0_197, %c2176] : memref<1x3136xf32, #tpu.memory_space<vmem>>, vector<1x64xf32>
    tpu.vector_store %arg13[%c0_197, %c2176], %263 {strides = array<i32>} : memref<1x3136xf32, #tpu.memory_space<vmem>>, vector<1x64xf32>,
    %c160_198 = arith.constant 160 : index
    %c0_199 = arith.constant 0 : index
    %265 = tpu.strided_load %arg12[%c160_198, %c0_199] {strides = array<i32: 2, 1>} : memref<224x64xf32, #tpu.memory_space<vmem>>, vector<7x64xf32>
    %c161_200 = arith.constant 161 : index
    %c0_201 = arith.constant 0 : index
    %266 = tpu.strided_load %arg12[%c161_200, %c0_201] {strides = array<i32: 2, 1>} : memref<224x64xf32, #tpu.memory_space<vmem>>, vector<7x64xf32>
    %267 = arith.maximumf %265, %266 : vector<7x64xf32>
    %c176 = arith.constant 176 : index
    %c0_202 = arith.constant 0 : index
    %268 = tpu.strided_load %arg12[%c176, %c0_202] {strides = array<i32: 2, 1>} : memref<224x64xf32, #tpu.memory_space<vmem>>, vector<7x64xf32>
    %c177_203 = arith.constant 177 : index
    %c0_204 = arith.constant 0 : index
    %269 = tpu.strided_load %arg12[%c177_203, %c0_204] {strides = array<i32: 2, 1>} : memref<224x64xf32, #tpu.memory_space<vmem>>, vector<7x64xf32>
    %270 = arith.maximumf %268, %269 : vector<7x64xf32>
    %271 = arith.maximumf %267, %270 : vector<7x64xf32>
    %272 = vector.extract_strided_slice %271 {offsets = [0, 0], sizes = [1, 64], strides = [1, 1]} : vector<7x64xf32> to vector<1x64xf32>
    %c0_205 = arith.constant 0 : index
    %c2240 = arith.constant 2240 : index
    %273 = vector.load %arg13[%c0_205, %c2240] : memref<1x3136xf32, #tpu.memory_space<vmem>>, vector<1x64xf32>
    tpu.vector_store %arg13[%c0_205, %c2240], %272 {strides = array<i32>} : memref<1x3136xf32, #tpu.memory_space<vmem>>, vector<1x64xf32>,
    %274 = vector.extract_strided_slice %271 {offsets = [1, 0], sizes = [1, 64], strides = [1, 1]} : vector<7x64xf32> to vector<1x64xf32>
    %c0_206 = arith.constant 0 : index
    %c2304 = arith.constant 2304 : index
    %275 = vector.load %arg13[%c0_206, %c2304] : memref<1x3136xf32, #tpu.memory_space<vmem>>, vector<1x64xf32>
    tpu.vector_store %arg13[%c0_206, %c2304], %274 {strides = array<i32>} : memref<1x3136xf32, #tpu.memory_space<vmem>>, vector<1x64xf32>,
    %276 = vector.extract_strided_slice %271 {offsets = [2, 0], sizes = [1, 64], strides = [1, 1]} : vector<7x64xf32> to vector<1x64xf32>
    %c0_207 = arith.constant 0 : index
    %c2368 = arith.constant 2368 : index
    %277 = vector.load %arg13[%c0_207, %c2368] : memref<1x3136xf32, #tpu.memory_space<vmem>>, vector<1x64xf32>
    tpu.vector_store %arg13[%c0_207, %c2368], %276 {strides = array<i32>} : memref<1x3136xf32, #tpu.memory_space<vmem>>, vector<1x64xf32>,
    %278 = vector.extract_strided_slice %271 {offsets = [3, 0], sizes = [1, 64], strides = [1, 1]} : vector<7x64xf32> to vector<1x64xf32>
    %c0_208 = arith.constant 0 : index
    %c2432 = arith.constant 2432 : index
    %279 = vector.load %arg13[%c0_208, %c2432] : memref<1x3136xf32, #tpu.memory_space<vmem>>, vector<1x64xf32>
    tpu.vector_store %arg13[%c0_208, %c2432], %278 {strides = array<i32>} : memref<1x3136xf32, #tpu.memory_space<vmem>>, vector<1x64xf32>,
    %280 = vector.extract_strided_slice %271 {offsets = [4, 0], sizes = [1, 64], strides = [1, 1]} : vector<7x64xf32> to vector<1x64xf32>
    %c0_209 = arith.constant 0 : index
    %c2496 = arith.constant 2496 : index
    %281 = vector.load %arg13[%c0_209, %c2496] : memref<1x3136xf32, #tpu.memory_space<vmem>>, vector<1x64xf32>
    tpu.vector_store %arg13[%c0_209, %c2496], %280 {strides = array<i32>} : memref<1x3136xf32, #tpu.memory_space<vmem>>, vector<1x64xf32>,
    %282 = vector.extract_strided_slice %271 {offsets = [5, 0], sizes = [1, 64], strides = [1, 1]} : vector<7x64xf32> to vector<1x64xf32>
    %c0_210 = arith.constant 0 : index
    %c2560 = arith.constant 2560 : index
    %283 = vector.load %arg13[%c0_210, %c2560] : memref<1x3136xf32, #tpu.memory_space<vmem>>, vector<1x64xf32>
    tpu.vector_store %arg13[%c0_210, %c2560], %282 {strides = array<i32>} : memref<1x3136xf32, #tpu.memory_space<vmem>>, vector<1x64xf32>,
    %284 = vector.extract_strided_slice %271 {offsets = [6, 0], sizes = [1, 64], strides = [1, 1]} : vector<7x64xf32> to vector<1x64xf32>
    %c0_211 = arith.constant 0 : index
    %c2624 = arith.constant 2624 : index
    %285 = vector.load %arg13[%c0_211, %c2624] : memref<1x3136xf32, #tpu.memory_space<vmem>>, vector<1x64xf32>
    tpu.vector_store %arg13[%c0_211, %c2624], %284 {strides = array<i32>} : memref<1x3136xf32, #tpu.memory_space<vmem>>, vector<1x64xf32>,
    %c192_212 = arith.constant 192 : index
    %c0_213 = arith.constant 0 : index
    %286 = tpu.strided_load %arg12[%c192_212, %c0_213] {strides = array<i32: 2, 1>} : memref<224x64xf32, #tpu.memory_space<vmem>>, vector<7x64xf32>
    %c193_214 = arith.constant 193 : index
    %c0_215 = arith.constant 0 : index
    %287 = tpu.strided_load %arg12[%c193_214, %c0_215] {strides = array<i32: 2, 1>} : memref<224x64xf32, #tpu.memory_space<vmem>>, vector<7x64xf32>
    %288 = arith.maximumf %286, %287 : vector<7x64xf32>
    %c208 = arith.constant 208 : index
    %c0_216 = arith.constant 0 : index
    %289 = tpu.strided_load %arg12[%c208, %c0_216] {strides = array<i32: 2, 1>} : memref<224x64xf32, #tpu.memory_space<vmem>>, vector<7x64xf32>
    %c209_217 = arith.constant 209 : index
    %c0_218 = arith.constant 0 : index
    %290 = tpu.strided_load %arg12[%c209_217, %c0_218] {strides = array<i32: 2, 1>} : memref<224x64xf32, #tpu.memory_space<vmem>>, vector<7x64xf32>
    %291 = arith.maximumf %289, %290 : vector<7x64xf32>
    %292 = arith.maximumf %288, %291 : vector<7x64xf32>
    %293 = vector.extract_strided_slice %292 {offsets = [0, 0], sizes = [1, 64], strides = [1, 1]} : vector<7x64xf32> to vector<1x64xf32>
    %c0_219 = arith.constant 0 : index
    %c2688 = arith.constant 2688 : index
    %294 = vector.load %arg13[%c0_219, %c2688] : memref<1x3136xf32, #tpu.memory_space<vmem>>, vector<1x64xf32>
    tpu.vector_store %arg13[%c0_219, %c2688], %293 {strides = array<i32>} : memref<1x3136xf32, #tpu.memory_space<vmem>>, vector<1x64xf32>,
    %295 = vector.extract_strided_slice %292 {offsets = [1, 0], sizes = [1, 64], strides = [1, 1]} : vector<7x64xf32> to vector<1x64xf32>
    %c0_220 = arith.constant 0 : index
    %c2752 = arith.constant 2752 : index
    %296 = vector.load %arg13[%c0_220, %c2752] : memref<1x3136xf32, #tpu.memory_space<vmem>>, vector<1x64xf32>
    tpu.vector_store %arg13[%c0_220, %c2752], %295 {strides = array<i32>} : memref<1x3136xf32, #tpu.memory_space<vmem>>, vector<1x64xf32>,
    %297 = vector.extract_strided_slice %292 {offsets = [2, 0], sizes = [1, 64], strides = [1, 1]} : vector<7x64xf32> to vector<1x64xf32>
    %c0_221 = arith.constant 0 : index
    %c2816 = arith.constant 2816 : index
    %298 = vector.load %arg13[%c0_221, %c2816] : memref<1x3136xf32, #tpu.memory_space<vmem>>, vector<1x64xf32>
    tpu.vector_store %arg13[%c0_221, %c2816], %297 {strides = array<i32>} : memref<1x3136xf32, #tpu.memory_space<vmem>>, vector<1x64xf32>,
    %299 = vector.extract_strided_slice %292 {offsets = [3, 0], sizes = [1, 64], strides = [1, 1]} : vector<7x64xf32> to vector<1x64xf32>
    %c0_222 = arith.constant 0 : index
    %c2880 = arith.constant 2880 : index
    %300 = vector.load %arg13[%c0_222, %c2880] : memref<1x3136xf32, #tpu.memory_space<vmem>>, vector<1x64xf32>
    tpu.vector_store %arg13[%c0_222, %c2880], %299 {strides = array<i32>} : memref<1x3136xf32, #tpu.memory_space<vmem>>, vector<1x64xf32>,
    %301 = vector.extract_strided_slice %292 {offsets = [4, 0], sizes = [1, 64], strides = [1, 1]} : vector<7x64xf32> to vector<1x64xf32>
    %c0_223 = arith.constant 0 : index
    %c2944 = arith.constant 2944 : index
    %302 = vector.load %arg13[%c0_223, %c2944] : memref<1x3136xf32, #tpu.memory_space<vmem>>, vector<1x64xf32>
    tpu.vector_store %arg13[%c0_223, %c2944], %301 {strides = array<i32>} : memref<1x3136xf32, #tpu.memory_space<vmem>>, vector<1x64xf32>,
    %303 = vector.extract_strided_slice %292 {offsets = [5, 0], sizes = [1, 64], strides = [1, 1]} : vector<7x64xf32> to vector<1x64xf32>
    %c0_224 = arith.constant 0 : index
    %c3008 = arith.constant 3008 : index
    %304 = vector.load %arg13[%c0_224, %c3008] : memref<1x3136xf32, #tpu.memory_space<vmem>>, vector<1x64xf32>
    tpu.vector_store %arg13[%c0_224, %c3008], %303 {strides = array<i32>} : memref<1x3136xf32, #tpu.memory_space<vmem>>, vector<1x64xf32>,
    %305 = vector.extract_strided_slice %292 {offsets = [6, 0], sizes = [1, 64], strides = [1, 1]} : vector<7x64xf32> to vector<1x64xf32>
    %c0_225 = arith.constant 0 : index
    %c3072 = arith.constant 3072 : index
    %306 = vector.load %arg13[%c0_225, %c3072] : memref<1x3136xf32, #tpu.memory_space<vmem>>, vector<1x64xf32>
    tpu.vector_store %arg13[%c0_225, %c3072], %305 {strides = array<i32>} : memref<1x3136xf32, #tpu.memory_space<vmem>>, vector<1x64xf32>,
    %c0_226 = arith.constant 0 : index
    %c0_227 = arith.constant 0 : index
    %307 = vector.load %arg13[%c0_226, %c0_227] : memref<1x3136xf32, #tpu.memory_space<vmem>>, vector<1x3136xf32>
    %308 = arith.truncf %307 : vector<1x3136xf32> to vector<1x3136xbf16>
    %c0_228 = arith.constant 0 : index
    %c0_229 = arith.constant 0 : index
    %309 = vector.load %arg6[%c0_228, %c0_229] : memref<3136x128xbf16, #tpu.memory_space<vmem>>, vector<3136x128xbf16>
    %cst_230 = arith.constant dense<0.000000e+00> : vector<1x128xf32>
    %310 = tpu.matmul %308, %309, %cst_230 {dimension_numbers = #tpu.dot_dimension_numbers<[1], [0], [0], [1], [0, 0, 1, 1], [], []>} : vector<1x3136xbf16>, vector<3136x128xbf16>, vector<1x128xf32> -> vector<1x128xf32>
    %c0_231 = arith.constant 0 : index
    %c0_232 = arith.constant 0 : index
    %311 = vector.load %arg7[%c0_231, %c0_232] : memref<1x128xf32, #tpu.memory_space<vmem>>, vector<1x128xf32>
    %312 = arith.addf %310, %311 : vector<1x128xf32>
    %c0_233 = arith.constant 0 : index
    %c0_234 = arith.constant 0 : index
    %c0_235 = arith.constant 0 : index
    %313 = vector.load %arg8[%c0_233, %c0_234, %c0_235] : memref<1x1x128xf32, #tpu.memory_space<vmem>>, vector<1x1x128xf32>
    %314 = vector.shape_cast %313 : vector<1x1x128xf32> to vector<1x128xf32>
    %315 = vector.shape_cast %312 : vector<1x128xf32> to vector<1x1x128xf32>
    tpu.vector_store %arg8[%c0_233, %c0_234, %c0_235], %315 {strides = array<i32>} : memref<1x1x128xf32, #tpu.memory_space<vmem>>, vector<1x1x128xf32>,
    return
  }
  func.func @transform_0(%arg0: i32) -> (i32, i32, i32) {
    %c0_i32 = arith.constant 0 : i32
    %c0_i32_0 = arith.constant 0 : i32
    %c0_i32_1 = arith.constant 0 : i32
    return %arg0, %c0_i32, %c0_i32_0 : i32, i32, i32
  }
  func.func @transform_1(%arg0: i32) -> (i32, i32) {
    %c0_i32 = arith.constant 0 : i32
    %c0_i32_0 = arith.constant 0 : i32
    %c0_i32_1 = arith.constant 0 : i32
    return %c0_i32, %c0_i32_0 : i32, i32
  }
  func.func @transform_2(%arg0: i32) -> (i32, i32) {
    %c0_i32 = arith.constant 0 : i32
    %c0_i32_0 = arith.constant 0 : i32
    %c0_i32_1 = arith.constant 0 : i32
    return %c0_i32, %c0_i32_0 : i32, i32
  }
  func.func @transform_3(%arg0: i32) -> (i32, i32) {
    %c0_i32 = arith.constant 0 : i32
    %c0_i32_0 = arith.constant 0 : i32
    %c0_i32_1 = arith.constant 0 : i32
    return %c0_i32, %c0_i32_0 : i32, i32
  }
  func.func @transform_4(%arg0: i32) -> (i32, i32) {
    %c0_i32 = arith.constant 0 : i32
    %c0_i32_0 = arith.constant 0 : i32
    %c0_i32_1 = arith.constant 0 : i32
    return %c0_i32, %c0_i32_0 : i32, i32
  }
  func.func @transform_5(%arg0: i32) -> (i32, i32) {
    %c0_i32 = arith.constant 0 : i32
    %c0_i32_0 = arith.constant 0 : i32
    %c0_i32_1 = arith.constant 0 : i32
    return %c0_i32, %c0_i32_0 : i32, i32
  }
  func.func @transform_6(%arg0: i32) -> (i32, i32) {
    %c0_i32 = arith.constant 0 : i32
    %c0_i32_0 = arith.constant 0 : i32
    %c0_i32_1 = arith.constant 0 : i32
    return %c0_i32, %c0_i32_0 : i32, i32
  }
  func.func @transform_7(%arg0: i32) -> (i32, i32, i32) {
    %c0_i32 = arith.constant 0 : i32
    %c0_i32_0 = arith.constant 0 : i32
    %c0_i32_1 = arith.constant 0 : i32
    return %arg0, %c0_i32, %c0_i32_0 : i32, i32, i32
  }
}

</mosaic_0001>

<bundles_post_ra>
// kernel: equation_model_forward.1
= control target key start
LH: loop header
LB: loop body
LE: loop exit
PB: predicated region body
PF: predicated region fallthrough
CT: control target
= control target key end

     0   :  { %12 = vsyncpa [#allocation8], 0  ;;  %s7934_s24 = smov 0   ;;  %s9322_s0 = inlined_call_operand.vmem [shape: bf16[2,784,9], index: 0, kind: input, shape index: {}]   ;;  %s9323_s1 = inlined_call_operand.vmem [shape: bf16[9,32], index: 1, kind: input, shape index: {}]   ;;  %s9324_s2 = inlined_call_operand.vmem [shape: f32[1,32], index: 2, kind: input, shape index: {}]   ;;  %s9325_s3 = inlined_call_operand.vmem [shape: bf16[288,64], index: 3, kind: input, shape index: {}]   ;;  %s9326_s4 = inlined_call_operand.vmem [shape: f32[1,64], index: 4, kind: input, shape index: {}]   ;;  %s9327_s5 = inlined_call_operand.hbm [shape: bf16[3136,128], index: 5, kind: input, shape index: {}]   ;;  %s9328_s6 = inlined_call_operand.vmem [shape: f32[1,128], index: 6, kind: input, shape index: {}]   ;;  %s9329_s7 = inlined_call_operand.vmem [shape: f32[2,1,128], index: 7, kind: output, shape index: {}]  }
   0x1 LB: > { %s224_s27 = sshll.u32 %s9327_s5, 4  ;;  %s6203_s28 = sadd.s32 4294967295, %s7884_s24   ;;  %s7884_s24 = sphi %s7934_s24, %s18_s24   ;;  %s225_s27 = int_to_ptr.hbm [resolvable:$true] %s224_s27 }
   0x2   : > { %p6205_p0 = scmp.ge.s32.totalorder %s7884_s24, 1  ;;  %p201_p1 = scmp.lt.s32.totalorder %s7884_s24, 3 }
   0x3   : > { %p7819_p2 = scmp.eq.s32.totalorder %s6203_s28, 0  ;;  %s7886_s29 = smov [#allocation7]  }
   0x4   : > { %p202_p3 = pnand %p6205_p0, %p201_p1  ;;  %s226_s30 = sshll.u32 %s7886_s29, 4  ;;  %s227_s30 = int_to_ptr.vmem [resolvable:$true] %s226_s30 }
   0x5   : > { %s7887_s8 = smov 64   ;;  %s7888_s9 = smov 4  }
   0x6   : > { %p7815_p4 = pneg %p202_p3  ;;  %253 = sbr.rel (%p202_p3) target bundleno = 1468 (0x5bc), region = 48 }
   0x8   : > { %p7816_p5 = pnand %p7819_p2, %p7815_p4 }
   0xa   : > { %7818 = dma.hbm_to_vmem [thread:$0]  (!%p7816_p5), %s225_s27, 25088, %s227_s30, [#allocation8], %s7887_s8, %s7887_s8, %s7888_s9  }
   0xb   : > { %7879 = dma.done.wait (%p7819_p2), [#allocation8], 25088  }
   0xc   : > { %7881 = vsyncadd (%p7819_p2), [#allocation8], 4294942208  ;;  %vm1154_vm0 = vcmask 261120   ;;  %vm795_vm1 = vcmask 1043456   ;;  %p284_p6 = scmp.lt.s32.totalorder %s6203_s28, 1  ;;  %v7889_v0 = vmov 0.0  }
   0xd   : > { %1253 = vst.msk [vmem:[#allocation3] sm:$0xff] %vm1154_vm0, %v7889_v0  ;;  %vm796_vm2 = vcmask 1044480   ;;  %v7890_v1 = vmov 65535   ;;  %v6409_v3 = vld [vmem:[%s9323_s1] sm:$0xf]  ;;  %vm647_vm3 = vcmask 72704  }
   0xe   : > { %1254 = vst.msk [vmem:[#allocation3 + $0x8] sm:$0xff] %vm1154_vm0, %v7889_v0  ;;  %s9335_s28 = smov (!%p284_p6, %s6203_s28), 1  ;;  %v797_v2 = vsel %vm795_vm1, 4294967295, %v7890_v1  ;;  %v7550_v4 = vld [vmem:[%s9323_s1] sm:$0x10]  ;;  %s7891_s20 = smov 32  }
   0xf   : > { %1255 = vst.msk [vmem:[#allocation3 + $0x10] sm:$0xff] %vm1154_vm0, %v7889_v0  ;;  %s7810_s10 = smul.u32 392, %s9335_s28  ;;  %v798_v5 = vsel %vm796_vm2, %v797_v2, 0  ;;  %v6410_v6 = vor.u32 %v7550_v4, %v6409_v3  ;;  %v8023_v22 = vld [vmem:[%s9324_s2] ss:$0 sm:$0xff]  ;;  %s7892_s21 = smov 64  }
  0x10   : > { %1256 = vst.msk [vmem:[#allocation3 + $0x18] sm:$0xff] %vm1154_vm0, %v7889_v0  ;;  %vm1309_vm4 = vcmask 259072   ;;  %s7893_s22 = smov 96   ;;  %vm1679_vm5 = vcmask 257024   ;;  %vm1876_vm6 = vcmask 519424   ;;  %vm2073_vm7 = vcmask 781824   ;;  %s291_s14 = scalar_lea.vmem %s9329_s7, %s9335_s28 }
  0x11   : > { %1257 = vst.msk [vmem:[#allocation3 + $0x20] sm:$0xff] %vm1154_vm0, %v7889_v0  ;;  %s7964_s17 = scalar_lea.vmem %s9322_s0, %s7810_s10  ;;  %v800_v7 = vand.u32 %v6410_v6, %v798_v5  ;;  %vm2270_vm8 = vcmask 1044224   ;;  %vm3776_vm9 = vcmask 523264  }
  0x12   : > { %1258 = vst.msk [vmem:[#allocation3 + $0x28] sm:$0xff] %vm1154_vm0, %v7889_v0  ;;  %v7501_v8 = vld [vmem:[%s7964_s17] sm:$0xff]  ;;  %v7539_v10 = vld [vmem:[%s7964_s17 + $0x130] sm:$0xff]  ;;  %v7502_v11 = vld [vmem:[%s7964_s17 + $0x8] sm:$0xff] }
  0x13   : > { %1259 = vst.msk [vmem:[#allocation3 + $0x30] sm:$0xff] %vm1154_vm0, %v7889_v0  ;;  %v7537_v9 = vld [vmem:[%s7964_s17 + $0x120] sm:$0xff]  ;;  %809 = vmatpush.bf16.msra.mxu0 %v800_v7  ;;  %7807 = vmatpush.bf16.msra.mxu1 %v800_v7  ;;  %v7538_v12 = vld [vmem:[%s7964_s17 + $0x128] sm:$0xff]  ;;  %v7540_v13 = vld [vmem:[%s7964_s17 + $0x138] sm:$0xff] }
  0x14   : > { %1260 = vst.msk [vmem:[#allocation3 + $0x38] sm:$0xff] %vm1154_vm0, %v7889_v0  ;;  %7808 = vmatpush.bf16.msra.mxu2 %v800_v7  ;;  %7809 = vmatpush.bf16.msra.mxu3 %v800_v7  ;;  %v7503_v14 = vld [vmem:[%s7964_s17 + $0x10] sm:$0xff]  ;;  %v7541_v15 = vld [vmem:[%s7964_s17 + $0x140] sm:$0xff]  ;;  %v7504_v16 = vld [vmem:[%s7964_s17 + $0x18] sm:$0xff] }
  0x15   : > { %1261 = vst.msk [vmem:[#allocation3 + $0x40] sm:$0xff] %vm1154_vm0, %v7889_v0  ;;  %v7542_v17 = vld [vmem:[%s7964_s17 + $0x148] sm:$0xff]  ;;  %v7505_v18 = vld [vmem:[%s7964_s17 + $0x20] sm:$0xff]  ;;  %v7507_v20 = vld [vmem:[%s7964_s17 + $0x30] sm:$0xff] }
  0x16   : > { %1262 = vst.msk [vmem:[#allocation3 + $0x48] sm:$0xff] %vm1154_vm0, %v7889_v0  ;;  %6411 = vmatmul.msk.bf16.vlgmr.msra.gmra.mxu0 %vm647_vm3, %v7501_v8  ;;  %6447 = vmatmul.msk.bf16.vlgmr.msra.gmra.mxu1 %vm647_vm3, %v7537_v9  ;;  %v7506_v19 = vld [vmem:[%s7964_s17 + $0x28] sm:$0xff]  ;;  %v7508_v21 = vld [vmem:[%s7964_s17 + $0x38] sm:$0xff]  ;;  %v7509_v23 = vld [vmem:[%s7964_s17 + $0x40] sm:$0xff] }
  0x17   : > { %1263 = vst.msk [vmem:[#allocation3 + $0x50] sm:$0xff] %vm1154_vm0, %v7889_v0  ;;  %6449 = vmatmul.msk.bf16.vlgmr.msra.gmra.mxu2 %vm647_vm3, %v7539_v10  ;;  %v7510_v39 = vld [vmem:[%s7964_s17 + $0x48] sm:$0xff]  ;;  %v1905_v53 = vld [vmem:[#allocation3 + $0x2] sm:$0xff]  ;;  %v7543_v9 = vld [vmem:[%s7964_s17 + $0x150] sm:$0xff] }
  0x18   : > { %1264 = vst.msk [vmem:[#allocation3 + $0x58] sm:$0xff] %vm1154_vm0, %v7889_v0  ;;  %v1709_v52 = vld [vmem:[#allocation3 + $0x9] sm:$0xff]  ;;  %v1708_v54 = vld [vmem:[#allocation3 + $0x1] sm:$0xff]  ;;  %v1933_v59 = vpack.c.bf16 %v1905_v53, %v1905_v53 }
  0x19   : > { %1265 = vst.msk [vmem:[#allocation3 + $0x60] sm:$0xff] %vm1154_vm0, %v7889_v0  ;;  %v1737_v58 = vpack.c.bf16 %v1709_v52, %v1709_v52  ;;  %v1736_v60 = vpack.c.bf16 %v1708_v54, %v1708_v54  ;;  %v7513_v53 = vld [vmem:[%s7964_s17 + $0x60] sm:$0xff] }
  0x1a   : > { %1266 = vst.msk [vmem:[#allocation3 + $0x68] sm:$0xff] %vm1154_vm0, %v7889_v0  ;;  %1989 = vrot.lane.b32.xlu2 %v1933_v59, %s7892_s21 }
  0x1b   : > { %1267 = vst.msk [vmem:[#allocation3 + $0x70] sm:$0xff] %vm1154_vm0, %v7889_v0  ;;  %1794 = vrot.lane.b32.xlu1 %v1737_v58, %s7891_s20  ;;  %1792 = vrot.lane.b32.xlu0 %v1736_v60, %s7891_s20 }
  0x1c   : > { %1268 = vst.msk [vmem:[#allocation3 + $0x78] sm:$0xff] %vm1154_vm0, %v7889_v0 }
  0x1d   : > { %1269 = vst.msk [vmem:[#allocation3 + $0x80] sm:$0xff] %vm1154_vm0, %v7889_v0 }
  0x1e   : > { %1270 = vst.msk [vmem:[#allocation3 + $0x88] sm:$0xff] %vm1154_vm0, %v7889_v0 }
  0x1f   : > { %1271 = vst.msk [vmem:[#allocation3 + $0x90] sm:$0xff] %vm1154_vm0, %v7889_v0 }
  0x20   : > { %1272 = vst.msk [vmem:[#allocation3 + $0x98] sm:$0xff] %vm1154_vm0, %v7889_v0 }
  0x21   : > { %1273 = vst.msk [vmem:[#allocation3 + $0xa0] sm:$0xff] %vm1154_vm0, %v7889_v0 }
  0x22   : > { %1274 = vst.msk [vmem:[#allocation3 + $0xa8] sm:$0xff] %vm1154_vm0, %v7889_v0 }
  0x23   : > { %1275 = vst.msk [vmem:[#allocation3 + $0xb0] sm:$0xff] %vm1154_vm0, %v7889_v0 }
  0x24   : > { %1276 = vst.msk [vmem:[#allocation3 + $0xb8] sm:$0xff] %vm1154_vm0, %v7889_v0 }
  0x25   : > { %1277 = vst.msk [vmem:[#allocation3 + $0xc0] sm:$0xff] %vm1154_vm0, %v7889_v0 }
  0x26   : > { %1278 = vst.msk [vmem:[#allocation3 + $0xc8] sm:$0xff] %vm1154_vm0, %v7889_v0  ;;  %6412 = vmatmul.msk.bf16.gmra.mxu0 %vm647_vm3, %v7502_v11  ;;  %6448 = vmatmul.msk.bf16.gmra.mxu1 %vm647_vm3, %v7538_v12 }
  0x27   : > { %1279 = vst.msk [vmem:[#allocation3 + $0xd0] sm:$0xff] %vm1154_vm0, %v7889_v0  ;;  %6450 = vmatmul.msk.bf16.gmra.mxu2 %vm647_vm3, %v7540_v13 }
  0x28   : > { %1280 = vst.msk [vmem:[#allocation3 + $0xd8] sm:$0xff] %vm1154_vm0, %v7889_v0 }
  0x29   : > { %1281 = vst.msk [vmem:[#allocation3 + $0xe0] sm:$0xff] %vm1154_vm0, %v7889_v0 }
  0x2a   : > { %1282 = vst.msk [vmem:[#allocation3 + $0xe8] sm:$0xff] %vm1154_vm0, %v7889_v0 }
  0x2b   : > { %1283 = vst.msk [vmem:[#allocation3 + $0xf0] sm:$0xff] %vm1154_vm0, %v7889_v0 }
  0x2c   : > { %1284 = vst.msk [vmem:[#allocation3 + $0xf8] sm:$0xff] %vm1154_vm0, %v7889_v0 }
  0x2d   : > { %1285 = vst.msk [vmem:[#allocation3 + $0x100] sm:$0xff] %vm1154_vm0, %v7889_v0  ;;  %v7511_v0 = vld [vmem:[%s7964_s17 + $0x50] sm:$0xff] }
  0x36   : > { %6413 = vmatmul.msk.bf16.gmra.mxu0 %vm647_vm3, %v7503_v14 }
  0x37   : > { %6451 = vmatmul.msk.bf16.gmra.mxu2 %vm647_vm3, %v7541_v15 }
  0x46   : > { %6414 = vmatmul.msk.bf16.gmra.mxu0 %vm647_vm3, %v7504_v16 }
  0x47   : > { %6452 = vmatmul.msk.bf16.gmra.mxu2 %vm647_vm3, %v7542_v17 }
  0x56   : > { %6415 = vmatmul.msk.bf16.gmra.mxu0 %vm647_vm3, %v7505_v18 }
  0x57   : > { %6453 = vmatmul.msk.bf16.gmra.mxu2 %vm647_vm3, %v7543_v9 }
  0x66   : > { %6416 = vmatmul.msk.bf16.gmra.mxu0 %vm647_vm3, %v7506_v19 }
  0x76   : > { %6417 = vmatmul.msk.bf16.gmra.mxu0 %vm647_vm3, %v7507_v20 }
  0x86   : > { %6418 = vmatmul.msk.bf16.gmra.mxu0 %vm647_vm3, %v7508_v21  ;;  %v7512_v21 = vld [vmem:[%s7964_s17 + $0x58] sm:$0xff] }
  0x93   : > { %v811_v24 = vpop.f32.mrf.mxu0  ;;  %v991_v25 = vpop.f32.mrf.mxu1 }
  0x94   : > { %v812_v26 = vadd.f32 %v8023_v22, %v811_v24  ;;  %v992_v27 = vadd.f32 %v8023_v22, %v991_v25 }
  0x96   : > { %v1056_v28 = vmax.f32 %v812_v26, 0.0  ;;  %6419 = vmatmul.msk.bf16.gmra.mxu0 %vm647_vm3, %v7509_v23  ;;  %v1128_v29 = vmax.f32 %v992_v27, 0.0 }
  0x98   : > { %1155 = vst.msk [vmem:[#allocation2] sm:$0xff] %vm1154_vm0, %v1056_v28 }
  0x99   : > { %1227 = vst.msk [vmem:[#allocation2 + $0x240] sm:$0xff] %vm1154_vm0, %v1128_v29 }
  0x9a   : > { %v1001_v30 = vpop.f32.mrf.mxu2 }
  0x9b   : > { %v813_v31 = vpop.f32.mrf.mxu0  ;;  %v993_v32 = vpop.f32.mrf.mxu1  ;;  %v1002_v33 = vadd.f32 %v8023_v22, %v1001_v30 }
  0x9c   : > { %v814_v34 = vadd.f32 %v8023_v22, %v813_v31  ;;  %v994_v35 = vadd.f32 %v8023_v22, %v993_v32 }
  0x9d   : > { %v1132_v36 = vmax.f32 %v1002_v33, 0.0  ;;  %v7544_v33 = vld [vmem:[%s7964_s17 + $0x158] sm:$0xff] }
  0x9e   : > { %v1057_v37 = vmax.f32 %v814_v34, 0.0  ;;  %v1129_v38 = vmax.f32 %v994_v35, 0.0  ;;  %v7545_v34 = vld [vmem:[%s7964_s17 + $0x160] sm:$0xff]  ;;  %6454 = vmatmul.msk.bf16.gmra.mxu2 %vm647_vm3, %v7544_v33 }
  0x9f   : > { %1231 = vst.msk [vmem:[#allocation2 + $0x260] sm:$0xff] %vm1154_vm0, %v1132_v36  ;;  %6455 = vmatmul.msk.bf16.vlgmr.msra.gmra.mxu3 %vm647_vm3, %v7545_v34 }
  0xa0   : > { %1156 = vst.msk [vmem:[#allocation2 + $0x8] sm:$0xff] %vm1154_vm0, %v1057_v37 }
  0xa1   : > { %1228 = vst.msk [vmem:[#allocation2 + $0x248] sm:$0xff] %vm1154_vm0, %v1129_v38 }
  0xa2   : > { %v1003_v40 = vpop.f32.mrf.mxu2 }
  0xa3   : > { %v816_v41 = vpop.f32.mrf.mxu0  ;;  %v996_v42 = vpop.f32.mrf.mxu1  ;;  %v1004_v43 = vadd.f32 %v8023_v22, %v1003_v40 }
  0xa4   : > { %v817_v44 = vadd.f32 %v8023_v22, %v816_v41  ;;  %v997_v45 = vadd.f32 %v8023_v22, %v996_v42 }
  0xa5   : > { %v1133_v46 = vmax.f32 %v1004_v43, 0.0 }
  0xa6   : > { %v1058_v47 = vmax.f32 %v817_v44, 0.0  ;;  %6420 = vmatmul.msk.bf16.gmra.mxu0 %vm647_vm3, %v7510_v39  ;;  %v1130_v48 = vmax.f32 %v997_v45, 0.0 }
  0xa7   : > { %1232 = vst.msk [vmem:[#allocation2 + $0x268] sm:$0xff] %vm1154_vm0, %v1133_v46  ;;  %v1287_v27 = vld [vmem:[#allocation2] ss:$2 sm:$0xff]  ;;  %v1291_v28 = vld [vmem:[#allocation2 + $0x1] ss:$2 sm:$0xff] }
  0xa8   : > { %1157 = vst.msk [vmem:[#allocation2 + $0x10] sm:$0xff] %vm1154_vm0, %v1058_v47  ;;  %v1530_v4 = vld [vmem:[#allocation2 + $0x240] ss:$2 sm:$0x3f]  ;;  %v1294_v37 = vmax.f32 %v1287_v27, %v1291_v28 }
  0xa9   : > { %1229 = vst.msk [vmem:[#allocation2 + $0x250] sm:$0xff] %vm1154_vm0, %v1130_v48  ;;  %v1534_v6 = vld [vmem:[#allocation2 + $0x241] ss:$2 sm:$0x3f] }
  0xaa   : > { %v1006_v49 = vpop.f32.mrf.mxu2  ;;  %v1536_v10 = vmax.f32 %v1530_v4, %v1534_v6 }
  0xab   : > { %v818_v50 = vpop.f32.mrf.mxu0  ;;  %v998_v51 = vpop.f32.mrf.mxu1  ;;  %v1007_v57 = vadd.f32 %v8023_v22, %v1006_v49 }
  0xac   : > { %v819_v55 = vadd.f32 %v8023_v22, %v818_v50  ;;  %v999_v56 = vadd.f32 %v8023_v22, %v998_v51 }
  0xad   : > { %v1134_v63 = vmax.f32 %v1007_v57, 0.0 }
  0xae   : > { %v1059_v61 = vmax.f32 %v819_v55, 0.0  ;;  %v1131_v62 = vmax.f32 %v999_v56, 0.0 }
  0xaf   : > { %1233 = vst.msk [vmem:[#allocation2 + $0x270] sm:$0xff] %vm1154_vm0, %v1134_v63 }
  0xb0   : > { %1158 = vst.msk [vmem:[#allocation2 + $0x18] sm:$0xff] %vm1154_vm0, %v1059_v61 }
  0xb1   : > { %1230 = vst.msk [vmem:[#allocation2 + $0x258] sm:$0xff] %vm1154_vm0, %v1131_v62 }
  0xb2   : > { %v1008_v1 = vpop.f32.mrf.mxu2 }
  0xb3   : > { %v821_v2 = vpop.f32.mrf.mxu0  ;;  %v1009_v3 = vadd.f32 %v8023_v22, %v1008_v1 }
  0xb4   : > { %v822_v5 = vadd.f32 %v8023_v22, %v821_v2 }
  0xb5   : > { %v1135_v7 = vmax.f32 %v1009_v3, 0.0 }
  0xb6   : > { %v1060_v8 = vmax.f32 %v822_v5, 0.0  ;;  %6421 = vmatmul.msk.bf16.gmra.mxu0 %vm647_vm3, %v7511_v0  ;;  %v1552_v60 = vld [vmem:[#allocation2 + $0x268] ss:$2 sm:$0xff]  ;;  %v1556_v61 = vld [vmem:[#allocation2 + $0x269] ss:$2 sm:$0xff] }
  0xb7   : > { %1234 = vst.msk [vmem:[#allocation2 + $0x278] sm:$0xff] %vm1154_vm0, %v1135_v7  ;;  %v1289_v43 = vld [vmem:[#allocation2 + $0x10] ss:$2 sm:$0x3f]  ;;  %v1559_v4 = vmax.f32 %v1552_v60, %v1556_v61 }
  0xb8   : > { %1159 = vst.msk [vmem:[#allocation2 + $0x20] sm:$0xff] %vm1154_vm0, %v1060_v8  ;;  %v1540_v11 = vld [vmem:[#allocation2 + $0x25c] ss:$2 sm:$0x3f]  ;;  %v7516_v61 = vld [vmem:[%s7964_s17 + $0x78] sm:$0xff] }
  0xb9   : > { %v1544_v12 = vld [vmem:[#allocation2 + $0x25d] ss:$2 sm:$0x3f]  ;;  %v1293_v45 = vld [vmem:[#allocation2 + $0x11] ss:$2 sm:$0x3f] }
  0xba   : > { %v1546_v13 = vmax.f32 %v1540_v11, %v1544_v12  ;;  %v1011_v14 = vpop.f32.mrf.mxu2  ;;  %v1295_v50 = vmax.f32 %v1289_v43, %v1293_v45  ;;  %v7546_v43 = vld [vmem:[%s7964_s17 + $0x168] sm:$0xff] }
  0xbb   : > { %v823_v15 = vpop.f32.mrf.mxu0  ;;  %v1012_v16 = vadd.f32 %v8023_v22, %v1011_v14  ;;  %6456 = vmatmul.msk.bf16.gmra.mxu3 %vm647_vm3, %v7546_v43  ;;  %v1623_v43 = vld [vmem:[#allocation3] sm:$0xff] }
  0xbc   : > { %v824_v17 = vadd.f32 %v8023_v22, %v823_v15  ;;  %v1548_v18 = vmax.f32 %v1536_v10, %v1546_v13 }
  0xbd   : > { %v1136_v19 = vmax.f32 %v1012_v16, 0.0 }
  0xbe   : > { %v1061_v20 = vmax.f32 %v824_v17, 0.0  ;;  %1550 = vst.msk [vmem:[#allocation3 + $0xb9] sm:$0x3f] %vm1309_vm4, %v1548_v18 }
  0xbf   : > { %1235 = vst.msk [vmem:[#allocation2 + $0x280] sm:$0xff] %vm1154_vm0, %v1136_v19 }
  0xc0   : > { %1160 = vst.msk [vmem:[#allocation2 + $0x28] sm:$0xff] %vm1154_vm0, %v1061_v20 }
  0xc2   : > { %v1013_v23 = vpop.f32.mrf.mxu2 }
  0xc3   : > { %v826_v24 = vpop.f32.mrf.mxu0  ;;  %v1014_v25 = vadd.f32 %v8023_v22, %v1013_v23 }
  0xc4   : > { %v827_v26 = vadd.f32 %v8023_v22, %v826_v24  ;;  %v7514_v24 = vld [vmem:[%s7964_s17 + $0x68] sm:$0xff] }
  0xc5   : > { %v1137_v29 = vmax.f32 %v1014_v25, 0.0  ;;  %v2794_v30 = vld [vmem:[#allocation3 + $0xb9] sm:$0xff] }
  0xc6   : > { %v1062_v31 = vmax.f32 %v827_v26, 0.0  ;;  %6422 = vmatmul.msk.bf16.gmra.mxu0 %vm647_vm3, %v7512_v21  ;;  %v2822_v32 = vpack.c.bf16 %v2794_v30, %v2794_v30  ;;  %v1554_v12 = vld [vmem:[#allocation2 + $0x278] ss:$2 sm:$0x3f] }
  0xc7   : > { %v1297_v35 = vld [vmem:[#allocation2 + $0x1c] ss:$2 sm:$0xff]  ;;  %v1301_v36 = vld [vmem:[#allocation2 + $0x1d] ss:$2 sm:$0xff]  ;;  %1236 = vst.msk [vmem:[#allocation2 + $0x288] sm:$0xff] %vm1154_vm0, %v1137_v29 }
  0xc8   : > { %v1304_v38 = vmax.f32 %v1297_v35, %v1301_v36  ;;  %1161 = vst.msk [vmem:[#allocation2 + $0x30] sm:$0xff] %vm1154_vm0, %v1062_v31  ;;  %2897 = vrot.lane.b32.xlu2 %v2822_v32, %s7893_s22  ;;  %v1558_v13 = vld [vmem:[#allocation2 + $0x279] ss:$2 sm:$0x3f] }
  0xc9   : > { %2376 = vst.msk [vmem:[#allocation4 + $0x100] sm:$0xf] %vm1679_vm5, %v2822_v32  ;;  %v1560_v19 = vmax.f32 %v1554_v12, %v1558_v13 }
  0xca   : > { %v1306_v39 = vmax.f32 %v1294_v37, %v1304_v38  ;;  %v1016_v40 = vpop.f32.mrf.mxu2 }
  0xcb   : > { %v828_v41 = vpop.f32.mrf.mxu0  ;;  %v1017_v42 = vadd.f32 %v8023_v22, %v1016_v40 }
  0xcc   : > { %1308 = vst.msk [vmem:[#allocation3 + $0x11] sm:$0xff] %vm1154_vm0, %v1306_v39  ;;  %v829_v44 = vadd.f32 %v8023_v22, %v828_v41 }
  0xcd   : > { %v1138_v46 = vmax.f32 %v1017_v42, 0.0 }
  0xce   : > { %v1063_v47 = vmax.f32 %v829_v44, 0.0  ;;  %v7515_v44 = vld [vmem:[%s7964_s17 + $0x70] sm:$0xff] }
  0xcf   : > { %v1299_v48 = vld [vmem:[#allocation2 + $0x2c] ss:$2 sm:$0x3f]  ;;  %v1303_v49 = vld [vmem:[#allocation2 + $0x2d] ss:$2 sm:$0x3f] }
  0xd0   : > { %v1305_v51 = vmax.f32 %v1299_v48, %v1303_v49  ;;  %1162 = vst.msk [vmem:[#allocation2 + $0x38] sm:$0xff] %vm1154_vm0, %v1063_v47 }
  0xd1   : > { %1237 = vst.msk [vmem:[#allocation2 + $0x290] sm:$0xff] %vm1154_vm0, %v1138_v46 }
  0xd2   : > { %v1307_v52 = vmax.f32 %v1295_v50, %v1305_v51  ;;  %v1018_v54 = vpop.f32.mrf.mxu2 }
  0xd3   : > { %v831_v55 = vpop.f32.mrf.mxu0  ;;  %v2102_v56 = vld [vmem:[#allocation3 + $0x10] sm:$0xff]  ;;  %v1019_v59 = vadd.f32 %v8023_v22, %v1018_v54 }
  0xd4   : > { %v1906_v57 = vld [vmem:[#allocation3 + $0xa] sm:$0xff]  ;;  %v832_v62 = vadd.f32 %v8023_v22, %v831_v55  ;;  %1310 = vst.msk [vmem:[#allocation3 + $0x19] sm:$0x3f] %vm1309_vm4, %v1307_v52  ;;  %v2130_v63 = vpack.c.bf16 %v2102_v56, %v2102_v56 }
  0xd5   : > { %v1710_v58 = vld [vmem:[#allocation3 + $0x11] sm:$0xff]  ;;  %v1934_v0 = vpack.c.bf16 %v1906_v57, %v1906_v57  ;;  %v1139_v2 = vmax.f32 %v1019_v59, 0.0 }
  0xd6   : > { %v1738_v1 = vpack.c.bf16 %v1710_v58, %v1710_v58  ;;  %v1064_v3 = vmax.f32 %v832_v62, 0.0  ;;  %6423 = vmatmul.msk.bf16.gmra.mxu0 %vm647_vm3, %v7513_v53  ;;  %2186 = vrot.lane.b32.xlu1 %v2130_v63, %s7893_s22  ;;  %1682 = vst.msk [vmem:[#allocation4 + $0x18] sm:$0xf] %vm1679_vm5, %v2130_v63  ;;  %v7547_v57 = vld [vmem:[%s7964_s17 + $0x170] sm:$0xff] }
  0xd7   : > { %1991 = vrot.lane.b32.xlu0 %v1934_v0, %s7892_s21  ;;  %1238 = vst.msk [vmem:[#allocation2 + $0x298] sm:$0xff] %vm1154_vm0, %v1139_v2  ;;  %6457 = vmatmul.msk.bf16.gmra.mxu3 %vm647_vm3, %v7547_v57 }
  0xd8   : > { %1163 = vst.msk [vmem:[#allocation2 + $0x40] sm:$0xff] %vm1154_vm0, %v1064_v3  ;;  %v1562_v5 = vld [vmem:[#allocation2 + $0x284] ss:$2 sm:$0xff]  ;;  %v1566_v6 = vld [vmem:[#allocation2 + $0x285] ss:$2 sm:$0xff] }
  0xd9   : > { %v1569_v7 = vmax.f32 %v1562_v5, %v1566_v6  ;;  %2355 = vst.msk [vmem:[#allocation4 + $0x4] sm:$0xf] %vm1679_vm5, %v1738_v1 }
  0xdb   : > { %v833_v8 = vpop.f32.mrf.mxu0  ;;  %v1571_v9 = vmax.f32 %v1559_v4, %v1569_v7  ;;  %v2103_v10 = vld [vmem:[#allocation3 + $0x18] sm:$0xff] }
  0xdc   : > { %v1711_v11 = vld [vmem:[#allocation3 + $0x19] sm:$0xff]  ;;  %v834_v14 = vadd.f32 %v8023_v22, %v833_v8  ;;  %v2131_v15 = vpack.c.bf16 %v2103_v10, %v2103_v10 }
  0xdd   : > { %v1739_v16 = vpack.c.bf16 %v1711_v11, %v1711_v11  ;;  %1573 = vst.msk [vmem:[#allocation3 + $0xc1] sm:$0xff] %vm1154_vm0, %v1571_v9  ;;  %v1907_v23 = vld [vmem:[#allocation3 + $0x12] sm:$0xff] }
  0xde   : > { %v1065_v17 = vmax.f32 %v834_v14, 0.0  ;;  %2188 = vrot.lane.b32.xlu2 %v2131_v15, %s7893_s22  ;;  %v1564_v18 = vld [vmem:[#allocation2 + $0x294] ss:$2 sm:$0x3f]  ;;  %1683 = vst.msk [vmem:[#allocation4 + $0x24] sm:$0xf] %vm1679_vm5, %v2131_v15  ;;  %v1935_v28 = vpack.c.bf16 %v1907_v23, %v1907_v23 }
  0xdf   : > { %1798 = vrot.lane.b32.xlu1 %v1739_v16, %s7891_s20  ;;  %1796 = vrot.lane.b32.xlu0 %v1738_v1, %s7891_s20  ;;  %2356 = vst.msk [vmem:[#allocation4 + $0x10] sm:$0xf] %vm1679_vm5, %v1739_v16  ;;  %v1568_v20 = vld [vmem:[#allocation2 + $0x295] ss:$2 sm:$0x3f] }
  0xe0   : > { %1164 = vst.msk [vmem:[#allocation2 + $0x48] sm:$0xff] %vm1154_vm0, %v1065_v17  ;;  %v1570_v21 = vmax.f32 %v1564_v18, %v1568_v20  ;;  %v1312_v52 = vld [vmem:[#allocation2 + $0x38] ss:$2 sm:$0xff]  ;;  %v1316_v53 = vld [vmem:[#allocation2 + $0x39] ss:$2 sm:$0xff]  ;;  %v7548_v17 = vld [vmem:[%s7964_s17 + $0x178] sm:$0xff] }
  0xe1   : > { %v1319_v58 = vmax.f32 %v1312_v52, %v1316_v53  ;;  %v7517_v18 = vld [vmem:[%s7964_s17 + $0x80] sm:$0xff]  ;;  %v1793_v52 = vpop.permute.xlu0 %1792  ;;  %v1990_v53 = vpop.permute.xlu2 %1989 }
  0xe2   : > { %v1572_v26 = vmax.f32 %v1560_v19, %v1570_v21 }
  0xe3   : > { %v836_v25 = vpop.f32.mrf.mxu0 }
  0xe4   : > { %v837_v27 = vadd.f32 %v8023_v22, %v836_v25  ;;  %v2404_v29 = vld [vmem:[#allocation3 + $0xba] sm:$0xff]  ;;  %1574 = vst.msk [vmem:[#allocation3 + $0xc9] sm:$0x3f] %vm1309_vm4, %v1572_v26 }
  0xe5   : > { %v2795_v30 = vld [vmem:[#allocation3 + $0xc1] sm:$0xff]  ;;  %v2432_v31 = vpack.c.bf16 %v2404_v29, %v2404_v29 }
  0xe6   : > { %v2823_v32 = vpack.c.bf16 %v2795_v30, %v2795_v30  ;;  %v1066_v33 = vmax.f32 %v837_v27, 0.0  ;;  %6424 = vmatmul.msk.bf16.gmra.mxu0 %vm647_vm3, %v7514_v24  ;;  %1993 = vrot.lane.b32.xlu2 %v1935_v28, %s7892_s21  ;;  %v2599_v34 = vld [vmem:[#allocation3 + $0xc0] sm:$0xff] }
  0xe7   : > { %2467 = vrot.lane.b32.xlu0 %v1935_v28, %s7891_s20  ;;  %2509 = vrot.lane.b32.xlu1 %v2432_v31, %s7891_s20  ;;  %v2627_v35 = vpack.c.bf16 %v2599_v34, %v2599_v34  ;;  %v7600_v28 = vld [vmem:[%s9325_s3 + $0x38] sm:$0xff] }
  0xe8   : > { %2377 = vst.msk [vmem:[#allocation4 + $0x10c] sm:$0xf] %vm1679_vm5, %v2823_v32  ;;  %6458 = vmatmul.msk.bf16.gmra.mxu3 %vm647_vm3, %v7548_v17  ;;  %3511 = vmatpush.bf16.msrb.mxu1 %v7600_v28 }
  0xe9   : > { %1165 = vst.msk [vmem:[#allocation2 + $0x50] sm:$0xff] %vm1154_vm0, %v1066_v33 }
  0xeb   : > { %v838_v36 = vpop.f32.mrf.mxu0  ;;  %v2600_v38 = vld [vmem:[#allocation3 + $0xc8] sm:$0xff] }
  0xec   : > { %v839_v37 = vadd.f32 %v8023_v22, %v838_v36  ;;  %v2628_v39 = vpack.c.bf16 %v2600_v38, %v2600_v38  ;;  %v2796_v41 = vld [vmem:[#allocation3 + $0xc9] sm:$0xff] }
  0xed   : > { %v2405_v42 = vld [vmem:[#allocation3 + $0xc2] sm:$0xff]  ;;  %v2824_v45 = vpack.c.bf16 %v2796_v41, %v2796_v41 }
  0xee   : > { %v1067_v40 = vmax.f32 %v839_v37, 0.0  ;;  %2703 = vrot.lane.b32.xlu2 %v2627_v35, %s7892_s21  ;;  %v2433_v47 = vpack.c.bf16 %v2405_v42, %v2405_v42  ;;  %v7598_v35 = vld [vmem:[%s9325_s3 + $0x28] sm:$0xff]  ;;  %v7549_v37 = vld [vmem:[%s7964_s17 + $0x180] sm:$0xff] }
  0xef   : > { %2705 = vrot.lane.b32.xlu0 %v2628_v39, %s7892_s21  ;;  %2899 = vrot.lane.b32.xlu1 %v2823_v32, %s7893_s22  ;;  %v7599_v32 = vld [vmem:[%s9325_s3 + $0x30] sm:$0xff]  ;;  %v7597_v38 = vld [vmem:[%s9325_s3 + $0x20] sm:$0xff] }
  0xf0   : > { %1166 = vst.msk [vmem:[#allocation2 + $0x58] sm:$0xff] %vm1154_vm0, %v1067_v40  ;;  %v1314_v0 = vld [vmem:[#allocation2 + $0x48] ss:$2 sm:$0x3f]  ;;  %3512 = vmatpush.bf16.msrb.mxu1 %v7599_v32  ;;  %v7518_v39 = vld [vmem:[%s7964_s17 + $0x88] sm:$0xff]  ;;  %v1624_v42 = vld [vmem:[#allocation3 + $0x8] sm:$0xff] }
  0xf1   : > { %v1318_v1 = vld [vmem:[#allocation2 + $0x49] ss:$2 sm:$0x3f] }
  0xf2   : > { %v1320_v5 = vmax.f32 %v1314_v0, %v1318_v1 }
  0xf3   : > { %v841_v46 = vpop.f32.mrf.mxu0 }
  0xf4   : > { %v842_v48 = vadd.f32 %v8023_v22, %v841_v46  ;;  %3513 = vmatpush.bf16.msrb.mxu1 %v7598_v35 }
  0xf6   : > { %v1068_v49 = vmax.f32 %v842_v48, 0.0  ;;  %6425 = vmatmul.msk.bf16.gmra.mxu0 %vm647_vm3, %v7515_v44  ;;  %2901 = vrot.lane.b32.xlu2 %v2824_v45, %s7893_s22  ;;  %v7596_v44 = vld [vmem:[%s9325_s3 + $0x18] sm:$0xff]  ;;  %v1652_v45 = vpack.c.bf16 %v1624_v42, %v1624_v42  ;;  %v7595_v48 = vld [vmem:[%s9325_s3 + $0x10] sm:$0xff] }
  0xf7   : > { %2511 = vrot.lane.b32.xlu0 %v2433_v47, %s7891_s20  ;;  %v1651_v47 = vpack.c.bf16 %v1623_v43, %v1623_v43 }
  0xf8   : > { %1167 = vst.msk [vmem:[#allocation2 + $0x60] sm:$0xff] %vm1154_vm0, %v1068_v49  ;;  %6459 = vmatmul.msk.bf16.gmra.mxu3 %vm647_vm3, %v7549_v37  ;;  %3514 = vmatpush.bf16.msrb.mxu1 %v7597_v38  ;;  %v7610_v49 = vld [vmem:[%s9325_s3 + $0x88] sm:$0xff] }
  0xf9   : > { %1681 = vst.msk [vmem:[#allocation4 + $0xc] sm:$0xf] %vm1679_vm5, %v1652_v45  ;;  %3675 = vmatpush.bf16.msrb.mxu3 %v7610_v49 }
  0xfa   : > { %1680 = vst.msk [vmem:[#allocation4] sm:$0xf] %vm1679_vm5, %v1651_v47 }
  0xfb   : > { %v843_v50 = vpop.f32.mrf.mxu0  ;;  %1877 = vst.msk [vmem:[#allocation4] sm:$0xf] %vm1876_vm6, %v1793_v52 }
  0xfc   : > { %v844_v51 = vadd.f32 %v8023_v22, %v843_v50  ;;  %3515 = vmatpush.bf16.msrb.mxu1 %v7596_v44  ;;  %v1795_v50 = vpop.permute.xlu1 %1794  ;;  %2074 = vst.msk [vmem:[#allocation4] sm:$0xf] %vm2073_vm7, %v1990_v53 }
  0xfd   : > { %1878 = vst.msk [vmem:[#allocation4 + $0xc] sm:$0xf] %vm1876_vm6, %v1795_v50 }
  0xfe   : > { %v1069_v54 = vmax.f32 %v844_v51, 0.0 }
  0xff   : > { %v1322_v55 = vld [vmem:[#allocation2 + $0x54] ss:$2 sm:$0xff]  ;;  %v1326_v56 = vld [vmem:[#allocation2 + $0x55] ss:$2 sm:$0xff] }
 0x100   : > { %v1329_v59 = vmax.f32 %v1322_v55, %v1326_v56  ;;  %1168 = vst.msk [vmem:[#allocation2 + $0x68] sm:$0xff] %vm1154_vm0, %v1069_v54  ;;  %3516 = vmatpush.bf16.msrb.mxu1 %v7595_v48  ;;  %v7594_v55 = vld [vmem:[%s9325_s3 + $0x8] sm:$0xff]  ;;  %v7609_v56 = vld [vmem:[%s9325_s3 + $0x80] sm:$0xff] }
 0x101   : > { %3676 = vmatpush.bf16.msrb.mxu3 %v7609_v56 }
 0x102   : > { %v1331_v60 = vmax.f32 %v1319_v58, %v1329_v59  ;;  %v7593_v58 = vld [vmem:[%s9325_s3] sm:$0xff]  ;;  %v7519_v59 = vld [vmem:[%s7964_s17 + $0x90] sm:$0xff] }
 0x103   : > { %v846_v62 = vpop.f32.mrf.mxu0 }
 0x104   : > { %1333 = vst.msk [vmem:[#allocation3 + $0x21] sm:$0xff] %vm1154_vm0, %v1331_v60  ;;  %v847_v63 = vadd.f32 %v8023_v22, %v846_v62  ;;  %3517 = vmatpush.bf16.msrb.mxu1 %v7594_v55 }
 0x106   : > { %v1070_v2 = vmax.f32 %v847_v63, 0.0  ;;  %6426 = vmatmul.msk.bf16.gmra.mxu0 %vm647_vm3, %v7516_v61 }
 0x107   : > { %v1324_v3 = vld [vmem:[#allocation2 + $0x64] ss:$2 sm:$0x3f]  ;;  %v1328_v4 = vld [vmem:[#allocation2 + $0x65] ss:$2 sm:$0x3f] }
 0x108   : > { %v1330_v6 = vmax.f32 %v1324_v3, %v1328_v4  ;;  %1169 = vst.msk [vmem:[#allocation2 + $0x70] sm:$0xff] %vm1154_vm0, %v1070_v2  ;;  %3518 = vmatpush.bf16.msrb.mxu1 %v7593_v58  ;;  %v7521_v58 = vld [vmem:[%s7964_s17 + $0xa0] sm:$0xff] }
 0x10a   : > { %v1332_v7 = vmax.f32 %v1320_v5, %v1330_v6 }
 0x10b   : > { %v848_v8 = vpop.f32.mrf.mxu0  ;;  %v2579_v9 = vld [vmem:[#allocation3 + $0x20] sm:$0xff] }
 0x10c   : > { %v2775_v10 = vld [vmem:[#allocation3 + $0x21] sm:$0xff]  ;;  %1334 = vst.msk [vmem:[#allocation3 + $0x29] sm:$0x3f] %vm1309_vm4, %v1332_v7  ;;  %v849_v12 = vadd.f32 %v8023_v22, %v848_v8  ;;  %v2607_v13 = vpack.c.bf16 %v2579_v9, %v2579_v9 }
 0x10d   : > { %v2384_v11 = vld [vmem:[#allocation3 + $0x1a] sm:$0xff]  ;;  %v2803_v14 = vpack.c.bf16 %v2775_v10, %v2775_v10 }
 0x10e   : > { %v2412_v15 = vpack.c.bf16 %v2384_v11, %v2384_v11  ;;  %v1071_v16 = vmax.f32 %v849_v12, 0.0  ;;  %2663 = vrot.lane.b32.xlu1 %v2607_v13, %s7892_s21  ;;  %1684 = vst.msk [vmem:[#allocation4 + $0x30] sm:$0xf] %vm1679_vm5, %v2607_v13  ;;  %v1021_v11 = vpop.f32.mrf.mxu2 }
 0x10f   : > { %2859 = vrot.lane.b32.xlu2 %v2803_v14, %s7893_s22  ;;  %2357 = vst.msk [vmem:[#allocation4 + $0x1c] sm:$0xf] %vm1679_vm5, %v2803_v14  ;;  %v1022_v17 = vadd.f32 %v8023_v22, %v1021_v11 }
 0x110   : > { %2469 = vrot.lane.b32.xlu0 %v2412_v15, %s7891_s20  ;;  %1170 = vst.msk [vmem:[#allocation2 + $0x78] sm:$0xff] %vm1154_vm0, %v1071_v16 }
 0x113   : > { %v851_v19 = vpop.f32.mrf.mxu0  ;;  %v2776_v20 = vld [vmem:[#allocation3 + $0x29] sm:$0xff] }
 0x114   : > { %v2580_v21 = vld [vmem:[#allocation3 + $0x28] sm:$0xff]  ;;  %v852_v24 = vadd.f32 %v8023_v22, %v851_v19  ;;  %v2804_v25 = vpack.c.bf16 %v2776_v20, %v2776_v20  ;;  %v7520_v19 = vld [vmem:[%s7964_s17 + $0x98] sm:$0xff]  ;;  %v1140_v20 = vmax.f32 %v1022_v17, 0.0 }
 0x115   : > { %v1909_v23 = vld [vmem:[#allocation3 + $0x22] sm:$0xff]  ;;  %v2608_v26 = vpack.c.bf16 %v2580_v21, %v2580_v21 }
 0x116   : > { %v1937_v27 = vpack.c.bf16 %v1909_v23, %v1909_v23  ;;  %v2302_v29 = vld [vmem:[#allocation3 + $0x29] sm:$0xff]  ;;  %v1072_v31 = vmax.f32 %v852_v24, 0.0  ;;  %6427 = vmatmul.msk.bf16.gmra.mxu0 %vm647_vm3, %v7517_v18  ;;  %2190 = vrot.lane.b32.xlu1 %v2607_v13, %s7893_s22  ;;  %1239 = vst.msk [vmem:[#allocation2 + $0x2a0] sm:$0xff] %vm1154_vm0, %v1140_v20  ;;  %v1023_v28 = vpop.f32.mrf.mxu2 }
 0x117   : > { %v2330_v30 = vpack.c.bf16 %v2302_v29, %v2302_v29  ;;  %2861 = vrot.lane.b32.xlu2 %v2804_v25, %s7893_s22  ;;  %1685 = vst.msk [vmem:[#allocation4 + $0x3c] sm:$0xf] %vm1679_vm5, %v2608_v26  ;;  %v1336_v62 = vld [vmem:[#allocation2 + $0x70] ss:$2 sm:$0xff]  ;;  %v1340_v63 = vld [vmem:[#allocation2 + $0x71] ss:$2 sm:$0xff]  ;;  %v1024_v32 = vadd.f32 %v8023_v22, %v1023_v28 }
 0x118   : > { %3027 = vst.msk [vmem:[#allocation4 + $0x8] sm:$0xf] %vm1679_vm5, %v1937_v27  ;;  %1995 = vrot.lane.b32.xlu0 %v2412_v15, %s7892_s21  ;;  %v1343_v3 = vmax.f32 %v1336_v62, %v1340_v63 }
 0x119   : > { %1171 = vst.msk [vmem:[#allocation2 + $0x80] sm:$0xff] %vm1154_vm0, %v1072_v31 }
 0x11a   : > { %2358 = vst.msk [vmem:[#allocation4 + $0x28] sm:$0xf] %vm1679_vm5, %v2330_v30 }
 0x11b   : > { %v853_v33 = vpop.f32.mrf.mxu0 }
 0x11c   : > { %v854_v34 = vadd.f32 %v8023_v22, %v853_v33 }
 0x11e   : > { %v1073_v36 = vmax.f32 %v854_v34, 0.0  ;;  %2665 = vrot.lane.b32.xlu1 %v2608_v26, %s7892_s21  ;;  %v1141_v34 = vmax.f32 %v1024_v32, 0.0 }
 0x11f   : > { %2192 = vrot.lane.b32.xlu2 %v2608_v26, %s7893_s22  ;;  %v6470_v43 = vld [vmem:[#allocation4 + $0x8] sm:$0xf] }
 0x120   : > { %1800 = vrot.lane.b32.xlu0 %v2803_v14, %s7891_s20  ;;  %1172 = vst.msk [vmem:[#allocation2 + $0x88] sm:$0xff] %vm1154_vm0, %v1073_v36 }
 0x121   : > { %1240 = vst.msk [vmem:[#allocation2 + $0x2a8] sm:$0xff] %vm1154_vm0, %v1141_v34  ;;  %v1026_v47 = vpop.f32.mrf.mxu2  ;;  %v7605_v34 = vld [vmem:[%s9325_s3 + $0x60] sm:$0xff] }
 0x122   : > { %v8210_v7 = vpop.permute.xlu2 %2897  ;;  %v1031_v48 = vpop.f32.mrf.mxu3  ;;  %v1027_v62 = vadd.f32 %v8023_v22, %v1026_v47 }
 0x123   : > { %v856_v40 = vpop.f32.mrf.mxu0  ;;  %v1032_v63 = vadd.f32 %v8023_v22, %v1031_v48  ;;  %v8306_v48 = vld [vmem:[%s9324_s2] ss:$0 sm:$0xff] }
 0x124   : > { %v857_v41 = vadd.f32 %v8023_v22, %v856_v40 }
 0x126   : > { %v1074_v46 = vmax.f32 %v857_v41, 0.0  ;;  %6428 = vmatmul.msk.bf16.gmra.mxu0 %vm647_vm3, %v7518_v39  ;;  %1802 = vrot.lane.b32.xlu1 %v2804_v25, %s7891_s20 }
 0x127   : > { %1997 = vrot.lane.b32.xlu2 %v1937_v27, %s7892_s21  ;;  %v1338_v9 = vld [vmem:[#allocation2 + $0x80] ss:$2 sm:$0x3f]  ;;  %v1342_v10 = vld [vmem:[#allocation2 + $0x81] ss:$2 sm:$0x3f] }
 0x128   : > { %2471 = vrot.lane.b32.xlu0 %v1937_v27, %s7891_s20  ;;  %1173 = vst.msk [vmem:[#allocation2 + $0x90] sm:$0xff] %vm1154_vm0, %v1074_v46  ;;  %v1344_v15 = vmax.f32 %v1338_v9, %v1342_v10  ;;  %v1576_v17 = vld [vmem:[#allocation2 + $0x2a0] ss:$2 sm:$0xff] }
 0x12b   : > { %v858_v51 = vpop.f32.mrf.mxu0 }
 0x12c   : > { %v859_v54 = vadd.f32 %v8023_v22, %v858_v51 }
 0x12e   : > { %v1075_v57 = vmax.f32 %v859_v54, 0.0 }
 0x130   : > { %1174 = vst.msk [vmem:[#allocation2 + $0x98] sm:$0xff] %vm1154_vm0, %v1075_v57 }
 0x133   : > { %v861_v60 = vpop.f32.mrf.mxu0 }
 0x134   : > { %v862_v61 = vadd.f32 %v8023_v22, %v861_v60 }
 0x136   : > { %v1076_v0 = vmax.f32 %v862_v61, 0.0  ;;  %6429 = vmatmul.msk.bf16.gmra.mxu0 %vm647_vm3, %v7519_v59 }
 0x137   : > { %v1346_v1 = vld [vmem:[#allocation2 + $0x8c] ss:$2 sm:$0xff]  ;;  %v1350_v2 = vld [vmem:[#allocation2 + $0x8d] ss:$2 sm:$0xff] }
 0x138   : > { %v1353_v4 = vmax.f32 %v1346_v1, %v1350_v2  ;;  %1175 = vst.msk [vmem:[#allocation2 + $0xa0] sm:$0xff] %vm1154_vm0, %v1076_v0  ;;  %v2189_v29 = vpop.permute.xlu2 %2188  ;;  %v1028_v0 = vpop.f32.mrf.mxu2 }
 0x139   : > { %v1033_v1 = vpop.f32.mrf.mxu3 }
 0x13a   : > { %v1355_v5 = vmax.f32 %v1343_v3, %v1353_v4  ;;  %v1142_v3 = vmax.f32 %v1027_v62, 0.0  ;;  %v1029_v4 = vadd.f32 %v8023_v22, %v1028_v0  ;;  %v7601_v0 = vld [vmem:[%s9325_s3 + $0x40] sm:$0xff] }
 0x13b   : > { %v863_v6 = vpop.f32.mrf.mxu0 }
 0x13c   : > { %1357 = vst.msk [vmem:[#allocation3 + $0x31] sm:$0xff] %vm1154_vm0, %v1355_v5  ;;  %v864_v8 = vadd.f32 %v8023_v22, %v863_v6  ;;  %v1144_v5 = vmax.f32 %v1032_v63, 0.0  ;;  %v1034_v6 = vadd.f32 %v8023_v22, %v1033_v1  ;;  %v1143_v10 = vmax.f32 %v1029_v4, 0.0 }
 0x13d   : > { %1241 = vst.msk [vmem:[#allocation2 + $0x2b0] sm:$0xff] %vm1154_vm0, %v1142_v3 }
 0x13e   : > { %v1077_v12 = vmax.f32 %v864_v8, 0.0  ;;  %v1145_v11 = vmax.f32 %v1034_v6, 0.0  ;;  %1243 = vst.msk [vmem:[#allocation2 + $0x2c0] sm:$0xff] %vm1154_vm0, %v1144_v5 }
 0x13f   : > { %v1348_v13 = vld [vmem:[#allocation2 + $0x9c] ss:$2 sm:$0x3f]  ;;  %v1352_v14 = vld [vmem:[#allocation2 + $0x9d] ss:$2 sm:$0x3f] }
 0x140   : > { %v1354_v16 = vmax.f32 %v1348_v13, %v1352_v14  ;;  %1176 = vst.msk [vmem:[#allocation2 + $0xa8] sm:$0xff] %vm1154_vm0, %v1077_v12  ;;  %v1994_v52 = vpop.permute.xlu2 %1993 }
 0x141   : > { %1242 = vst.msk [vmem:[#allocation2 + $0x2b8] sm:$0xff] %vm1154_vm0, %v1143_v10 }
 0x142   : > { %v1356_v18 = vmax.f32 %v1344_v15, %v1354_v16  ;;  %1244 = vst.msk [vmem:[#allocation2 + $0x2c8] sm:$0xff] %vm1154_vm0, %v1145_v11  ;;  %v7608_v16 = vld [vmem:[%s9325_s3 + $0x78] sm:$0xff] }
 0x143   : > { %v866_v21 = vpop.f32.mrf.mxu0  ;;  %v2386_v23 = vld [vmem:[#allocation3 + $0x2a] sm:$0xff]  ;;  %3590 = vmatpush.bf16.msrb.mxu2 %v7608_v16 }
 0x144   : > { %v2581_v24 = vld [vmem:[#allocation3 + $0x30] sm:$0xff]  ;;  %1358 = vst.msk [vmem:[#allocation3 + $0x39] sm:$0x3f] %vm1309_vm4, %v1356_v18  ;;  %v867_v25 = vadd.f32 %v8023_v22, %v866_v21  ;;  %v2414_v26 = vpack.c.bf16 %v2386_v23, %v2386_v23  ;;  %v7607_v23 = vld [vmem:[%s9325_s3 + $0x70] sm:$0xff] }
 0x145   : > { %v8218_v27 = vpack.c.bf16 %v2581_v24, %v2581_v24  ;;  %v2777_v31 = vld [vmem:[#allocation3 + $0x31] sm:$0xff] }
 0x146   : > { %v1078_v30 = vmax.f32 %v867_v25, 0.0  ;;  %6430 = vmatmul.msk.bf16.gmra.mxu0 %vm647_vm3, %v7520_v19  ;;  %2473 = vrot.lane.b32.xlu1 %v2414_v26, %s7891_s20  ;;  %3028 = vst.msk [vmem:[#allocation4 + $0x14] sm:$0xf] %vm1679_vm5, %v2414_v26  ;;  %v2805_v36 = vpack.c.bf16 %v2777_v31, %v2777_v31  ;;  %v1580_v18 = vld [vmem:[#allocation2 + $0x2a1] ss:$2 sm:$0xff] }
 0x147   : > { %2667 = vrot.lane.b32.xlu2 %v8218_v27, %s7892_s21  ;;  %1999 = vrot.lane.b32.xlu0 %v2414_v26, %s7892_s21  ;;  %1686 = vst.msk [vmem:[#allocation4 + $0x48] sm:$0xf] %vm1679_vm5, %v8218_v27  ;;  %v7522_v21 = vld [vmem:[%s7964_s17 + $0xa8] sm:$0xff]  ;;  %v1583_v25 = vmax.f32 %v1576_v17, %v1580_v18  ;;  %v7524_v18 = vld [vmem:[%s7964_s17 + $0xb8] sm:$0xff] }
 0x148   : > { %1177 = vst.msk [vmem:[#allocation2 + $0xb0] sm:$0xff] %vm1154_vm0, %v1078_v30  ;;  %v2187_v33 = vpop.permute.xlu1 %2186  ;;  %v8260_v8 = vpop.permute.xlu2 %2703  ;;  %3591 = vmatpush.bf16.msrb.mxu2 %v7607_v23  ;;  %v7606_v31 = vld [vmem:[%s9325_s3 + $0x68] sm:$0xff] }
 0x149   : > { %2271 = vst.msk [vmem:[#allocation4] sm:$0xf] %vm2270_vm8, %v2187_v33  ;;  %v1992_v35 = vpop.permute.xlu0 %1991  ;;  %v1590_v28 = vld [vmem:[#allocation2 + $0x2bd] ss:$2 sm:$0xff] }
 0x14a   : > { %2075 = vst.msk [vmem:[#allocation4 + $0xc] sm:$0xf] %vm2073_vm7, %v1992_v35 }
 0x14b   : > { %2272 = vst.msk [vmem:[#allocation4 + $0xc] sm:$0xf] %vm2270_vm8, %v2189_v29  ;;  %v868_v37 = vpop.f32.mrf.mxu0  ;;  %v2778_v38 = vld [vmem:[#allocation3 + $0x39] sm:$0xff] }
 0x14c   : > { %v2107_v39 = vld [vmem:[#allocation3 + $0x38] sm:$0xff]  ;;  %v869_v41 = vadd.f32 %v8023_v22, %v868_v37  ;;  %v2806_v42 = vpack.c.bf16 %v2778_v38, %v2778_v38  ;;  %2359 = vst.msk [vmem:[#allocation4 + $0x34] sm:$0xf] %vm1679_vm5, %v2805_v36  ;;  %3592 = vmatpush.bf16.msrb.mxu2 %v7606_v31 }
 0x14d   : > { %v1911_v40 = vld [vmem:[#allocation3 + $0x32] sm:$0xff]  ;;  %v2135_v44 = vpack.c.bf16 %v2107_v39, %v2107_v39  ;;  %v7553_v46 = vld [vmem:[#allocation4 + $0x10] sm:$0xf0] }
 0x14e   : > { %v1939_v45 = vpack.c.bf16 %v1911_v40, %v1911_v40  ;;  %v2304_v49 = vld [vmem:[#allocation3 + $0x39] sm:$0xff]  ;;  %v1079_v50 = vmax.f32 %v869_v41, 0.0  ;;  %2863 = vrot.lane.b32.xlu1 %v2805_v36, %s7893_s22  ;;  %v6471_v51 = vor.u32 %v7553_v46, %v6470_v43 }
 0x14f   : > { %2865 = vrot.lane.b32.xlu2 %v2806_v42, %s7893_s22  ;;  %1804 = vrot.lane.b32.xlu0 %v2805_v36, %s7891_s20  ;;  %1687 = vst.msk [vmem:[#allocation4 + $0x54] sm:$0xf] %vm1679_vm5, %v2135_v44  ;;  %v2332_v55 = vpack.c.bf16 %v2304_v49, %v2304_v49  ;;  %v1360_v37 = vld [vmem:[#allocation2 + $0xa8] ss:$2 sm:$0xff]  ;;  %v1364_v38 = vld [vmem:[#allocation2 + $0xa9] ss:$2 sm:$0xff] }
 0x150   : > { %3029 = vst.msk [vmem:[#allocation4 + $0x20] sm:$0xf] %vm1679_vm5, %v1939_v45  ;;  %6700 = vmatmul.msk.bf16.vlgmr.msrb.gmra.mxu3 %vm1154_vm0, %v6471_v51  ;;  %v6462_v54 = vld [vmem:[#allocation4] sm:$0xf]  ;;  %v2902_v20 = vpop.permute.xlu2 %2901  ;;  %3593 = vmatpush.bf16.msrb.mxu2 %v7605_v34  ;;  %v7604_v40 = vld [vmem:[%s9325_s3 + $0x58] sm:$0xff]  ;;  %v1367_v43 = vmax.f32 %v1360_v37, %v1364_v38  ;;  %v7523_v46 = vld [vmem:[%s7964_s17 + $0xb0] sm:$0xff] }
 0x151   : > { %1178 = vst.msk [vmem:[#allocation2 + $0xb8] sm:$0xff] %vm1154_vm0, %v1079_v50  ;;  %v1799_v53 = vpop.permute.xlu1 %1798  ;;  %v1797_v56 = vpop.permute.xlu0 %1796 }
 0x152   : > { %1880 = vst.msk [vmem:[#allocation4 + $0x24] sm:$0xf] %vm1876_vm6, %v1799_v53  ;;  %v7552_v57 = vld [vmem:[#allocation4 + $0x8] sm:$0xf0] }
 0x153   : > { %1879 = vst.msk [vmem:[#allocation4 + $0x18] sm:$0xf] %vm1876_vm6, %v1797_v56  ;;  %v871_v59 = vpop.f32.mrf.mxu0  ;;  %v6463_v60 = vor.u32 %v7552_v57, %v6462_v54  ;;  %v7602_v56 = vld [vmem:[%s9325_s3 + $0x48] sm:$0xff] }
 0x154   : > { %2076 = vst.msk [vmem:[#allocation4 + $0x18] sm:$0xf] %vm2073_vm7, %v1994_v52  ;;  %v872_v61 = vadd.f32 %v8023_v22, %v871_v59  ;;  %3594 = vmatpush.bf16.msrb.mxu2 %v7604_v40 }
 0x155   : > { %2360 = vst.msk [vmem:[#allocation4 + $0x40] sm:$0xf] %vm1679_vm5, %v2332_v55  ;;  %3519 = vmatmul.bf16.vlgmr.msrb.gmra.mxu1 %v6463_v60  ;;  %v1036_v55 = vpop.f32.mrf.mxu3 }
 0x156   : > { %v1080_v2 = vmax.f32 %v872_v61, 0.0  ;;  %6431 = vmatmul.msk.bf16.gmra.mxu0 %vm647_vm3, %v7521_v58  ;;  %2194 = vrot.lane.b32.xlu1 %v8218_v27, %s7893_s22  ;;  %v1586_v27 = vld [vmem:[#allocation2 + $0x2bc] ss:$2 sm:$0xff]  ;;  %v1037_v61 = vadd.f32 %v8306_v48, %v1036_v55 }
 0x157   : > { %2196 = vrot.lane.b32.xlu2 %v2135_v44, %s7893_s22  ;;  %2669 = vrot.lane.b32.xlu0 %v2135_v44, %s7892_s21  ;;  %v1593_v30 = vmax.f32 %v1586_v27, %v1590_v28 }
 0x158   : > { %1179 = vst.msk [vmem:[#allocation2 + $0xc0] sm:$0xff] %vm1154_vm0, %v1080_v2  ;;  %v1146_v63 = vmax.f32 %v1037_v61, 0.0 }
 0x159   : > { %v2468_v9 = vpop.permute.xlu0 %2467  ;;  %v2510_v13 = vpop.permute.xlu1 %2509  ;;  %v1595_v32 = vmax.f32 %v1583_v25, %v1593_v30 }
 0x15a   : > { %2551 = vst.msk [vmem:[#allocation4 + $0x4] sm:$0xf] %vm1876_vm6, %v2468_v9 }
 0x15b   : > { %v873_v12 = vpop.f32.mrf.mxu0  ;;  %2572 = vst.msk [vmem:[#allocation4 + $0x100] sm:$0xf] %vm1876_vm6, %v2510_v13  ;;  %v1578_v13 = vld [vmem:[#allocation2 + $0x2b0] ss:$2 sm:$0x3f] }
 0x15c   : > { %v874_v14 = vadd.f32 %v8023_v22, %v873_v12  ;;  %1597 = vst.msk [vmem:[#allocation3 + $0xd1] sm:$0xff] %vm1154_vm0, %v1595_v32 }
 0x15d   : > { %1245 = vst.msk [vmem:[#allocation2 + $0x2d0] sm:$0xff] %vm1154_vm0, %v1146_v63  ;;  %v1038_v11 = vpop.f32.mrf.mxu3 }
 0x15e   : > { %v1081_v15 = vmax.f32 %v874_v14, 0.0  ;;  %1806 = vrot.lane.b32.xlu1 %v2806_v42, %s7891_s20 }
 0x15f   : > { %2001 = vrot.lane.b32.xlu2 %v1939_v45, %s7892_s21  ;;  %2475 = vrot.lane.b32.xlu0 %v1939_v45, %s7891_s20  ;;  %v1362_v50 = vld [vmem:[#allocation2 + $0xb8] ss:$2 sm:$0x3f]  ;;  %v1366_v51 = vld [vmem:[#allocation2 + $0xb9] ss:$2 sm:$0x3f] }
 0x160   : > { %1180 = vst.msk [vmem:[#allocation2 + $0xc8] sm:$0xff] %vm1154_vm0, %v1081_v15  ;;  %v1368_v59 = vmax.f32 %v1362_v50, %v1366_v51  ;;  %v1582_v15 = vld [vmem:[#allocation2 + $0x2b1] ss:$2 sm:$0x3f] }
 0x161   : > { %v2706_v19 = vpop.permute.xlu0 %2705  ;;  %v8310_v54 = vpop.permute.xlu1 %2899  ;;  %v1584_v23 = vmax.f32 %v1578_v13, %v1582_v15  ;;  %v2124_v15 = vld [vmem:[#allocation3 + $0xc0] sm:$0xff] }
 0x162   : > { %2768 = vst.msk [vmem:[#allocation4 + $0x100] sm:$0xf] %vm2073_vm7, %v2706_v19 }
 0x163   : > { %v876_v24 = vpop.f32.mrf.mxu0  ;;  %2964 = vst.msk [vmem:[#allocation4 + $0x100] sm:$0xf] %vm2270_vm8, %v2902_v20 }
 0x164   : > { %v877_v26 = vadd.f32 %v8023_v22, %v876_v24  ;;  %v1592_v27 = vld [vmem:[#allocation2 + $0x2cd] ss:$2 sm:$0x3f] }
 0x166   : > { %v1082_v29 = vmax.f32 %v877_v26, 0.0  ;;  %6432 = vmatmul.msk.bf16.gmra.mxu0 %vm647_vm3, %v7522_v21  ;;  %v1588_v26 = vld [vmem:[#allocation2 + $0x2cc] ss:$2 sm:$0x3f] }
 0x167   : > { %v1594_v31 = vmax.f32 %v1588_v26, %v1592_v27 }
 0x168   : > { %1181 = vst.msk [vmem:[#allocation2 + $0xd0] sm:$0xff] %vm1154_vm0, %v1082_v29  ;;  %v6482_v29 = vld [vmem:[#allocation4 + $0x20] sm:$0xf] }
 0x169   : > { %v2512_v33 = vpop.permute.xlu0 %2511  ;;  %v2860_v52 = vpop.permute.xlu2 %2859  ;;  %v1596_v38 = vmax.f32 %v1584_v23, %v1594_v31 }
 0x16a   : > { %2573 = vst.msk [vmem:[#allocation4 + $0x10c] sm:$0xf] %vm1876_vm6, %v2512_v33 }
 0x16b   : > { %v878_v35 = vpop.f32.mrf.mxu0  ;;  %1598 = vst.msk [vmem:[#allocation3 + $0xd9] sm:$0x3f] %vm1309_vm4, %v1596_v38 }
 0x16c   : > { %v879_v36 = vadd.f32 %v8023_v22, %v878_v35  ;;  %v7603_v22 = vld [vmem:[%s9325_s3 + $0x50] sm:$0xff]  ;;  %v1041_v35 = vpop.f32.mrf.mxu3 }
 0x16d   : > { %3595 = vmatpush.bf16.msrb.mxu2 %v7603_v22  ;;  %v1039_v22 = vadd.f32 %v8306_v48, %v1038_v11  ;;  %v1042_v61 = vadd.f32 %v8306_v48, %v1041_v35 }
 0x16e   : > { %v1083_v39 = vmax.f32 %v879_v36, 0.0 }
 0x16f   : > { %v1370_v41 = vld [vmem:[#allocation2 + $0xc4] ss:$2 sm:$0xff]  ;;  %v1374_v42 = vld [vmem:[#allocation2 + $0xc5] ss:$2 sm:$0xff] }
 0x170   : > { %v1377_v44 = vmax.f32 %v1370_v41, %v1374_v42  ;;  %1182 = vst.msk [vmem:[#allocation2 + $0xd8] sm:$0xff] %vm1154_vm0, %v1083_v39  ;;  %v1928_v39 = vld [vmem:[#allocation3 + $0xba] sm:$0xff] }
 0x171   : > { %3596 = vmatpush.bf16.msrb.mxu2 %v7602_v56  ;;  %v8329_v12 = vpop.permute.xlu2 %2861  ;;  %v7525_v56 = vld [vmem:[%s7964_s17 + $0xc0] sm:$0xff] }
 0x172   : > { %v1379_v45 = vmax.f32 %v1367_v43, %v1377_v44 }
 0x173   : > { %v881_v47 = vpop.f32.mrf.mxu0 }
 0x174   : > { %1381 = vst.msk [vmem:[#allocation3 + $0x41] sm:$0xff] %vm1154_vm0, %v1379_v45  ;;  %v882_v49 = vadd.f32 %v8306_v48, %v881_v47  ;;  %v8357_v45 = vpack.c.bf16 %v1928_v39, %v1928_v39 }
 0x175   : > { %3597 = vmatpush.bf16.msrb.mxu2 %v7601_v0 }
 0x176   : > { %v1084_v53 = vmax.f32 %v882_v49, 0.0  ;;  %6433 = vmatmul.msk.bf16.gmra.mxu0 %vm647_vm3, %v7523_v46  ;;  %v1043_v49 = vpop.f32.mrf.mxu3  ;;  %3046 = vst.msk [vmem:[#allocation4 + $0xec] sm:$0xf] %vm1679_vm5, %v8357_v45 }
 0x177   : > { %v1372_v57 = vld [vmem:[#allocation2 + $0xd4] ss:$2 sm:$0x3f]  ;;  %v1376_v58 = vld [vmem:[#allocation2 + $0xd5] ss:$2 sm:$0x3f] }
 0x178   : > { %v1378_v60 = vmax.f32 %v1372_v57, %v1376_v58  ;;  %1183 = vst.msk [vmem:[#allocation2 + $0xe0] sm:$0xff] %vm1154_vm0, %v1084_v53  ;;  %v1147_v53 = vmax.f32 %v1039_v22, 0.0 }
 0x179   : > { %v2193_v40 = vpop.permute.xlu2 %2192 }
 0x17a   : > { %v1380_v62 = vmax.f32 %v1368_v59, %v1378_v60  ;;  %1246 = vst.msk [vmem:[#allocation2 + $0x2d8] sm:$0xff] %vm1154_vm0, %v1147_v53 }
 0x17b   : > { %v883_v1 = vpop.f32.mrf.mxu0  ;;  %v2388_v2 = vld [vmem:[#allocation3 + $0x3a] sm:$0xff] }
 0x17c   : > { %v2583_v3 = vld [vmem:[#allocation3 + $0x40] sm:$0xff]  ;;  %1382 = vst.msk [vmem:[#allocation3 + $0x49] sm:$0x3f] %vm1309_vm4, %v1380_v62  ;;  %v884_v4 = vadd.f32 %v8306_v48, %v883_v1  ;;  %v2416_v5 = vpack.c.bf16 %v2388_v2, %v2388_v2  ;;  %v1044_v62 = vadd.f32 %v8306_v48, %v1043_v49  ;;  %v1148_v2 = vmax.f32 %v1042_v61, 0.0 }
 0x17d   : > { %v8322_v6 = vpack.c.bf16 %v2583_v3, %v2583_v3  ;;  %v2779_v10 = vld [vmem:[#allocation3 + $0x41] sm:$0xff]  ;;  %v2406_v3 = vld [vmem:[#allocation3 + $0xca] sm:$0xff] }
 0x17e   : > { %v1085_v9 = vmax.f32 %v884_v4, 0.0  ;;  %2477 = vrot.lane.b32.xlu1 %v2416_v5, %s7891_s20  ;;  %3030 = vst.msk [vmem:[#allocation4 + $0x2c] sm:$0xf] %vm1679_vm5, %v2416_v5  ;;  %2003 = vrot.lane.b32.xlu0 %v2416_v5, %s7892_s21  ;;  %v2807_v17 = vpack.c.bf16 %v2779_v10, %v2779_v10  ;;  %v1046_v0 = vpop.f32.mrf.mxu3  ;;  %v2991_v1 = vld [vmem:[#allocation3 + $0xc2] sm:$0xff]  ;;  %v1149_v5 = vmax.f32 %v1044_v62, 0.0 }
 0x17f   : > { %2671 = vrot.lane.b32.xlu2 %v8322_v6, %s7892_s21  ;;  %1688 = vst.msk [vmem:[#allocation4 + $0x60] sm:$0xf] %vm1679_vm5, %v8322_v6 }
 0x180   : > { %1184 = vst.msk [vmem:[#allocation2 + $0xe8] sm:$0xff] %vm1154_vm0, %v1085_v9  ;;  %v2664_v14 = vpop.permute.xlu1 %2663 }
 0x181   : > { %2747 = vst.msk [vmem:[#allocation4 + $0x4] sm:$0xf] %vm2073_vm7, %v2664_v14  ;;  %v1998_v57 = vpop.permute.xlu2 %1997  ;;  %v8393_v14 = vpack.c.bf16 %v2406_v3, %v2406_v3 }
 0x182   : > { %v2470_v16 = vpop.permute.xlu0 %2469  ;;  %2943 = vst.msk [vmem:[#allocation4 + $0x4] sm:$0xf] %vm2270_vm8, %v2860_v52 }
 0x183   : > { %2552 = vst.msk [vmem:[#allocation4 + $0x10] sm:$0xf] %vm1876_vm6, %v2470_v16  ;;  %v886_v19 = vpop.f32.mrf.mxu0  ;;  %v2780_v20 = vld [vmem:[#allocation3 + $0x49] sm:$0xff] }
 0x184   : > { %v1913_v21 = vld [vmem:[#allocation3 + $0x42] sm:$0xff]  ;;  %v887_v24 = vadd.f32 %v8306_v48, %v886_v19  ;;  %v8340_v25 = vpack.c.bf16 %v2780_v20, %v2780_v20  ;;  %2361 = vst.msk [vmem:[#allocation4 + $0x4c] sm:$0xf] %vm1679_vm5, %v2807_v17  ;;  %v8402_v20 = vpack.c.bf16 %v2124_v15, %v2124_v15 }
 0x185   : > { %v8342_v28 = vpack.c.bf16 %v1913_v21, %v1913_v21  ;;  %v7556_v30 = vld [vmem:[#allocation4 + $0x28] sm:$0xf0]  ;;  %v2109_v34 = vld [vmem:[#allocation3 + $0x48] sm:$0xff]  ;;  %1247 = vst.msk [vmem:[#allocation2 + $0x2e0] sm:$0xff] %vm1154_vm0, %v1148_v2 }
 0x186   : > { %v1086_v32 = vmax.f32 %v887_v24, 0.0  ;;  %6434 = vmatmul.msk.bf16.gmra.mxu0 %vm647_vm3, %v7524_v18  ;;  %2867 = vrot.lane.b32.xlu1 %v2807_v17, %s7893_s22  ;;  %v6483_v33 = vor.u32 %v7556_v30, %v6482_v29  ;;  %v2306_v36 = vld [vmem:[#allocation3 + $0x49] sm:$0xff]  ;;  %v2137_v42 = vpack.c.bf16 %v2109_v34, %v2109_v34  ;;  %1248 = vst.msk [vmem:[#allocation2 + $0x2e8] sm:$0xff] %vm1154_vm0, %v1149_v5  ;;  %v1048_v23 = vpop.f32.mrf.mxu3 }
 0x187   : > { %3031 = vst.msk [vmem:[#allocation4 + $0x38] sm:$0xf] %vm1679_vm5, %v8342_v28  ;;  %2869 = vrot.lane.b32.xlu2 %v8340_v25, %s7893_s22  ;;  %1808 = vrot.lane.b32.xlu0 %v2807_v17, %s7891_s20  ;;  %v2334_v43 = vpack.c.bf16 %v2306_v36, %v2306_v36  ;;  %v2125_v19 = vld [vmem:[#allocation3 + $0xc8] sm:$0xff]  ;;  %v1049_v26 = vadd.f32 %v8306_v48, %v1048_v23  ;;  %v1388_v34 = vld [vmem:[#allocation2 + $0xe1] ss:$2 sm:$0xff] }
 0x188   : > { %1185 = vst.msk [vmem:[#allocation2 + $0xf0] sm:$0xff] %vm1154_vm0, %v1086_v32  ;;  %6701 = vmatmul.msk.bf16.gmra.mxu3 %vm1154_vm0, %v6483_v33  ;;  %v2191_v37 = vpop.permute.xlu1 %2190  ;;  %v8406_v24 = vpack.c.bf16 %v2125_v19, %v2125_v19  ;;  %v1384_v33 = vld [vmem:[#allocation2 + $0xe0] ss:$2 sm:$0xff] }
 0x189   : > { %2273 = vst.msk [vmem:[#allocation4 + $0x18] sm:$0xf] %vm2270_vm8, %v2191_v37  ;;  %v7551_v10 = vld [vmem:[#allocation4 + $0x4] sm:$0xf]  ;;  %v1151_v31 = vmax.f32 %v1049_v26, 0.0  ;;  %v1391_v39 = vmax.f32 %v1384_v33, %v1388_v34 }
 0x18a   : > { %v1996_v41 = vpop.permute.xlu0 %1995  ;;  %1689 = vst.msk [vmem:[#allocation4 + $0x6c] sm:$0xf] %vm1679_vm5, %v2137_v42 }
 0x18b   : > { %2077 = vst.msk [vmem:[#allocation4 + $0x24] sm:$0xf] %vm2073_vm7, %v1996_v41  ;;  %v888_v44 = vpop.f32.mrf.mxu0 }
 0x18c   : > { %2274 = vst.msk [vmem:[#allocation4 + $0x24] sm:$0xf] %vm2270_vm8, %v2193_v40  ;;  %v889_v46 = vadd.f32 %v8306_v48, %v888_v44  ;;  %v1604_v5 = vld [vmem:[#allocation2 + $0x2d9] ss:$2 sm:$0xff] }
 0x18d   : > { %2362 = vst.msk [vmem:[#allocation4 + $0x58] sm:$0xf] %vm1679_vm5, %v2334_v43 }
 0x18e   : > { %v1087_v47 = vmax.f32 %v889_v46, 0.0  ;;  %2198 = vrot.lane.b32.xlu1 %v8322_v6, %s7893_s22  ;;  %v1733_v6 = vld [vmem:[#allocation3 + $0xc9] sm:$0xff]  ;;  %3048 = vst.msk [vmem:[#allocation4 + $0x104] sm:$0xf] %vm1679_vm5, %v8393_v14  ;;  %v1051_v36 = vpop.f32.mrf.mxu3 }
 0x18f   : > { %2200 = vrot.lane.b32.xlu2 %v2137_v42, %s7893_s22  ;;  %2673 = vrot.lane.b32.xlu0 %v2137_v42, %s7892_s21  ;;  %v8396_v17 = vpack.c.bf16 %v1733_v6, %v1733_v6  ;;  %1704 = vst.msk [vmem:[#allocation4 + $0x120] sm:$0xf] %vm1679_vm5, %v8402_v20 }
 0x190   : > { %1186 = vst.msk [vmem:[#allocation2 + $0xf8] sm:$0xff] %vm1154_vm0, %v1087_v47  ;;  %v2666_v50 = vpop.permute.xlu1 %2665  ;;  %v6474_v51 = vld [vmem:[#allocation4 + $0x18] sm:$0xf] }
 0x191   : > { %2748 = vst.msk [vmem:[#allocation4 + $0x10] sm:$0xf] %vm2073_vm7, %v2666_v50 }
 0x192   : > { %v1801_v52 = vpop.permute.xlu0 %1800  ;;  %2944 = vst.msk [vmem:[#allocation4 + $0x10] sm:$0xf] %vm2270_vm8, %v8329_v12  ;;  %v8390_v12 = vpack.c.bf16 %v2991_v1, %v2991_v1 }
 0x193   : > { %v7555_v55 = vld [vmem:[#allocation4 + $0x20] sm:$0xf0]  ;;  %1881 = vst.msk [vmem:[#allocation4 + $0x30] sm:$0xf] %vm1876_vm6, %v1801_v52  ;;  %v891_v58 = vpop.f32.mrf.mxu0 }
 0x194   : > { %v6475_v59 = vor.u32 %v7555_v55, %v6474_v51  ;;  %2078 = vst.msk [vmem:[#allocation4 + $0x30] sm:$0xf] %vm2073_vm7, %v1998_v57  ;;  %v892_v60 = vadd.f32 %v8306_v48, %v891_v58  ;;  %v1052_v55 = vadd.f32 %v8306_v48, %v1051_v36  ;;  %v7527_v58 = vld [vmem:[%s7964_s17 + $0xd0] sm:$0xff] }
 0x195   : > { %3047 = vst.msk [vmem:[#allocation4 + $0xf8] sm:$0xf] %vm1679_vm5, %v8390_v12 }
 0x196   : > { %3524 = vmatmul.bf16.gmra.mxu1 %v6475_v59  ;;  %v1088_v63 = vmax.f32 %v892_v60, 0.0  ;;  %6435 = vmatmul.msk.bf16.gmra.mxu0 %vm647_vm3, %v7525_v56  ;;  %2378 = vst.msk [vmem:[#allocation4 + $0x118] sm:$0xf] %vm1679_vm5, %v8396_v17  ;;  %v1053_v51 = vpop.f32.mrf.mxu3  ;;  %v1152_v59 = vmax.f32 %v1052_v55, 0.0 }
 0x197   : > { %1810 = vrot.lane.b32.xlu1 %v8340_v25, %s7891_s20  ;;  %2005 = vrot.lane.b32.xlu2 %v8342_v28, %s7892_s21  ;;  %v1047_v25 = vadd.f32 %v8306_v48, %v1046_v0  ;;  %1705 = vst.msk [vmem:[#allocation4 + $0x12c] sm:$0xf] %vm1679_vm5, %v8406_v24  ;;  %v1386_v44 = vld [vmem:[#allocation2 + $0xf0] ss:$2 sm:$0x3f]  ;;  %v1054_v56 = vadd.f32 %v8306_v48, %v1053_v51 }
 0x198   : > { %2479 = vrot.lane.b32.xlu0 %v8342_v28, %s7891_s20  ;;  %1187 = vst.msk [vmem:[#allocation2 + $0x100] sm:$0xff] %vm1154_vm0, %v1088_v63  ;;  %v1803_v4 = vpop.permute.xlu1 %1802  ;;  %v7526_v28 = vld [vmem:[%s7964_s17 + $0xc8] sm:$0xff]  ;;  %v1390_v46 = vld [vmem:[#allocation2 + $0xf1] ss:$2 sm:$0x3f] }
 0x199   : > { %1882 = vst.msk [vmem:[#allocation4 + $0x3c] sm:$0xf] %vm1876_vm6, %v1803_v4  ;;  %v6464_v11 = vld [vmem:[#allocation4 + $0xc] sm:$0xf0]  ;;  %v1150_v30 = vmax.f32 %v1047_v25, 0.0  ;;  %v1392_v52 = vmax.f32 %v1386_v44, %v1390_v46  ;;  %v1153_v63 = vmax.f32 %v1054_v56, 0.0 }
 0x19a   : > { %v2472_v9 = vpop.permute.xlu0 %2471  ;;  %v6467_v13 = vor.u32 %v7551_v10, %v6464_v11  ;;  %1250 = vst.msk [vmem:[#allocation2 + $0x2f8] sm:$0xff] %vm1154_vm0, %v1151_v31  ;;  %v1600_v4 = vld [vmem:[#allocation2 + $0x2d8] ss:$2 sm:$0xff]  ;;  %v7528_v46 = vld [vmem:[%s7964_s17 + $0xd8] sm:$0xff] }
 0x19b   : > { %2553 = vst.msk [vmem:[#allocation4 + $0x1c] sm:$0xf] %vm1876_vm6, %v2472_v9  ;;  %v893_v16 = vpop.f32.mrf.mxu0 }
 0x19c   : > { %v894_v18 = vadd.f32 %v8306_v48, %v893_v16  ;;  %3598 = vmatmul.bf16.vlgmr.msrb.gmra.mxu2 %v6467_v13  ;;  %1249 = vst.msk [vmem:[#allocation2 + $0x2f0] sm:$0xff] %vm1154_vm0, %v1150_v30  ;;  %v1607_v16 = vmax.f32 %v1600_v4, %v1604_v5 }
 0x19d   : > { %1251 = vst.msk [vmem:[#allocation2 + $0x300] sm:$0xff] %vm1154_vm0, %v1152_v59 }
 0x19e   : > { %v1089_v21 = vmax.f32 %v894_v18, 0.0  ;;  %1252 = vst.msk [vmem:[#allocation2 + $0x308] sm:$0xff] %vm1154_vm0, %v1153_v63 }
 0x1a0   : > { %1188 = vst.msk [vmem:[#allocation2 + $0x108] sm:$0xff] %vm1154_vm0, %v1089_v21 }
 0x1a1   : > { %v2668_v27 = vpop.permute.xlu2 %2667 }
 0x1a2   : > { %2749 = vst.msk [vmem:[#allocation4 + $0x1c] sm:$0xf] %vm2073_vm7, %v2668_v27 }
 0x1a3   : > { %v896_v29 = vpop.f32.mrf.mxu0  ;;  %v1602_v13 = vld [vmem:[#allocation2 + $0x2e8] ss:$2 sm:$0x3f]  ;;  %v1606_v15 = vld [vmem:[#allocation2 + $0x2e9] ss:$2 sm:$0x3f] }
 0x1a4   : > { %v897_v32 = vadd.f32 %v8306_v48, %v896_v29  ;;  %v1614_v29 = vld [vmem:[#allocation2 + $0x2f5] ss:$2 sm:$0xff] }
 0x1a6   : > { %v1090_v35 = vmax.f32 %v897_v32, 0.0  ;;  %6436 = vmatmul.msk.bf16.gmra.mxu0 %vm647_vm3, %v7526_v28  ;;  %v1610_v28 = vld [vmem:[#allocation2 + $0x2f4] ss:$2 sm:$0xff] }
 0x1a7   : > { %v1394_v37 = vld [vmem:[#allocation2 + $0xfc] ss:$2 sm:$0xff]  ;;  %v1398_v38 = vld [vmem:[#allocation2 + $0xfd] ss:$2 sm:$0xff]  ;;  %v6494_v32 = vld [vmem:[#allocation4 + $0x38] sm:$0xf]  ;;  %v1617_v34 = vmax.f32 %v1610_v28, %v1614_v29 }
 0x1a8   : > { %v1401_v40 = vmax.f32 %v1394_v37, %v1398_v38  ;;  %1189 = vst.msk [vmem:[#allocation2 + $0x110] sm:$0xff] %vm1154_vm0, %v1090_v35  ;;  %v1612_v37 = vld [vmem:[#allocation2 + $0x304] ss:$2 sm:$0x3f]  ;;  %v1608_v38 = vmax.f32 %v1602_v13, %v1606_v15 }
 0x1a9   : > { %v8426_v22 = vpop.permute.xlu2 %2865 }
 0x1aa   : > { %v1403_v41 = vmax.f32 %v1391_v39, %v1401_v40  ;;  %v1619_v40 = vmax.f32 %v1607_v16, %v1617_v34 }
 0x1ab   : > { %v898_v42 = vpop.f32.mrf.mxu0 }
 0x1ac   : > { %1405 = vst.msk [vmem:[#allocation3 + $0x51] sm:$0xff] %vm1154_vm0, %v1403_v41  ;;  %v899_v43 = vadd.f32 %v8306_v48, %v898_v42  ;;  %v1616_v41 = vld [vmem:[#allocation2 + $0x305] ss:$2 sm:$0x3f] }
 0x1ad   : > { %1621 = vst.msk [vmem:[#allocation3 + $0xe1] sm:$0xff] %vm1154_vm0, %v1619_v40 }
 0x1ae   : > { %v1091_v47 = vmax.f32 %v899_v43, 0.0  ;;  %v1618_v43 = vmax.f32 %v1612_v37, %v1616_v41 }
 0x1af   : > { %v1396_v49 = vld [vmem:[#allocation2 + $0x10c] ss:$2 sm:$0x3f]  ;;  %v1400_v50 = vld [vmem:[#allocation2 + $0x10d] ss:$2 sm:$0x3f] }
 0x1b0   : > { %v1402_v53 = vmax.f32 %v1396_v49, %v1400_v50  ;;  %1190 = vst.msk [vmem:[#allocation2 + $0x118] sm:$0xff] %vm1154_vm0, %v1091_v47  ;;  %v1620_v49 = vmax.f32 %v1608_v38, %v1618_v43 }
 0x1b1   : > { %v2197_v6 = vpop.permute.xlu2 %2196 }
 0x1b2   : > { %v1404_v57 = vmax.f32 %v1392_v52, %v1402_v53  ;;  %1622 = vst.msk [vmem:[#allocation3 + $0xe9] sm:$0x3f] %vm1309_vm4, %v1620_v49 }
 0x1b3   : > { %v901_v60 = vpop.f32.mrf.mxu0  ;;  %v2390_v61 = vld [vmem:[#allocation3 + $0x4a] sm:$0xff] }
 0x1b4   : > { %v2585_v62 = vld [vmem:[#allocation3 + $0x50] sm:$0xff]  ;;  %1406 = vst.msk [vmem:[#allocation3 + $0x59] sm:$0x3f] %vm1309_vm4, %v1404_v57  ;;  %v902_v0 = vadd.f32 %v8306_v48, %v901_v60  ;;  %v2418_v1 = vpack.c.bf16 %v2390_v61, %v2390_v61 }
 0x1b5   : > { %v8434_v2 = vpack.c.bf16 %v2585_v62, %v2585_v62  ;;  %v2781_v10 = vld [vmem:[#allocation3 + $0x51] sm:$0xff] }
 0x1b6   : > { %v1092_v3 = vmax.f32 %v902_v0, 0.0  ;;  %6437 = vmatmul.msk.bf16.gmra.mxu0 %vm647_vm3, %v7527_v58  ;;  %2481 = vrot.lane.b32.xlu1 %v2418_v1, %s7891_s20  ;;  %3032 = vst.msk [vmem:[#allocation4 + $0x44] sm:$0xf] %vm1679_vm5, %v2418_v1  ;;  %v2809_v19 = vpack.c.bf16 %v2781_v10, %v2781_v10 }
 0x1b7   : > { %2675 = vrot.lane.b32.xlu2 %v8434_v2, %s7892_s21  ;;  %2007 = vrot.lane.b32.xlu0 %v2418_v1, %s7892_s21  ;;  %1690 = vst.msk [vmem:[#allocation4 + $0x78] sm:$0xf] %vm1679_vm5, %v8434_v2 }
 0x1b8   : > { %1191 = vst.msk [vmem:[#allocation2 + $0x120] sm:$0xff] %vm1154_vm0, %v1092_v3  ;;  %v2474_v9 = vpop.permute.xlu1 %2473 }
 0x1b9   : > { %2554 = vst.msk [vmem:[#allocation4 + $0x28] sm:$0xf] %vm1876_vm6, %v2474_v9  ;;  %v2000_v11 = vpop.permute.xlu0 %1999  ;;  %v2002_v44 = vpop.permute.xlu2 %2001 }
 0x1ba   : > { %2079 = vst.msk [vmem:[#allocation4 + $0x3c] sm:$0xf] %vm2073_vm7, %v2000_v11 }
 0x1bb   : > { %2276 = vst.msk [vmem:[#allocation4 + $0x3c] sm:$0xf] %vm2270_vm8, %v2197_v6  ;;  %v903_v18 = vpop.f32.mrf.mxu0  ;;  %v2782_v21 = vld [vmem:[#allocation3 + $0x59] sm:$0xff] }
 0x1bc   : > { %v2111_v23 = vld [vmem:[#allocation3 + $0x58] sm:$0xff]  ;;  %v904_v26 = vadd.f32 %v8306_v48, %v903_v18  ;;  %v2810_v27 = vpack.c.bf16 %v2782_v21, %v2782_v21  ;;  %2363 = vst.msk [vmem:[#allocation4 + $0x64] sm:$0xf] %vm1679_vm5, %v2809_v19 }
 0x1bd   : > { %v1915_v25 = vld [vmem:[#allocation3 + $0x52] sm:$0xff]  ;;  %v2139_v30 = vpack.c.bf16 %v2111_v23, %v2111_v23 }
 0x1be   : > { %v1943_v31 = vpack.c.bf16 %v1915_v25, %v1915_v25  ;;  %v7559_v33 = vld [vmem:[#allocation4 + $0x40] sm:$0xf0]  ;;  %v1093_v35 = vmax.f32 %v904_v26, 0.0  ;;  %2871 = vrot.lane.b32.xlu1 %v2809_v19, %s7893_s22  ;;  %2364 = vst.msk [vmem:[#allocation4 + $0x70] sm:$0xf] %vm1679_vm5, %v2810_v27 }
 0x1bf   : > { %v6495_v36 = vor.u32 %v7559_v33, %v6494_v32  ;;  %2873 = vrot.lane.b32.xlu2 %v2810_v27, %s7893_s22  ;;  %1812 = vrot.lane.b32.xlu0 %v2809_v19, %s7891_s20  ;;  %1691 = vst.msk [vmem:[#allocation4 + $0x84] sm:$0xf] %vm1679_vm5, %v2139_v30  ;;  %v1408_v10 = vld [vmem:[#allocation2 + $0x118] ss:$2 sm:$0xff]  ;;  %v1412_v11 = vld [vmem:[#allocation2 + $0x119] ss:$2 sm:$0xff] }
 0x1c0   : > { %3033 = vst.msk [vmem:[#allocation4 + $0x50] sm:$0xf] %vm1679_vm5, %v1943_v31  ;;  %v2864_v39 = vpop.permute.xlu1 %2863  ;;  %v1415_v18 = vmax.f32 %v1408_v10, %v1412_v11  ;;  %v7530_v23 = vld [vmem:[%s7964_s17 + $0xe8] sm:$0xff] }
 0x1c1   : > { %1192 = vst.msk [vmem:[#allocation2 + $0x128] sm:$0xff] %vm1154_vm0, %v1093_v35  ;;  %6702 = vmatmul.msk.bf16.gmra.mxu3 %vm1154_vm0, %v6495_v36  ;;  %v1805_v42 = vpop.permute.xlu0 %1804 }
 0x1c2   : > { %2945 = vst.msk [vmem:[#allocation4 + $0x1c] sm:$0xf] %vm2270_vm8, %v2864_v39  ;;  %v7558_v60 = vld [vmem:[#allocation4 + $0x38] sm:$0xf0] }
 0x1c3   : > { %1883 = vst.msk [vmem:[#allocation4 + $0x48] sm:$0xf] %vm1876_vm6, %v1805_v42  ;;  %v906_v47 = vpop.f32.mrf.mxu0 }
 0x1c4   : > { %2080 = vst.msk [vmem:[#allocation4 + $0x48] sm:$0xf] %vm2073_vm7, %v2002_v44  ;;  %v907_v50 = vadd.f32 %v8306_v48, %v906_v47 }
 0x1c6   : > { %v1094_v51 = vmax.f32 %v907_v50, 0.0  ;;  %6438 = vmatmul.msk.bf16.gmra.mxu0 %vm647_vm3, %v7528_v46  ;;  %2202 = vrot.lane.b32.xlu1 %v8434_v2, %s7893_s22  ;;  %v7531_v50 = vld [vmem:[%s7964_s17 + $0xf0] sm:$0xff] }
 0x1c7   : > { %2204 = vrot.lane.b32.xlu2 %v2139_v30, %s7893_s22  ;;  %2677 = vrot.lane.b32.xlu0 %v2139_v30, %s7892_s21 }
 0x1c8   : > { %1193 = vst.msk [vmem:[#allocation2 + $0x130] sm:$0xff] %vm1154_vm0, %v1094_v51  ;;  %v2195_v52 = vpop.permute.xlu1 %2194 }
 0x1c9   : > { %2275 = vst.msk [vmem:[#allocation4 + $0x30] sm:$0xf] %vm2270_vm8, %v2195_v52  ;;  %v2670_v53 = vpop.permute.xlu0 %2669  ;;  %v7554_v63 = vld [vmem:[#allocation4 + $0x1c] sm:$0xf] }
 0x1ca   : > { %2750 = vst.msk [vmem:[#allocation4 + $0x28] sm:$0xf] %vm2073_vm7, %v2670_v53 }
 0x1cb   : > { %2946 = vst.msk [vmem:[#allocation4 + $0x28] sm:$0xf] %vm2270_vm8, %v8426_v22  ;;  %v908_v55 = vpop.f32.mrf.mxu0  ;;  %v7529_v22 = vld [vmem:[%s7964_s17 + $0xe0] sm:$0xff] }
 0x1cc   : > { %v909_v56 = vadd.f32 %v8306_v48, %v908_v55 }
 0x1ce   : > { %v1095_v57 = vmax.f32 %v909_v56, 0.0  ;;  %1814 = vrot.lane.b32.xlu1 %v2810_v27, %s7891_s20 }
 0x1cf   : > { %2009 = vrot.lane.b32.xlu2 %v1943_v31, %s7892_s21  ;;  %2483 = vrot.lane.b32.xlu0 %v1943_v31, %s7891_s20  ;;  %v1410_v27 = vld [vmem:[#allocation2 + $0x128] ss:$2 sm:$0x3f]  ;;  %v1414_v28 = vld [vmem:[#allocation2 + $0x129] ss:$2 sm:$0x3f] }
 0x1d0   : > { %1194 = vst.msk [vmem:[#allocation2 + $0x138] sm:$0xff] %vm1154_vm0, %v1095_v57  ;;  %v1807_v58 = vpop.permute.xlu1 %1806  ;;  %v6486_v59 = vld [vmem:[#allocation4 + $0x30] sm:$0xf]  ;;  %v1416_v33 = vmax.f32 %v1410_v27, %v1414_v28 }
 0x1d1   : > { %1884 = vst.msk [vmem:[#allocation4 + $0x54] sm:$0xf] %vm1876_vm6, %v1807_v58  ;;  %v2476_v61 = vpop.permute.xlu0 %2475  ;;  %v6487_v62 = vor.u32 %v7558_v60, %v6486_v59  ;;  %v6506_v60 = vld [vmem:[#allocation4 + $0x50] sm:$0xf] }
 0x1d2   : > { %2555 = vst.msk [vmem:[#allocation4 + $0x34] sm:$0xf] %vm1876_vm6, %v2476_v61  ;;  %v6476_v0 = vld [vmem:[#allocation4 + $0x24] sm:$0xf0] }
 0x1d3   : > { %v911_v1 = vpop.f32.mrf.mxu0  ;;  %3529 = vmatmul.bf16.gmra.mxu1 %v6487_v62  ;;  %v6479_v2 = vor.u32 %v7554_v63, %v6476_v0 }
 0x1d4   : > { %v912_v3 = vadd.f32 %v8306_v48, %v911_v1 }
 0x1d5   : > { %3603 = vmatmul.bf16.gmra.mxu2 %v6479_v2 }
 0x1d6   : > { %v1096_v4 = vmax.f32 %v912_v3, 0.0  ;;  %6439 = vmatmul.msk.bf16.gmra.mxu0 %vm647_vm3, %v7529_v22 }
 0x1d8   : > { %1195 = vst.msk [vmem:[#allocation2 + $0x140] sm:$0xff] %vm1154_vm0, %v1096_v4 }
 0x1d9   : > { %v2672_v5 = vpop.permute.xlu2 %2671 }
 0x1da   : > { %2751 = vst.msk [vmem:[#allocation4 + $0x34] sm:$0xf] %vm2073_vm7, %v2672_v5 }
 0x1db   : > { %v913_v6 = vpop.f32.mrf.mxu0 }
 0x1dc   : > { %v914_v9 = vadd.f32 %v8306_v48, %v913_v6 }
 0x1de   : > { %v1097_v13 = vmax.f32 %v914_v9, 0.0  ;;  %v7532_v9 = vld [vmem:[%s7964_s17 + $0xf8] sm:$0xff] }
 0x1df   : > { %v1418_v15 = vld [vmem:[#allocation2 + $0x134] ss:$2 sm:$0xff]  ;;  %v1422_v16 = vld [vmem:[#allocation2 + $0x135] ss:$2 sm:$0xff] }
 0x1e0   : > { %v1425_v19 = vmax.f32 %v1418_v15, %v1422_v16  ;;  %1196 = vst.msk [vmem:[#allocation2 + $0x148] sm:$0xff] %vm1154_vm0, %v1097_v13 }
 0x1e1   : > { %v8494_v29 = vpop.permute.xlu2 %2869 }
 0x1e2   : > { %v1427_v21 = vmax.f32 %v1415_v18, %v1425_v19 }
 0x1e3   : > { %v916_v25 = vpop.f32.mrf.mxu0 }
 0x1e4   : > { %1429 = vst.msk [vmem:[#allocation3 + $0x61] sm:$0xff] %vm1154_vm0, %v1427_v21  ;;  %v917_v26 = vadd.f32 %v8306_v48, %v916_v25 }
 0x1e6   : > { %v1098_v30 = vmax.f32 %v917_v26, 0.0  ;;  %6440 = vmatmul.msk.bf16.gmra.mxu0 %vm647_vm3, %v7530_v23 }
 0x1e7   : > { %v1420_v31 = vld [vmem:[#allocation2 + $0x144] ss:$2 sm:$0x3f]  ;;  %v1424_v32 = vld [vmem:[#allocation2 + $0x145] ss:$2 sm:$0x3f] }
 0x1e8   : > { %v1426_v34 = vmax.f32 %v1420_v31, %v1424_v32  ;;  %1197 = vst.msk [vmem:[#allocation2 + $0x150] sm:$0xff] %vm1154_vm0, %v1098_v30  ;;  %v7533_v31 = vld [vmem:[%s7964_s17 + $0x100] sm:$0xff] }
 0x1e9   : > { %v2201_v44 = vpop.permute.xlu2 %2200 }
 0x1ea   : > { %v1428_v35 = vmax.f32 %v1416_v33, %v1426_v34 }
 0x1eb   : > { %v918_v36 = vpop.f32.mrf.mxu0  ;;  %v2392_v37 = vld [vmem:[#allocation3 + $0x5a] sm:$0xff] }
 0x1ec   : > { %v2587_v38 = vld [vmem:[#allocation3 + $0x60] sm:$0xff]  ;;  %1430 = vst.msk [vmem:[#allocation3 + $0x69] sm:$0x3f] %vm1309_vm4, %v1428_v35  ;;  %v919_v39 = vadd.f32 %v8306_v48, %v918_v36  ;;  %v2420_v40 = vpack.c.bf16 %v2392_v37, %v2392_v37 }
 0x1ed   : > { %v2615_v41 = vpack.c.bf16 %v2587_v38, %v2587_v38  ;;  %v2783_v42 = vld [vmem:[#allocation3 + $0x61] sm:$0xff] }
 0x1ee   : > { %v1099_v43 = vmax.f32 %v919_v39, 0.0  ;;  %2485 = vrot.lane.b32.xlu1 %v2420_v40, %s7891_s20  ;;  %3034 = vst.msk [vmem:[#allocation4 + $0x5c] sm:$0xf] %vm1679_vm5, %v2420_v40  ;;  %2011 = vrot.lane.b32.xlu0 %v2420_v40, %s7892_s21  ;;  %v2811_v47 = vpack.c.bf16 %v2783_v42, %v2783_v42  ;;  %v8552_v42 = vld [vmem:[%s9326_s4] ss:$0 sm:$0xff] }
 0x1ef   : > { %2679 = vrot.lane.b32.xlu2 %v2615_v41, %s7892_s21  ;;  %1692 = vst.msk [vmem:[#allocation4 + $0x90] sm:$0xf] %vm1679_vm5, %v2615_v41 }
 0x1f0   : > { %1198 = vst.msk [vmem:[#allocation2 + $0x158] sm:$0xff] %vm1154_vm0, %v1099_v43  ;;  %v2478_v46 = vpop.permute.xlu1 %2477  ;;  %v2004_v49 = vpop.permute.xlu0 %2003 }
 0x1f1   : > { %2556 = vst.msk [vmem:[#allocation4 + $0x40] sm:$0xf] %vm1876_vm6, %v2478_v46  ;;  %v2006_v1 = vpop.permute.xlu2 %2005 }
 0x1f2   : > { %2081 = vst.msk [vmem:[#allocation4 + $0x54] sm:$0xf] %vm2073_vm7, %v2004_v49 }
 0x1f3   : > { %2278 = vst.msk [vmem:[#allocation4 + $0x54] sm:$0xf] %vm2270_vm8, %v2201_v44  ;;  %v921_v51 = vpop.f32.mrf.mxu0  ;;  %v2784_v52 = vld [vmem:[#allocation3 + $0x69] sm:$0xff] }
 0x1f4   : > { %v2113_v53 = vld [vmem:[#allocation3 + $0x68] sm:$0xff]  ;;  %v922_v56 = vadd.f32 %v8306_v48, %v921_v51  ;;  %v2812_v57 = vpack.c.bf16 %v2784_v52, %v2784_v52  ;;  %2365 = vst.msk [vmem:[#allocation4 + $0x7c] sm:$0xf] %vm1679_vm5, %v2811_v47 }
 0x1f5   : > { %v1917_v55 = vld [vmem:[#allocation3 + $0x62] sm:$0xff]  ;;  %v2141_v58 = vpack.c.bf16 %v2113_v53, %v2113_v53  ;;  %v7562_v61 = vld [vmem:[#allocation4 + $0x58] sm:$0xf0]  ;;  %v3678_v53 = vpop.f32.mrf.mxu3 }
 0x1f6   : > { %v1945_v59 = vpack.c.bf16 %v1917_v55, %v1917_v55  ;;  %v1100_v62 = vmax.f32 %v922_v56, 0.0  ;;  %6441 = vmatmul.msk.bf16.gmra.mxu0 %vm647_vm3, %v7531_v50  ;;  %2875 = vrot.lane.b32.xlu1 %v2811_v47, %s7893_s22  ;;  %v6507_v22 = vor.u32 %v7562_v61, %v6506_v60  ;;  %2366 = vst.msk [vmem:[#allocation4 + $0x88] sm:$0xf] %vm1679_vm5, %v2812_v57 }
 0x1f7   : > { %2877 = vrot.lane.b32.xlu2 %v2812_v57, %s7893_s22  ;;  %1816 = vrot.lane.b32.xlu0 %v2811_v47, %s7891_s20  ;;  %1693 = vst.msk [vmem:[#allocation4 + $0x9c] sm:$0xf] %vm1679_vm5, %v2141_v58  ;;  %v1432_v34 = vld [vmem:[#allocation2 + $0x150] ss:$2 sm:$0xff]  ;;  %v1436_v35 = vld [vmem:[#allocation2 + $0x151] ss:$2 sm:$0xff] }
 0x1f8   : > { %3035 = vst.msk [vmem:[#allocation4 + $0x68] sm:$0xf] %vm1679_vm5, %v1945_v59  ;;  %6703 = vmatmul.msk.bf16.gmra.mxu3 %vm1154_vm0, %v6507_v22  ;;  %v2868_v63 = vpop.permute.xlu1 %2867  ;;  %v1439_v39 = vmax.f32 %v1432_v34, %v1436_v35  ;;  %v7534_v22 = vld [vmem:[%s7964_s17 + $0x108] sm:$0xff] }
 0x1f9   : > { %1199 = vst.msk [vmem:[#allocation2 + $0x160] sm:$0xff] %vm1154_vm0, %v1100_v62  ;;  %v1809_v0 = vpop.permute.xlu0 %1808 }
 0x1fa   : > { %2947 = vst.msk [vmem:[#allocation4 + $0x34] sm:$0xf] %vm2270_vm8, %v2868_v63  ;;  %v7561_v18 = vld [vmem:[#allocation4 + $0x50] sm:$0xf0] }
 0x1fb   : > { %1885 = vst.msk [vmem:[#allocation4 + $0x60] sm:$0xf] %vm1876_vm6, %v1809_v0  ;;  %v923_v2 = vpop.f32.mrf.mxu0 }
 0x1fc   : > { %2082 = vst.msk [vmem:[#allocation4 + $0x60] sm:$0xf] %vm2073_vm7, %v2006_v1  ;;  %v924_v3 = vadd.f32 %v8306_v48, %v923_v2 }
 0x1fe   : > { %v1101_v4 = vmax.f32 %v924_v3, 0.0  ;;  %2206 = vrot.lane.b32.xlu1 %v2615_v41, %s7893_s22  ;;  %v3520_v41 = vpop.f32.mrf.mxu1 }
 0x1ff   : > { %2208 = vrot.lane.b32.xlu2 %v2141_v58, %s7893_s22  ;;  %2681 = vrot.lane.b32.xlu0 %v2141_v58, %s7892_s21  ;;  %v3521_v50 = vadd.f32 %v8552_v42, %v3520_v41  ;;  %v6518_v35 = vld [vmem:[#allocation4 + $0x68] sm:$0xf] }
 0x200   : > { %1200 = vst.msk [vmem:[#allocation2 + $0x168] sm:$0xff] %vm1154_vm0, %v1101_v4  ;;  %v2199_v5 = vpop.permute.xlu1 %2198  ;;  %v7535_v41 = vld [vmem:[%s7964_s17 + $0x110] sm:$0xff] }
 0x201   : > { %2277 = vst.msk [vmem:[#allocation4 + $0x48] sm:$0xf] %vm2270_vm8, %v2199_v5  ;;  %v2674_v6 = vpop.permute.xlu0 %2673  ;;  %v7557_v23 = vld [vmem:[#allocation4 + $0x34] sm:$0xf] }
 0x202   : > { %2752 = vst.msk [vmem:[#allocation4 + $0x40] sm:$0xf] %vm2073_vm7, %v2674_v6 }
 0x203   : > { %2948 = vst.msk [vmem:[#allocation4 + $0x40] sm:$0xf] %vm2270_vm8, %v8494_v29  ;;  %v926_v10 = vpop.f32.mrf.mxu0 }
 0x204   : > { %v927_v11 = vadd.f32 %v8306_v48, %v926_v10 }
 0x206   : > { %v1102_v13 = vmax.f32 %v927_v11, 0.0  ;;  %6442 = vmatmul.msk.bf16.gmra.mxu0 %vm647_vm3, %v7532_v9  ;;  %1818 = vrot.lane.b32.xlu1 %v2812_v57, %s7891_s20  ;;  %v3522_v63 = vpop.f32.mrf.mxu1 }
 0x207   : > { %2013 = vrot.lane.b32.xlu2 %v1945_v59, %s7892_s21  ;;  %2487 = vrot.lane.b32.xlu0 %v1945_v59, %s7891_s20  ;;  %v1434_v47 = vld [vmem:[#allocation2 + $0x160] ss:$2 sm:$0x3f]  ;;  %v1438_v49 = vld [vmem:[#allocation2 + $0x161] ss:$2 sm:$0x3f]  ;;  %v3523_v9 = vadd.f32 %v8552_v42, %v3522_v63 }
 0x208   : > { %1201 = vst.msk [vmem:[#allocation2 + $0x170] sm:$0xff] %vm1154_vm0, %v1102_v13  ;;  %v6498_v16 = vld [vmem:[#allocation4 + $0x48] sm:$0xf]  ;;  %v1440_v58 = vmax.f32 %v1434_v47, %v1438_v49 }
 0x209   : > { %v1811_v15 = vpop.permute.xlu1 %1810  ;;  %v6499_v21 = vor.u32 %v7561_v18, %v6498_v16 }
 0x20a   : > { %1886 = vst.msk [vmem:[#allocation4 + $0x6c] sm:$0xf] %vm1876_vm6, %v1811_v15  ;;  %v2480_v19 = vpop.permute.xlu0 %2479  ;;  %v6488_v25 = vld [vmem:[#allocation4 + $0x3c] sm:$0xf0] }
 0x20b   : > { %2557 = vst.msk [vmem:[#allocation4 + $0x4c] sm:$0xf] %vm1876_vm6, %v2480_v19  ;;  %v928_v26 = vpop.f32.mrf.mxu0  ;;  %3534 = vmatmul.bf16.gmra.mxu1 %v6499_v21  ;;  %v6491_v27 = vor.u32 %v7557_v23, %v6488_v25  ;;  %v3680_v19 = vpop.f32.mrf.mxu3 }
 0x20c   : > { %v929_v28 = vadd.f32 %v8306_v48, %v928_v26 }
 0x20d   : > { %3608 = vmatmul.bf16.gmra.mxu2 %v6491_v27 }
 0x20e   : > { %v1103_v29 = vmax.f32 %v929_v28, 0.0 }
 0x210   : > { %1202 = vst.msk [vmem:[#allocation2 + $0x178] sm:$0xff] %vm1154_vm0, %v1103_v29 }
 0x211   : > { %v2676_v30 = vpop.permute.xlu2 %2675 }
 0x212   : > { %2753 = vst.msk [vmem:[#allocation4 + $0x4c] sm:$0xf] %vm2073_vm7, %v2676_v30 }
 0x213   : > { %v931_v32 = vpop.f32.mrf.mxu0 }
 0x214   : > { %v932_v33 = vadd.f32 %v8306_v48, %v931_v32 }
 0x216   : > { %v1104_v36 = vmax.f32 %v932_v33, 0.0  ;;  %6443 = vmatmul.msk.bf16.gmra.mxu0 %vm647_vm3, %v7533_v31 }
 0x217   : > { %v1442_v37 = vld [vmem:[#allocation2 + $0x16c] ss:$2 sm:$0xff]  ;;  %v1446_v38 = vld [vmem:[#allocation2 + $0x16d] ss:$2 sm:$0xff] }
 0x218   : > { %v1449_v40 = vmax.f32 %v1442_v37, %v1446_v38  ;;  %1203 = vst.msk [vmem:[#allocation2 + $0x180] sm:$0xff] %vm1154_vm0, %v1104_v36 }
 0x219   : > { %v8557_v51 = vpop.permute.xlu2 %2873 }
 0x21a   : > { %v1451_v43 = vmax.f32 %v1439_v39, %v1449_v40 }
 0x21b   : > { %v933_v44 = vpop.f32.mrf.mxu0 }
 0x21c   : > { %1453 = vst.msk [vmem:[#allocation3 + $0x71] sm:$0xff] %vm1154_vm0, %v1451_v43  ;;  %v934_v46 = vadd.f32 %v8306_v48, %v933_v44  ;;  %v8591_v44 = vld [vmem:[%s9324_s2] ss:$0 sm:$0xff] }
 0x21e   : > { %v1105_v52 = vmax.f32 %v934_v46, 0.0 }
 0x21f   : > { %v1444_v55 = vld [vmem:[#allocation2 + $0x17c] ss:$2 sm:$0x3f]  ;;  %v1448_v56 = vld [vmem:[#allocation2 + $0x17d] ss:$2 sm:$0x3f]  ;;  %v3599_v57 = vpop.f32.mrf.mxu2 }
 0x220   : > { %v1450_v59 = vmax.f32 %v1444_v55, %v1448_v56  ;;  %1204 = vst.msk [vmem:[#allocation2 + $0x188] sm:$0xff] %vm1154_vm0, %v1105_v52  ;;  %v3600_v60 = vadd.f32 %v3599_v57, %v3521_v50 }
 0x221   : > { %v2205_v15 = vpop.permute.xlu2 %2204 }
 0x222   : > { %v1452_v61 = vmax.f32 %v1440_v58, %v1450_v59  ;;  %v3679_v62 = vadd.f32 %v3678_v53, %v3600_v60 }
 0x223   : > { %v936_v0 = vpop.f32.mrf.mxu0  ;;  %v2394_v1 = vld [vmem:[#allocation3 + $0x6a] sm:$0xff] }
 0x224   : > { %v2589_v2 = vld [vmem:[#allocation3 + $0x70] sm:$0xff]  ;;  %1454 = vst.msk [vmem:[#allocation3 + $0x79] sm:$0x3f] %vm1309_vm4, %v1452_v61  ;;  %v3748_v3 = vmax.f32 %v3679_v62, 0.0  ;;  %v937_v4 = vadd.f32 %v8306_v48, %v936_v0  ;;  %v2422_v5 = vpack.c.bf16 %v2394_v1, %v2394_v1 }
 0x225   : > { %v2617_v6 = vpack.c.bf16 %v2589_v2, %v2589_v2  ;;  %v2785_v11 = vld [vmem:[#allocation3 + $0x71] sm:$0xff] }
 0x226   : > { %3777 = vst.msk [vmem:[#allocation5] sm:$0xff] %vm3776_vm9, %v3748_v3  ;;  %v1106_v10 = vmax.f32 %v937_v4, 0.0  ;;  %6444 = vmatmul.msk.bf16.gmra.mxu0 %vm647_vm3, %v7534_v22  ;;  %2489 = vrot.lane.b32.xlu1 %v2422_v5, %s7891_s20  ;;  %v2813_v23 = vpack.c.bf16 %v2785_v11, %v2785_v11 }
 0x227   : > { %2683 = vrot.lane.b32.xlu2 %v2617_v6, %s7892_s21  ;;  %2015 = vrot.lane.b32.xlu0 %v2422_v5, %s7892_s21  ;;  %v3601_v13 = vpop.f32.mrf.mxu2  ;;  %3036 = vst.msk [vmem:[#allocation4 + $0x74] sm:$0xf] %vm1679_vm5, %v2422_v5 }
 0x228   : > { %1205 = vst.msk [vmem:[#allocation2 + $0x190] sm:$0xff] %vm1154_vm0, %v1106_v10  ;;  %v3602_v16 = vadd.f32 %v3601_v13, %v3523_v9  ;;  %v2482_v18 = vpop.permute.xlu1 %2481 }
 0x229   : > { %2558 = vst.msk [vmem:[#allocation4 + $0x58] sm:$0xf] %vm1876_vm6, %v2482_v18  ;;  %v2008_v21 = vpop.permute.xlu0 %2007  ;;  %v2010_v40 = vpop.permute.xlu2 %2009 }
 0x22a   : > { %v3681_v25 = vadd.f32 %v3680_v19, %v3602_v16  ;;  %2083 = vst.msk [vmem:[#allocation4 + $0x6c] sm:$0xf] %vm2073_vm7, %v2008_v21  ;;  %v3525_v16 = vpop.f32.mrf.mxu1 }
 0x22b   : > { %2280 = vst.msk [vmem:[#allocation4 + $0x6c] sm:$0xf] %vm2270_vm8, %v2205_v15  ;;  %v938_v26 = vpop.f32.mrf.mxu0  ;;  %v2786_v27 = vld [vmem:[#allocation3 + $0x79] sm:$0xff] }
 0x22c   : > { %v1919_v28 = vld [vmem:[#allocation3 + $0x72] sm:$0xff]  ;;  %v3749_v29 = vmax.f32 %v3681_v25, 0.0  ;;  %v939_v30 = vadd.f32 %v8306_v48, %v938_v26  ;;  %v2814_v31 = vpack.c.bf16 %v2786_v27, %v2786_v27  ;;  %1694 = vst.msk [vmem:[#allocation4 + $0xa8] sm:$0xf] %vm1679_vm5, %v2617_v6 }
 0x22d   : > { %v2115_v32 = vld [vmem:[#allocation3 + $0x78] sm:$0xff]  ;;  %v1947_v33 = vpack.c.bf16 %v1919_v28, %v1919_v28  ;;  %2367 = vst.msk [vmem:[#allocation4 + $0x94] sm:$0xf] %vm1679_vm5, %v2813_v23  ;;  %v3526_v28 = vadd.f32 %v8552_v42, %v3525_v16 }
 0x22e   : > { %3778 = vst.msk [vmem:[#allocation5 + $0x8] sm:$0xff] %vm3776_vm9, %v3749_v29  ;;  %v1107_v34 = vmax.f32 %v939_v30, 0.0  ;;  %2879 = vrot.lane.b32.xlu1 %v2813_v23, %s7893_s22  ;;  %v7565_v36 = vld [vmem:[#allocation4 + $0x70] sm:$0xf0]  ;;  %v2143_v38 = vpack.c.bf16 %v2115_v32, %v2115_v32 }
 0x22f   : > { %2881 = vrot.lane.b32.xlu2 %v2814_v31, %s7893_s22  ;;  %1820 = vrot.lane.b32.xlu0 %v2813_v23, %s7891_s20  ;;  %v6519_v48 = vor.u32 %v7565_v36, %v6518_v35  ;;  %3037 = vst.msk [vmem:[#allocation4 + $0x80] sm:$0xf] %vm1679_vm5, %v1947_v33  ;;  %v1456_v5 = vld [vmem:[#allocation2 + $0x188] ss:$2 sm:$0xff] }
 0x230   : > { %1206 = vst.msk [vmem:[#allocation2 + $0x198] sm:$0xff] %vm1154_vm0, %v1107_v34  ;;  %v2872_v37 = vpop.permute.xlu1 %2871 }
 0x231   : > { %6704 = vmatmul.msk.bf16.gmra.mxu3 %vm1154_vm0, %v6519_v48  ;;  %2949 = vst.msk [vmem:[#allocation4 + $0x4c] sm:$0xf] %vm2270_vm8, %v2872_v37  ;;  %v1813_v39 = vpop.permute.xlu0 %1812 }
 0x232   : > { %1887 = vst.msk [vmem:[#allocation4 + $0x78] sm:$0xf] %vm1876_vm6, %v1813_v39  ;;  %v7564_v58 = vld [vmem:[#allocation4 + $0x68] sm:$0xf0] }
 0x233   : > { %2084 = vst.msk [vmem:[#allocation4 + $0x78] sm:$0xf] %vm2073_vm7, %v2010_v40  ;;  %v941_v43 = vpop.f32.mrf.mxu0  ;;  %v3527_v40 = vpop.f32.mrf.mxu1 }
 0x234   : > { %v942_v46 = vadd.f32 %v8591_v44, %v941_v43  ;;  %1695 = vst.msk [vmem:[#allocation4 + $0xb4] sm:$0xf] %vm1679_vm5, %v2143_v38 }
 0x235   : > { %2368 = vst.msk [vmem:[#allocation4 + $0xa0] sm:$0xf] %vm1679_vm5, %v2814_v31  ;;  %v3805_v16 = vld [vmem:[#allocation5] ss:$2 sm:$0x7f] }
 0x236   : > { %v1108_v47 = vmax.f32 %v942_v46, 0.0  ;;  %6445 = vmatmul.msk.bf16.gmra.mxu0 %vm647_vm3, %v7535_v41  ;;  %2210 = vrot.lane.b32.xlu1 %v2617_v6, %s7893_s22  ;;  %v1460_v6 = vld [vmem:[#allocation2 + $0x189] ss:$2 sm:$0xff] }
 0x237   : > { %2212 = vrot.lane.b32.xlu2 %v2143_v38, %s7893_s22  ;;  %2685 = vrot.lane.b32.xlu0 %v2143_v38, %s7892_s21  ;;  %v1463_v13 = vmax.f32 %v1456_v5, %v1460_v6 }
 0x238   : > { %1207 = vst.msk [vmem:[#allocation2 + $0x1a0] sm:$0xff] %vm1154_vm0, %v1108_v47  ;;  %v2203_v49 = vpop.permute.xlu1 %2202  ;;  %v7560_v61 = vld [vmem:[#allocation4 + $0x4c] sm:$0xf] }
 0x239   : > { %2279 = vst.msk [vmem:[#allocation4 + $0x60] sm:$0xf] %vm2270_vm8, %v2203_v49  ;;  %v2678_v50 = vpop.permute.xlu0 %2677 }
 0x23a   : > { %2754 = vst.msk [vmem:[#allocation4 + $0x58] sm:$0xf] %vm2073_vm7, %v2678_v50 }
 0x23b   : > { %2950 = vst.msk [vmem:[#allocation4 + $0x58] sm:$0xf] %vm2270_vm8, %v8557_v51  ;;  %v943_v52 = vpop.f32.mrf.mxu0  ;;  %v7536_v51 = vld [vmem:[%s7964_s17 + $0x118] sm:$0xff] }
 0x23c   : > { %v944_v53 = vadd.f32 %v8591_v44, %v943_v52  ;;  %v3528_v52 = vadd.f32 %v8552_v42, %v3527_v40 }
 0x23e   : > { %v1109_v55 = vmax.f32 %v944_v53, 0.0  ;;  %1822 = vrot.lane.b32.xlu1 %v2814_v31, %s7891_s20  ;;  %v3683_v31 = vpop.f32.mrf.mxu3 }
 0x23f   : > { %2017 = vrot.lane.b32.xlu2 %v1947_v33, %s7892_s21  ;;  %2491 = vrot.lane.b32.xlu0 %v1947_v33, %s7891_s20  ;;  %v1458_v23 = vld [vmem:[#allocation2 + $0x198] ss:$2 sm:$0x3f]  ;;  %v1462_v25 = vld [vmem:[#allocation2 + $0x199] ss:$2 sm:$0x3f] }
 0x240   : > { %1208 = vst.msk [vmem:[#allocation2 + $0x1a8] sm:$0xff] %vm1154_vm0, %v1109_v55  ;;  %v1815_v56 = vpop.permute.xlu1 %1814  ;;  %v6510_v57 = vld [vmem:[#allocation4 + $0x60] sm:$0xf]  ;;  %v1464_v32 = vmax.f32 %v1458_v23, %v1462_v25 }
 0x241   : > { %1888 = vst.msk [vmem:[#allocation4 + $0x84] sm:$0xf] %vm1876_vm6, %v1815_v56  ;;  %v2484_v59 = vpop.permute.xlu0 %2483  ;;  %v6511_v60 = vor.u32 %v7564_v58, %v6510_v57 }
 0x242   : > { %2559 = vst.msk [vmem:[#allocation4 + $0x64] sm:$0xf] %vm1876_vm6, %v2484_v59  ;;  %v6500_v62 = vld [vmem:[#allocation4 + $0x54] sm:$0xf0] }
 0x243   : > { %v946_v22 = vpop.f32.mrf.mxu0  ;;  %3539 = vmatmul.bf16.gmra.mxu1 %v6511_v60  ;;  %v6503_v63 = vor.u32 %v7560_v61, %v6500_v62 }
 0x244   : > { %v947_v0 = vadd.f32 %v8591_v44, %v946_v22 }
 0x245   : > { %3613 = vmatmul.bf16.gmra.mxu2 %v6503_v63 }
 0x246   : > { %v1110_v1 = vmax.f32 %v947_v0, 0.0  ;;  %6446 = vmatmul.msk.bf16.gmra.mxu0 %vm647_vm3, %v7536_v51  ;;  %v3685_v60 = vpop.f32.mrf.mxu3 }
 0x248   : > { %1209 = vst.msk [vmem:[#allocation2 + $0x1b0] sm:$0xff] %vm1154_vm0, %v1110_v1  ;;  %v6530_v1 = vld [vmem:[#allocation4 + $0x80] sm:$0xf] }
 0x249   : > { %v2680_v2 = vpop.permute.xlu2 %2679 }
 0x24a   : > { %2755 = vst.msk [vmem:[#allocation4 + $0x64] sm:$0xf] %vm2073_vm7, %v2680_v2 }
 0x24b   : > { %v948_v3 = vpop.f32.mrf.mxu0 }
 0x24c   : > { %v949_v4 = vadd.f32 %v8591_v44, %v948_v3 }
 0x24e   : > { %v1111_v9 = vmax.f32 %v949_v4, 0.0 }
 0x24f   : > { %v1466_v10 = vld [vmem:[#allocation2 + $0x1a4] ss:$2 sm:$0xff]  ;;  %v1470_v11 = vld [vmem:[#allocation2 + $0x1a5] ss:$2 sm:$0xff] }
 0x250   : > { %v1473_v15 = vmax.f32 %v1466_v10, %v1470_v11  ;;  %1210 = vst.msk [vmem:[#allocation2 + $0x1b8] sm:$0xff] %vm1154_vm0, %v1111_v9 }
 0x251   : > { %v8621_v26 = vpop.permute.xlu2 %2877 }
 0x252   : > { %v1475_v18 = vmax.f32 %v1463_v13, %v1473_v15 }
 0x253   : > { %v951_v19 = vpop.f32.mrf.mxu0 }
 0x254   : > { %1477 = vst.msk [vmem:[#allocation3 + $0x81] sm:$0xff] %vm1154_vm0, %v1475_v18  ;;  %v952_v21 = vadd.f32 %v8591_v44, %v951_v19  ;;  %v3807_v19 = vld [vmem:[#allocation5 + $0x1] ss:$2 sm:$0x7f] }
 0x256   : > { %v1112_v27 = vmax.f32 %v952_v21, 0.0 }
 0x257   : > { %v1468_v29 = vld [vmem:[#allocation2 + $0x1b4] ss:$2 sm:$0x3f]  ;;  %v1472_v30 = vld [vmem:[#allocation2 + $0x1b5] ss:$2 sm:$0x3f] }
 0x258   : > { %v1474_v33 = vmax.f32 %v1468_v29, %v1472_v30  ;;  %1211 = vst.msk [vmem:[#allocation2 + $0x1c0] sm:$0xff] %vm1154_vm0, %v1112_v27  ;;  %v3604_v34 = vpop.f32.mrf.mxu2  ;;  %v3808_v27 = vmax.f32 %v3805_v16, %v3807_v19  ;;  %v3815_v30 = vlaneseq }
 0x259   : > { %v3605_v35 = vadd.f32 %v3604_v34, %v3526_v28  ;;  %v2209_v53 = vpop.permute.xlu2 %2208 }
 0x25a   : > { %v1476_v36 = vmax.f32 %v1464_v32, %v1474_v33  ;;  %vm8662_vm10 = vcmp.lt.s32.totalorder %v3815_v30, 64  ;;  %vm3827_vm11 = vcmp.ge.s32.totalorder %v3815_v30, 64  ;;  %vm3828_vm12 = vcmp.lt.s32.totalorder %v3815_v30, 128  ;;  %v7621_v30 = vld [vmem:[#allocation7 + $0x50] sm:$0xff] }
 0x25b   : > { %v3684_v48 = vadd.f32 %v3683_v31, %v3605_v35  ;;  %v953_v37 = vpop.f32.mrf.mxu0  ;;  %v2396_v38 = vld [vmem:[#allocation3 + $0x7a] sm:$0xff]  ;;  %vm9106_vm13 = vmand %vm3827_vm11, %vm3828_vm12 }
 0x25c   : > { %v2591_v39 = vld [vmem:[#allocation3 + $0x80] sm:$0xff]  ;;  %1478 = vst.msk [vmem:[#allocation3 + $0x89] sm:$0x3f] %vm1309_vm4, %v1476_v36  ;;  %v954_v41 = vadd.f32 %v8591_v44, %v953_v37  ;;  %v2424_v43 = vpack.c.bf16 %v2396_v38, %v2396_v38 }
 0x25d   : > { %v2619_v46 = vpack.c.bf16 %v2591_v39, %v2591_v39  ;;  %v3750_v47 = vmax.f32 %v3684_v48, 0.0  ;;  %v2787_v50 = vld [vmem:[#allocation3 + $0x81] sm:$0xff]  ;;  %v7735_v35 = vld [vmem:[#allocation7 + $0x3e0] sm:$0xff] }
 0x25e   : > { %v1113_v49 = vmax.f32 %v954_v41, 0.0  ;;  %2493 = vrot.lane.b32.xlu1 %v2424_v43, %s7891_s20  ;;  %3038 = vst.msk [vmem:[#allocation4 + $0x8c] sm:$0xf] %vm1679_vm5, %v2424_v43  ;;  %2019 = vrot.lane.b32.xlu0 %v2424_v43, %s7892_s21  ;;  %v2815_v59 = vpack.c.bf16 %v2787_v50, %v2787_v50 }
 0x25f   : > { %2687 = vrot.lane.b32.xlu2 %v2619_v46, %s7892_s21  ;;  %3779 = vst.msk [vmem:[#allocation5 + $0x10] sm:$0xff] %vm3776_vm9, %v3750_v47 }
 0x260   : > { %1212 = vst.msk [vmem:[#allocation2 + $0x1c8] sm:$0xff] %vm1154_vm0, %v1113_v49  ;;  %v3606_v55 = vpop.f32.mrf.mxu2  ;;  %v2486_v56 = vpop.permute.xlu1 %2485 }
 0x261   : > { %v3607_v57 = vadd.f32 %v3606_v55, %v3528_v52  ;;  %2560 = vst.msk [vmem:[#allocation4 + $0x70] sm:$0xf] %vm1876_vm6, %v2486_v56  ;;  %v2012_v58 = vpop.permute.xlu0 %2011  ;;  %v2014_v15 = vpop.permute.xlu2 %2013 }
 0x262   : > { %2085 = vst.msk [vmem:[#allocation4 + $0x84] sm:$0xf] %vm2073_vm7, %v2012_v58 }
 0x263   : > { %v3686_v51 = vadd.f32 %v3685_v60, %v3607_v57  ;;  %2282 = vst.msk [vmem:[#allocation4 + $0x84] sm:$0xf] %vm2270_vm8, %v2209_v53  ;;  %v956_v61 = vpop.f32.mrf.mxu0  ;;  %v2788_v62 = vld [vmem:[#allocation3 + $0x89] sm:$0xff] }
 0x264   : > { %v1921_v22 = vld [vmem:[#allocation3 + $0x82] sm:$0xff]  ;;  %v957_v63 = vadd.f32 %v8591_v44, %v956_v61  ;;  %v2816_v0 = vpack.c.bf16 %v2788_v62, %v2788_v62  ;;  %1696 = vst.msk [vmem:[#allocation4 + $0xc0] sm:$0xf] %vm1679_vm5, %v2619_v46 }
 0x265   : > { %v1949_v2 = vpack.c.bf16 %v1921_v22, %v1921_v22  ;;  %v3751_v3 = vmax.f32 %v3686_v51, 0.0  ;;  %v7568_v4 = vld [vmem:[#allocation4 + $0x88] sm:$0xf0]  ;;  %v2117_v5 = vld [vmem:[#allocation3 + $0x88] sm:$0xff]  ;;  %2369 = vst.msk [vmem:[#allocation4 + $0xac] sm:$0xf] %vm1679_vm5, %v2815_v59 }
 0x266   : > { %v1114_v6 = vmax.f32 %v957_v63, 0.0  ;;  %2883 = vrot.lane.b32.xlu1 %v2815_v59, %s7893_s22  ;;  %v6531_v9 = vor.u32 %v7568_v4, %v6530_v1  ;;  %1824 = vrot.lane.b32.xlu0 %v2815_v59, %s7891_s20  ;;  %v2145_v11 = vpack.c.bf16 %v2117_v5, %v2117_v5  ;;  %2370 = vst.msk [vmem:[#allocation4 + $0xb8] sm:$0xf] %vm1679_vm5, %v2816_v0  ;;  %v3530_v63 = vpop.f32.mrf.mxu1 }
 0x267   : > { %2885 = vrot.lane.b32.xlu2 %v2816_v0, %s7893_s22  ;;  %3039 = vst.msk [vmem:[#allocation4 + $0x98] sm:$0xf] %vm1679_vm5, %v1949_v2  ;;  %v1480_v58 = vld [vmem:[#allocation2 + $0x1c0] ss:$2 sm:$0xff]  ;;  %v1484_v59 = vld [vmem:[#allocation2 + $0x1c1] ss:$2 sm:$0xff] }
 0x268   : > { %3780 = vst.msk [vmem:[#allocation5 + $0x18] sm:$0xff] %vm3776_vm9, %v3751_v3  ;;  %6705 = vmatmul.msk.bf16.gmra.mxu3 %vm1154_vm0, %v6531_v9  ;;  %v2876_v10 = vpop.permute.xlu1 %2875  ;;  %v1487_v62 = vmax.f32 %v1480_v58, %v1484_v59 }
 0x269   : > { %1213 = vst.msk [vmem:[#allocation2 + $0x1d0] sm:$0xff] %vm1154_vm0, %v1114_v6  ;;  %v1817_v13 = vpop.permute.xlu0 %1816 }
 0x26a   : > { %2951 = vst.msk [vmem:[#allocation4 + $0x64] sm:$0xf] %vm2270_vm8, %v2876_v10  ;;  %v7567_v40 = vld [vmem:[#allocation4 + $0x80] sm:$0xf0]  ;;  %v3531_v10 = vadd.f32 %v8552_v42, %v3530_v63 }
 0x26b   : > { %1889 = vst.msk [vmem:[#allocation4 + $0x90] sm:$0xf] %vm1876_vm6, %v1817_v13  ;;  %v958_v18 = vpop.f32.mrf.mxu0 }
 0x26c   : > { %2086 = vst.msk [vmem:[#allocation4 + $0x90] sm:$0xf] %vm2073_vm7, %v2014_v15  ;;  %v959_v21 = vadd.f32 %v8591_v44, %v958_v18  ;;  %v3688_v15 = vpop.f32.mrf.mxu3 }
 0x26d   : > { %1697 = vst.msk [vmem:[#allocation4 + $0xcc] sm:$0xf] %vm1679_vm5, %v2145_v11 }
 0x26e   : > { %2214 = vrot.lane.b32.xlu1 %v2619_v46, %s7893_s22  ;;  %v1115_v29 = vmax.f32 %v959_v21, 0.0  ;;  %2689 = vrot.lane.b32.xlu0 %v2145_v11, %s7892_s21 }
 0x26f   : > { %v3810_v23 = vld [vmem:[#allocation5 + $0x10] ss:$2 sm:$0x7f]  ;;  %v3812_v25 = vld [vmem:[#allocation5 + $0x11] ss:$2 sm:$0x7f]  ;;  %2216 = vrot.lane.b32.xlu2 %v2145_v11, %s7893_s22 }
 0x270   : > { %v3813_v28 = vmax.f32 %v3810_v23, %v3812_v25  ;;  %v2207_v31 = vpop.permute.xlu1 %2206  ;;  %1214 = vst.msk [vmem:[#allocation2 + $0x1d8] sm:$0xff] %vm1154_vm0, %v1115_v29 }
 0x271   : > { %v2682_v33 = vpop.permute.xlu0 %2681  ;;  %2281 = vst.msk [vmem:[#allocation4 + $0x78] sm:$0xf] %vm2270_vm8, %v2207_v31  ;;  %v7563_v47 = vld [vmem:[#allocation4 + $0x64] sm:$0xf] }
 0x272   : > { %v8656_v32 = vmax.f32 %v3808_v27, %v3813_v28  ;;  %2756 = vst.msk [vmem:[#allocation4 + $0x70] sm:$0xf] %vm2073_vm7, %v2682_v33  ;;  %v3532_v33 = vpop.f32.mrf.mxu1 }
 0x273   : > { %v961_v34 = vpop.f32.mrf.mxu0  ;;  %2952 = vst.msk [vmem:[#allocation4 + $0x70] sm:$0xf] %vm2270_vm8, %v8621_v26 }
 0x274   : > { %3821 = vst [vmem:[#allocation1] sm:$0xff] %v8656_v32  ;;  %v962_v36 = vadd.f32 %v8591_v44, %v961_v34 }
 0x275   : > { %3819 = vst.msk [vmem:[#allocation6] sm:$0x1] %vm8662_vm10, %v8656_v32 }
 0x276   : > { %v1116_v48 = vmax.f32 %v962_v36, 0.0  ;;  %1826 = vrot.lane.b32.xlu1 %v2816_v0, %s7891_s20  ;;  %2495 = vrot.lane.b32.xlu0 %v1949_v2, %s7891_s20 }
 0x277   : > { %2021 = vrot.lane.b32.xlu2 %v1949_v2, %s7892_s21  ;;  %v1482_v4 = vld [vmem:[#allocation2 + $0x1d0] ss:$2 sm:$0x3f]  ;;  %v1486_v5 = vld [vmem:[#allocation2 + $0x1d1] ss:$2 sm:$0x3f] }
 0x278   : > { %v1819_v37 = vpop.permute.xlu1 %1818  ;;  %1215 = vst.msk [vmem:[#allocation2 + $0x1e0] sm:$0xff] %vm1154_vm0, %v1116_v48  ;;  %v6522_v39 = vld [vmem:[#allocation4 + $0x78] sm:$0xf]  ;;  %v1488_v16 = vmax.f32 %v1482_v4, %v1486_v5 }
 0x279   : > { %v2488_v38 = vpop.permute.xlu0 %2487  ;;  %1890 = vst.msk [vmem:[#allocation4 + $0x9c] sm:$0xf] %vm1876_vm6, %v1819_v37  ;;  %v6523_v26 = vor.u32 %v7567_v40, %v6522_v39  ;;  %v3533_v39 = vadd.f32 %v8552_v42, %v3532_v33 }
 0x27a   : > { %2561 = vst.msk [vmem:[#allocation4 + $0x7c] sm:$0xf] %vm1876_vm6, %v2488_v38  ;;  %v6512_v49 = vld [vmem:[#allocation4 + $0x6c] sm:$0xf0] }
 0x27b   : > { %v8677_v41 = vld [vmem:[#allocation1 + $0x1] ss:$9 sm:$0xff]  ;;  %v963_v43 = vpop.f32.mrf.mxu0  ;;  %3544 = vmatmul.bf16.gmra.mxu1 %v6523_v26  ;;  %v6515_v50 = vor.u32 %v7563_v47, %v6512_v49 }
 0x27c   : > { %3831 = vst [vmem:[#allocation1] sm:$0xff] %v8656_v32  ;;  %v964_v46 = vadd.f32 %v8591_v44, %v963_v43 }
 0x27d   : > { %3618 = vmatmul.bf16.gmra.mxu2 %v6515_v50  ;;  %v3690_v50 = vpop.f32.mrf.mxu3 }
 0x27e   : > { %v1117_v52 = vmax.f32 %v964_v46, 0.0 }
 0x280   : > { %1216 = vst.msk [vmem:[#allocation2 + $0x1e8] sm:$0xff] %vm1154_vm0, %v1117_v52 }
 0x281   : > { %v2684_v53 = vpop.permute.xlu2 %2683 }
 0x282   : > { %2757 = vst.msk [vmem:[#allocation4 + $0x7c] sm:$0xf] %vm2073_vm7, %v2684_v53 }
 0x283   : > { %v3833_v55 = vld [vmem:[#allocation1 + $0x2] ss:$9 sm:$0xff]  ;;  %v966_v56 = vpop.f32.mrf.mxu0 }
 0x284   : > { %3836 = vst [vmem:[#allocation1] sm:$0xff] %v8656_v32  ;;  %v967_v57 = vadd.f32 %v8591_v44, %v966_v56 }
 0x285   : > { %3835 = vst.msk [vmem:[#allocation6 + $0x1] sm:$0x1] %vm8662_vm10, %v3833_v55 }
 0x286   : > { %v1118_v60 = vmax.f32 %v967_v57, 0.0 }
 0x287   : > { %v1490_v51 = vld [vmem:[#allocation2 + $0x1dc] ss:$2 sm:$0xff]  ;;  %v1494_v61 = vld [vmem:[#allocation2 + $0x1dd] ss:$2 sm:$0xff] }
 0x288   : > { %v1497_v22 = vmax.f32 %v1490_v51, %v1494_v61  ;;  %1217 = vst.msk [vmem:[#allocation2 + $0x1f0] sm:$0xff] %vm1154_vm0, %v1118_v60  ;;  %v6542_v51 = vld [vmem:[#allocation4 + $0x98] sm:$0xf] }
 0x289   : > { %v8695_v6 = vpop.permute.xlu2 %2881 }
 0x28a   : > { %v1499_v1 = vmax.f32 %v1487_v62, %v1497_v22 }
 0x28b   : > { %v8690_v0 = vld [vmem:[#allocation1 + $0x3] ss:$9 sm:$0xff]  ;;  %v968_v2 = vpop.f32.mrf.mxu0 }
 0x28c   : > { %3843 = vst [vmem:[#allocation1] sm:$0xff] %v8656_v32  ;;  %v969_v3 = vadd.f32 %v8591_v44, %v968_v2 }
 0x28d   : > { %1501 = vst.msk [vmem:[#allocation3 + $0x91] sm:$0xff] %vm1154_vm0, %v1499_v1 }
 0x28e   : > { %v1119_v9 = vmax.f32 %v969_v3, 0.0 }
 0x28f   : > { %v1492_v11 = vld [vmem:[#allocation2 + $0x1ec] ss:$2 sm:$0x3f]  ;;  %v1496_v13 = vld [vmem:[#allocation2 + $0x1ed] ss:$2 sm:$0x3f] }
 0x290   : > { %v1498_v18 = vmax.f32 %v1492_v11, %v1496_v13  ;;  %1218 = vst.msk [vmem:[#allocation2 + $0x1f8] sm:$0xff] %vm1154_vm0, %v1119_v9  ;;  %v3609_v19 = vpop.f32.mrf.mxu2 }
 0x291   : > { %v3610_v21 = vadd.f32 %v3609_v19, %v3531_v10  ;;  %v2213_v40 = vpop.permute.xlu2 %2212 }
 0x292   : > { %v1500_v25 = vmax.f32 %v1488_v16, %v1498_v18 }
 0x293   : > { %v3845_v23 = vld [vmem:[#allocation1 + $0x4] ss:$9 sm:$0xff]  ;;  %v3689_v27 = vadd.f32 %v3688_v15, %v3610_v21  ;;  %v971_v28 = vpop.f32.mrf.mxu0 }
 0x294   : > { %3848 = vst [vmem:[#allocation1] sm:$0xff] %v8656_v32  ;;  %v2398_v29 = vld [vmem:[#allocation3 + $0x8a] sm:$0xff]  ;;  %v972_v34 = vadd.f32 %v8591_v44, %v971_v28 }
 0x295   : > { %v2593_v31 = vld [vmem:[#allocation3 + $0x90] sm:$0xff]  ;;  %1502 = vst.msk [vmem:[#allocation3 + $0x99] sm:$0x3f] %vm1309_vm4, %v1500_v25  ;;  %v2426_v36 = vpack.c.bf16 %v2398_v29, %v2398_v29  ;;  %v3752_v37 = vmax.f32 %v3689_v27, 0.0 }
 0x296   : > { %v2621_v48 = vpack.c.bf16 %v2593_v31, %v2593_v31  ;;  %3847 = vst.msk [vmem:[#allocation6 + $0x2] sm:$0x1] %vm8662_vm10, %v3845_v23  ;;  %v1120_v38 = vmax.f32 %v972_v34, 0.0  ;;  %v2789_v49 = vld [vmem:[#allocation3 + $0x91] sm:$0xff] }
 0x297   : > { %2497 = vrot.lane.b32.xlu1 %v2426_v36, %s7891_s20  ;;  %3040 = vst.msk [vmem:[#allocation4 + $0xa4] sm:$0xf] %vm1679_vm5, %v2426_v36  ;;  %2023 = vrot.lane.b32.xlu0 %v2426_v36, %s7892_s21  ;;  %v2817_v59 = vpack.c.bf16 %v2789_v49, %v2789_v49 }
 0x298   : > { %2691 = vrot.lane.b32.xlu2 %v2621_v48, %s7892_s21  ;;  %3781 = vst.msk [vmem:[#allocation5 + $0x20] sm:$0xff] %vm3776_vm9, %v3752_v37  ;;  %v3611_v26 = vpop.f32.mrf.mxu2  ;;  %v2490_v43 = vpop.permute.xlu1 %2489 }
 0x299   : > { %1219 = vst.msk [vmem:[#allocation2 + $0x200] sm:$0xff] %vm1154_vm0, %v1120_v38  ;;  %v3612_v46 = vadd.f32 %v3611_v26, %v3533_v39  ;;  %v2016_v47 = vpop.permute.xlu0 %2015  ;;  %v2018_v5 = vpop.permute.xlu2 %2017 }
 0x29a   : > { %2562 = vst.msk [vmem:[#allocation4 + $0x88] sm:$0xf] %vm1876_vm6, %v2490_v43 }
 0x29b   : > { %v8712_v52 = vld [vmem:[#allocation1 + $0x5] ss:$9 sm:$0xff]  ;;  %2087 = vst.msk [vmem:[#allocation4 + $0x9c] sm:$0xf] %vm2073_vm7, %v2016_v47  ;;  %v3691_v53 = vadd.f32 %v3690_v50, %v3612_v46  ;;  %v973_v55 = vpop.f32.mrf.mxu0 }
 0x29c   : > { %3855 = vst [vmem:[#allocation1] sm:$0xff] %v8656_v32  ;;  %v2790_v56 = vld [vmem:[#allocation3 + $0x99] sm:$0xff]  ;;  %v974_v58 = vadd.f32 %v8591_v44, %v973_v55 }
 0x29d   : > { %v1923_v57 = vld [vmem:[#allocation3 + $0x92] sm:$0xff]  ;;  %2284 = vst.msk [vmem:[#allocation4 + $0x9c] sm:$0xf] %vm2270_vm8, %v2213_v40  ;;  %v2818_v60 = vpack.c.bf16 %v2790_v56, %v2790_v56  ;;  %v3753_v62 = vmax.f32 %v3691_v53, 0.0  ;;  %v3535_v53 = vpop.f32.mrf.mxu1 }
 0x29e   : > { %v1951_v61 = vpack.c.bf16 %v1923_v57, %v1923_v57  ;;  %v7571_v22 = vld [vmem:[#allocation4 + $0xa0] sm:$0xf0]  ;;  %v2119_v63 = vld [vmem:[#allocation3 + $0x98] sm:$0xff]  ;;  %1698 = vst.msk [vmem:[#allocation4 + $0xd8] sm:$0xf] %vm1679_vm5, %v2621_v48  ;;  %v1121_v1 = vmax.f32 %v974_v58, 0.0 }
 0x29f   : > { %2887 = vrot.lane.b32.xlu1 %v2817_v59, %s7893_s22  ;;  %v6543_v32 = vor.u32 %v7571_v22, %v6542_v51  ;;  %3782 = vst.msk [vmem:[#allocation5 + $0x28] sm:$0xff] %vm3776_vm9, %v3753_v62  ;;  %1828 = vrot.lane.b32.xlu0 %v2817_v59, %s7891_s20  ;;  %v2147_v3 = vpack.c.bf16 %v2119_v63, %v2119_v63  ;;  %v3693_v63 = vpop.f32.mrf.mxu3 }
 0x2a0   : > { %2889 = vrot.lane.b32.xlu2 %v2818_v60, %s7893_s22  ;;  %3041 = vst.msk [vmem:[#allocation4 + $0xb0] sm:$0xf] %vm1679_vm5, %v1951_v61  ;;  %v2880_v2 = vpop.permute.xlu1 %2879  ;;  %v1504_v40 = vld [vmem:[#allocation2 + $0x1f8] ss:$2 sm:$0xff]  ;;  %v1508_v26 = vld [vmem:[#allocation2 + $0x1f9] ss:$2 sm:$0xff] }
 0x2a1   : > { %1220 = vst.msk [vmem:[#allocation2 + $0x208] sm:$0xff] %vm1154_vm0, %v1121_v1  ;;  %6706 = vmatmul.msk.bf16.gmra.mxu3 %vm1154_vm0, %v6543_v32  ;;  %v1821_v4 = vpop.permute.xlu0 %1820  ;;  %v1511_v49 = vmax.f32 %v1504_v40, %v1508_v26  ;;  %v2407_v26 = vld [vmem:[#allocation3 + $0xd2] sm:$0xff] }
 0x2a2   : > { %2953 = vst.msk [vmem:[#allocation4 + $0x7c] sm:$0xf] %vm2270_vm8, %v2880_v2 }
 0x2a3   : > { %1891 = vst.msk [vmem:[#allocation4 + $0xa8] sm:$0xf] %vm1876_vm6, %v1821_v4  ;;  %v976_v9 = vpop.f32.mrf.mxu0  ;;  %v3857_v10 = vld [vmem:[#allocation1 + $0x6] ss:$9 sm:$0xff] }
 0x2a4   : > { %2088 = vst.msk [vmem:[#allocation4 + $0xa8] sm:$0xf] %vm2073_vm7, %v2018_v5  ;;  %v977_v11 = vadd.f32 %v8591_v44, %v976_v9  ;;  %v7570_v27 = vld [vmem:[#allocation4 + $0x98] sm:$0xf0] }
 0x2a5   : > { %1699 = vst.msk [vmem:[#allocation4 + $0xe4] sm:$0xf] %vm1679_vm5, %v2147_v3 }
 0x2a6   : > { %2371 = vst.msk [vmem:[#allocation4 + $0xc4] sm:$0xf] %vm1679_vm5, %v2817_v59  ;;  %v1122_v13 = vmax.f32 %v977_v11, 0.0 }
 0x2a7   : > { %2218 = vrot.lane.b32.xlu1 %v2621_v48, %s7893_s22  ;;  %2372 = vst.msk [vmem:[#allocation4 + $0xd0] sm:$0xf] %vm1679_vm5, %v2818_v60  ;;  %2693 = vrot.lane.b32.xlu0 %v2147_v3, %s7892_s21 }
 0x2a8   : > { %2220 = vrot.lane.b32.xlu2 %v2147_v3, %s7893_s22  ;;  %3859 = vst.msk [vmem:[#allocation6 + $0x3] sm:$0x1] %vm8662_vm10, %v3857_v10  ;;  %v2211_v15 = vpop.permute.xlu1 %2210 }
 0x2a9   : > { %1221 = vst.msk [vmem:[#allocation2 + $0x210] sm:$0xff] %vm1154_vm0, %v1122_v13  ;;  %v2686_v16 = vpop.permute.xlu0 %2685  ;;  %v3537_v13 = vpop.f32.mrf.mxu1 }
 0x2aa   : > { %2283 = vst.msk [vmem:[#allocation4 + $0x90] sm:$0xf] %vm2270_vm8, %v2211_v15 }
 0x2ab   : > { %2758 = vst.msk [vmem:[#allocation4 + $0x88] sm:$0xf] %vm2073_vm7, %v2686_v16  ;;  %v978_v18 = vpop.f32.mrf.mxu0 }
 0x2ac   : > { %2954 = vst.msk [vmem:[#allocation4 + $0x88] sm:$0xf] %vm2270_vm8, %v8695_v6  ;;  %v979_v19 = vadd.f32 %v8591_v44, %v978_v18  ;;  %v7566_v6 = vld [vmem:[#allocation4 + $0x7c] sm:$0xf] }
 0x2ae   : > { %v1123_v21 = vmax.f32 %v979_v19, 0.0 }
 0x2af   : > { %1830 = vrot.lane.b32.xlu1 %v2818_v60, %s7891_s20  ;;  %2499 = vrot.lane.b32.xlu0 %v1951_v61, %s7891_s20 }
 0x2b0   : > { %2025 = vrot.lane.b32.xlu2 %v1951_v61, %s7892_s21  ;;  %1222 = vst.msk [vmem:[#allocation2 + $0x218] sm:$0xff] %vm1154_vm0, %v1123_v21  ;;  %v1823_v23 = vpop.permute.xlu1 %1822  ;;  %v1506_v58 = vld [vmem:[#allocation2 + $0x208] ss:$2 sm:$0x3f]  ;;  %v3536_v61 = vadd.f32 %v8552_v42, %v3535_v53 }
 0x2b1   : > { %v6534_v25 = vld [vmem:[#allocation4 + $0x90] sm:$0xf]  ;;  %1892 = vst.msk [vmem:[#allocation4 + $0xb4] sm:$0xf] %vm1876_vm6, %v1823_v23  ;;  %v2492_v28 = vpop.permute.xlu0 %2491 }
 0x2b2   : > { %v6535_v29 = vor.u32 %v7570_v27, %v6534_v25  ;;  %2563 = vst.msk [vmem:[#allocation4 + $0x94] sm:$0xf] %vm1876_vm6, %v2492_v28  ;;  %v1510_v59 = vld [vmem:[#allocation2 + $0x209] ss:$2 sm:$0x3f]  ;;  %v3538_v25 = vadd.f32 %v8552_v42, %v3537_v13 }
 0x2b3   : > { %v6524_v31 = vld [vmem:[#allocation4 + $0x84] sm:$0xf0]  ;;  %v981_v33 = vpop.f32.mrf.mxu0  ;;  %v1512_v1 = vmax.f32 %v1506_v58, %v1510_v59 }
 0x2b4   : > { %3549 = vmatmul.bf16.gmra.mxu1 %v6535_v29  ;;  %v6527_v34 = vor.u32 %v7566_v6, %v6524_v31  ;;  %v982_v36 = vadd.f32 %v8591_v44, %v981_v33  ;;  %v3695_v33 = vpop.f32.mrf.mxu3 }
 0x2b6   : > { %3623 = vmatmul.bf16.gmra.mxu2 %v6527_v34  ;;  %v1124_v48 = vmax.f32 %v982_v36, 0.0  ;;  %v1538_v34 = vld [vmem:[#allocation2 + $0x24c] ss:$2 sm:$0xff]  ;;  %v1542_v36 = vld [vmem:[#allocation2 + $0x24d] ss:$2 sm:$0xff] }
 0x2b8   : > { %1223 = vst.msk [vmem:[#allocation2 + $0x220] sm:$0xff] %vm1154_vm0, %v1124_v48 }
 0x2b9   : > { %v2688_v37 = vpop.permute.xlu2 %2687 }
 0x2ba   : > { %2759 = vst.msk [vmem:[#allocation4 + $0x94] sm:$0xf] %vm2073_vm7, %v2688_v37 }
 0x2bb   : > { %v983_v38 = vpop.f32.mrf.mxu0 }
 0x2bc   : > { %v984_v39 = vadd.f32 %v8591_v44, %v983_v38 }
 0x2be   : > { %v1125_v43 = vmax.f32 %v984_v39, 0.0  ;;  %v6554_v39 = vld [vmem:[#allocation4 + $0xb0] sm:$0xf] }
 0x2bf   : > { %v1514_v46 = vld [vmem:[#allocation2 + $0x214] ss:$2 sm:$0xff]  ;;  %v1518_v47 = vld [vmem:[#allocation2 + $0x215] ss:$2 sm:$0xff] }
 0x2c0   : > { %v1521_v50 = vmax.f32 %v1514_v46, %v1518_v47  ;;  %1224 = vst.msk [vmem:[#allocation2 + $0x228] sm:$0xff] %vm1154_vm0, %v1125_v43  ;;  %v8776_v47 = vpack.c.bf16 %v2407_v26, %v2407_v26 }
 0x2c1   : > { %v8757_v60 = vpop.permute.xlu2 %2885 }
 0x2c2   : > { %v1523_v55 = vmax.f32 %v1511_v49, %v1521_v50  ;;  %v2994_v50 = vld [vmem:[#allocation3 + $0xda] sm:$0xff]  ;;  %3049 = vst.msk [vmem:[#allocation4 + $0x110] sm:$0xf] %vm1679_vm5, %v8776_v47 }
 0x2c3   : > { %v986_v56 = vpop.f32.mrf.mxu0 }
 0x2c4   : > { %1525 = vst.msk [vmem:[#allocation3 + $0xa1] sm:$0xff] %vm1154_vm0, %v1523_v55  ;;  %v987_v57 = vadd.f32 %v8591_v44, %v986_v56 }
 0x2c6   : > { %v1126_v51 = vmax.f32 %v987_v57, 0.0  ;;  %v1545_v57 = vmax.f32 %v1538_v34, %v1542_v36 }
 0x2c7   : > { %v1516_v62 = vld [vmem:[#allocation2 + $0x224] ss:$2 sm:$0x3f]  ;;  %v1520_v22 = vld [vmem:[#allocation2 + $0x225] ss:$2 sm:$0x3f] }
 0x2c8   : > { %v1522_v32 = vmax.f32 %v1516_v62, %v1520_v22  ;;  %1225 = vst.msk [vmem:[#allocation2 + $0x230] sm:$0xff] %vm1154_vm0, %v1126_v51  ;;  %v3614_v2 = vpop.f32.mrf.mxu2 }
 0x2c9   : > { %v3615_v3 = vadd.f32 %v3614_v2, %v3536_v61  ;;  %v2217_v27 = vpop.permute.xlu2 %2216  ;;  %v8789_v61 = vpack.c.bf16 %v2994_v50, %v2994_v50  ;;  %v3863_v2 = vld [vmem:[#allocation5 + $0x21] ss:$2 sm:$0x7f] }
 0x2ca   : > { %v1524_v4 = vmax.f32 %v1512_v1, %v1522_v32  ;;  %v3861_v1 = vld [vmem:[#allocation5 + $0x20] ss:$2 sm:$0x7f]  ;;  %v2797_v32 = vld [vmem:[#allocation3 + $0xd1] sm:$0xff] }
 0x2cb   : > { %v3694_v5 = vadd.f32 %v3693_v63, %v3615_v3  ;;  %v988_v9 = vpop.f32.mrf.mxu0  ;;  %v2400_v10 = vld [vmem:[#allocation3 + $0x9a] sm:$0xff]  ;;  %3050 = vst.msk [vmem:[#allocation4 + $0x11c] sm:$0xf] %vm1679_vm5, %v8789_v61 }
 0x2cc   : > { %v2595_v11 = vld [vmem:[#allocation3 + $0xa0] sm:$0xff]  ;;  %1526 = vst.msk [vmem:[#allocation3 + $0xa9] sm:$0x3f] %vm1309_vm4, %v1524_v4  ;;  %v989_v15 = vadd.f32 %v8591_v44, %v988_v9  ;;  %v2428_v16 = vpack.c.bf16 %v2400_v10, %v2400_v10 }
 0x2cd   : > { %v2623_v18 = vpack.c.bf16 %v2595_v11, %v2595_v11  ;;  %v3754_v19 = vmax.f32 %v3694_v5, 0.0  ;;  %v2791_v23 = vld [vmem:[#allocation3 + $0xa1] sm:$0xff]  ;;  %v8801_v5 = vpack.c.bf16 %v2797_v32, %v2797_v32  ;;  %v3864_v11 = vmax.f32 %v3861_v1, %v3863_v2 }
 0x2ce   : > { %v1127_v21 = vmax.f32 %v989_v15, 0.0  ;;  %2501 = vrot.lane.b32.xlu1 %v2428_v16, %s7891_s20  ;;  %3042 = vst.msk [vmem:[#allocation4 + $0xbc] sm:$0xf] %vm1679_vm5, %v2428_v16  ;;  %2027 = vrot.lane.b32.xlu0 %v2428_v16, %s7892_s21  ;;  %v2819_v31 = vpack.c.bf16 %v2791_v23, %v2791_v23 }
 0x2cf   : > { %2695 = vrot.lane.b32.xlu2 %v2623_v18, %s7892_s21  ;;  %3783 = vst.msk [vmem:[#allocation5 + $0x30] sm:$0xff] %vm3776_vm9, %v3754_v19 }
 0x2d0   : > { %1226 = vst.msk [vmem:[#allocation2 + $0x238] sm:$0xff] %vm1154_vm0, %v1127_v21  ;;  %v3616_v44 = vpop.f32.mrf.mxu2  ;;  %v2494_v28 = vpop.permute.xlu1 %2493 }
 0x2d1   : > { %v3617_v29 = vadd.f32 %v3616_v44, %v3538_v25  ;;  %2564 = vst.msk [vmem:[#allocation4 + $0xa0] sm:$0xf] %vm1876_vm6, %v2494_v28  ;;  %v2020_v6 = vpop.permute.xlu0 %2019  ;;  %v2022_v22 = vpop.permute.xlu2 %2021  ;;  %v2995_v25 = vld [vmem:[#allocation3 + $0xe2] sm:$0xff] }
 0x2d2   : > { %2089 = vst.msk [vmem:[#allocation4 + $0xb4] sm:$0xf] %vm2073_vm7, %v2020_v6 }
 0x2d3   : > { %v3696_v42 = vadd.f32 %v3695_v33, %v3617_v29  ;;  %2286 = vst.msk [vmem:[#allocation4 + $0xb4] sm:$0xf] %vm2270_vm8, %v2217_v27  ;;  %v2792_v48 = vld [vmem:[#allocation3 + $0xa9] sm:$0xff]  ;;  %v8821_v27 = vpack.c.bf16 %v2995_v25, %v2995_v25 }
 0x2d4   : > { %v1925_v37 = vld [vmem:[#allocation3 + $0xa2] sm:$0xff]  ;;  %v2820_v38 = vpack.c.bf16 %v2792_v48, %v2792_v48  ;;  %1700 = vst.msk [vmem:[#allocation4 + $0xf0] sm:$0xf] %vm1679_vm5, %v2623_v18  ;;  %v2798_v48 = vld [vmem:[#allocation3 + $0xd9] sm:$0xff] }
 0x2d5   : > { %v8773_v40 = vpack.c.bf16 %v1925_v37, %v1925_v37  ;;  %v3755_v43 = vmax.f32 %v3696_v42, 0.0  ;;  %v7574_v46 = vld [vmem:[#allocation4 + $0xb8] sm:$0xf0]  ;;  %2373 = vst.msk [vmem:[#allocation4 + $0xdc] sm:$0xf] %vm1679_vm5, %v2819_v31 }
 0x2d6   : > { %2891 = vrot.lane.b32.xlu1 %v2819_v31, %s7893_s22  ;;  %v6555_v49 = vor.u32 %v7574_v46, %v6554_v39  ;;  %1832 = vrot.lane.b32.xlu0 %v2819_v31, %s7891_s20  ;;  %v2121_v56 = vld [vmem:[#allocation3 + $0xa8] sm:$0xff]  ;;  %2374 = vst.msk [vmem:[#allocation4 + $0xe8] sm:$0xf] %vm1679_vm5, %v2820_v38  ;;  %v8841_v46 = vpack.c.bf16 %v2798_v48, %v2798_v48 }
 0x2d7   : > { %2893 = vrot.lane.b32.xlu2 %v2820_v38, %s7893_s22  ;;  %3043 = vst.msk [vmem:[#allocation4 + $0xc8] sm:$0xf] %vm1679_vm5, %v8773_v40  ;;  %v1528_v53 = vld [vmem:[#allocation2 + $0x230] ss:$2 sm:$0xff]  ;;  %v1532_v55 = vld [vmem:[#allocation2 + $0x231] ss:$2 sm:$0xff]  ;;  %v2149_v63 = vpack.c.bf16 %v2121_v56, %v2121_v56 }
 0x2d8   : > { %3784 = vst.msk [vmem:[#allocation5 + $0x38] sm:$0xff] %vm3776_vm9, %v3755_v43  ;;  %v1535_v58 = vmax.f32 %v1528_v53, %v1532_v55  ;;  %6707 = vmatmul.msk.bf16.gmra.mxu3 %vm1154_vm0, %v6555_v49  ;;  %v2884_v59 = vpop.permute.xlu1 %2883  ;;  %v2799_v43 = vld [vmem:[#allocation3 + $0xe1] sm:$0xff]  ;;  %v1649_v55 = vld [vmem:[#allocation3 + $0xd0] sm:$0xff] }
 0x2d9   : > { %2955 = vst.msk [vmem:[#allocation4 + $0x94] sm:$0xf] %vm2270_vm8, %v2884_v59  ;;  %v1825_v51 = vpop.permute.xlu0 %1824  ;;  %v1677_v59 = vpack.c.bf16 %v1649_v55, %v1649_v55 }
 0x2da   : > { %v1547_v62 = vmax.f32 %v1535_v58, %v1545_v57  ;;  %1893 = vst.msk [vmem:[#allocation4 + $0xc0] sm:$0xf] %vm1876_vm6, %v1825_v51  ;;  %v7573_v44 = vld [vmem:[#allocation4 + $0xb0] sm:$0xf0]  ;;  %v8850_v57 = vpack.c.bf16 %v2799_v43, %v2799_v43  ;;  %v1650_v51 = vld [vmem:[#allocation3 + $0xd8] sm:$0xff] }
 0x2db   : > { %2090 = vst.msk [vmem:[#allocation4 + $0xc0] sm:$0xf] %vm2073_vm7, %v2022_v22  ;;  %v2602_v22 = vld [vmem:[#allocation3 + $0xd8] sm:$0xff]  ;;  %v1678_v1 = vpack.c.bf16 %v1650_v51, %v1650_v51 }
 0x2dc   : > { %1549 = vst.msk [vmem:[#allocation3 + $0xb1] sm:$0xff] %vm1154_vm0, %v1547_v62  ;;  %v2601_v62 = vld [vmem:[#allocation3 + $0xd0] sm:$0xff] }
 0x2dd   : > { %1701 = vst.msk [vmem:[#allocation4 + $0xfc] sm:$0xf] %vm1679_vm5, %v2149_v63  ;;  %v8866_v32 = vpack.c.bf16 %v2601_v62, %v2601_v62 }
 0x2de   : > { %2222 = vrot.lane.b32.xlu1 %v2623_v18, %s7893_s22  ;;  %2697 = vrot.lane.b32.xlu0 %v2149_v63, %s7892_s21  ;;  %2379 = vst.msk [vmem:[#allocation4 + $0x124] sm:$0xf] %vm1679_vm5, %v8801_v5  ;;  %v6566_v50 = vld [vmem:[#allocation4 + $0xc8] sm:$0xf] }
 0x2df   : > { %2224 = vrot.lane.b32.xlu2 %v2149_v63, %s7893_s22  ;;  %v3866_v3 = vld [vmem:[#allocation5 + $0x30] ss:$2 sm:$0x7f]  ;;  %v3868_v9 = vld [vmem:[#allocation5 + $0x31] ss:$2 sm:$0x7f] }
 0x2e0   : > { %v2215_v4 = vpop.permute.xlu1 %2214  ;;  %v3869_v13 = vmax.f32 %v3866_v3, %v3868_v9  ;;  %3051 = vst.msk [vmem:[#allocation4 + $0x128] sm:$0xf] %vm1679_vm5, %v8821_v27  ;;  %v7569_v37 = vld [vmem:[#allocation4 + $0x94] sm:$0xf]  ;;  %v2800_v63 = vld [vmem:[#allocation3 + $0xe9] sm:$0xff] }
 0x2e1   : > { %2285 = vst.msk [vmem:[#allocation4 + $0xa8] sm:$0xf] %vm2270_vm8, %v2215_v4  ;;  %v2690_v10 = vpop.permute.xlu0 %2689  ;;  %v8868_v2 = vpack.c.bf16 %v2800_v63, %v2800_v63  ;;  %v8873_v4 = vpack.c.bf16 %v2602_v22, %v2602_v22 }
 0x2e2   : > { %2760 = vst.msk [vmem:[#allocation4 + $0xa0] sm:$0xf] %vm2073_vm7, %v2690_v10  ;;  %v8807_v16 = vmax.f32 %v3864_v11, %v3869_v13  ;;  %v3540_v10 = vpop.f32.mrf.mxu1  ;;  %v7580_v13 = vld [vmem:[#allocation4 + $0xe8] sm:$0xf0] }
 0x2e3   : > { %2956 = vst.msk [vmem:[#allocation4 + $0xa0] sm:$0xf] %vm2270_vm8, %v8757_v60  ;;  %v2402_v15 = vld [vmem:[#allocation3 + $0xaa] sm:$0xff]  ;;  %v2989_v19 = vld [vmem:[#allocation3 + $0xb2] sm:$0xff] }
 0x2e4   : > { %v8809_v18 = vpack.c.bf16 %v2402_v15, %v2402_v15  ;;  %v2598_v21 = vld [vmem:[#allocation3 + $0xb8] sm:$0xff]  ;;  %v8813_v23 = vpack.c.bf16 %v2989_v19, %v2989_v19  ;;  %3876 = vst [vmem:[#allocation1] sm:$0xff] %v8807_v16  ;;  %v2996_v60 = vld [vmem:[#allocation3 + $0xea] sm:$0xff] }
 0x2e5   : > { %v2793_v28 = vld [vmem:[#allocation3 + $0xb1] sm:$0xff]  ;;  %v8827_v29 = vpack.c.bf16 %v2996_v60, %v2996_v60  ;;  %v8829_v34 = vpack.c.bf16 %v2598_v21, %v2598_v21  ;;  %2380 = vst.msk [vmem:[#allocation4 + $0x130] sm:$0xf] %vm1679_vm5, %v8841_v46  ;;  %v8898_v21 = vld [vmem:[%s9326_s4] ss:$0 sm:$0xff]  ;;  %v3698_v60 = vpop.f32.mrf.mxu3 }
 0x2e6   : > { %1834 = vrot.lane.b32.xlu1 %v2820_v38, %s7891_s20  ;;  %3044 = vst.msk [vmem:[#allocation4 + $0xd4] sm:$0xf] %vm1679_vm5, %v8809_v18  ;;  %2503 = vrot.lane.b32.xlu0 %v8773_v40, %s7891_s20  ;;  %v2597_v33 = vld [vmem:[#allocation3 + $0xb0] sm:$0xff]  ;;  %v8835_v39 = vpack.c.bf16 %v2793_v28, %v2793_v28  ;;  %v3541_v25 = vadd.f32 %v8898_v21, %v3540_v10 }
 0x2e7   : > { %2029 = vrot.lane.b32.xlu2 %v8773_v40, %s7892_s21  ;;  %3045 = vst.msk [vmem:[#allocation4 + $0xe0] sm:$0xf] %vm1679_vm5, %v8813_v23  ;;  %v8837_v26 = vpack.c.bf16 %v2597_v33, %v2597_v33 }
 0x2e8   : > { %v1827_v6 = vpop.permute.xlu1 %1826  ;;  %v6546_v31 = vld [vmem:[#allocation4 + $0xa8] sm:$0xf]  ;;  %3052 = vst.msk [vmem:[#allocation4 + $0x134] sm:$0xf] %vm1679_vm5, %v8827_v29 }
 0x2e9   : > { %1894 = vst.msk [vmem:[#allocation4 + $0xcc] sm:$0xf] %vm1876_vm6, %v1827_v6  ;;  %v2496_v36 = vpop.permute.xlu0 %2495  ;;  %v6547_v42 = vor.u32 %v7573_v44, %v6546_v31 }
 0x2ea   : > { %2565 = vst.msk [vmem:[#allocation4 + $0xac] sm:$0xf] %vm1876_vm6, %v2496_v36  ;;  %v6536_v38 = vld [vmem:[#allocation4 + $0x9c] sm:$0xf0]  ;;  %v3542_v33 = vpop.f32.mrf.mxu1 }
 0x2eb   : > { %3554 = vmatmul.bf16.gmra.mxu1 %v6547_v42  ;;  %v6539_v40 = vor.u32 %v7569_v37, %v6536_v38  ;;  %v3878_v49 = vld [vmem:[#allocation1 + $0x1] ss:$9 sm:$0xff]  ;;  %1703 = vst.msk [vmem:[#allocation4 + $0x114] sm:$0xf] %vm1679_vm5, %v8829_v34  ;;  %v3543_v42 = vadd.f32 %v8898_v21, %v3542_v33 }
 0x2ec   : > { %3881 = vst [vmem:[#allocation1] sm:$0xff] %v8807_v16  ;;  %v1731_v38 = vld [vmem:[#allocation3 + $0xb9] sm:$0xff] }
 0x2ed   : > { %3628 = vmatmul.bf16.gmra.mxu2 %v6539_v40  ;;  %v7577_v53 = vld [vmem:[#allocation4 + $0xd0] sm:$0xf0]  ;;  %2375 = vst.msk [vmem:[#allocation4 + $0xf4] sm:$0xf] %vm1679_vm5, %v8835_v39  ;;  %v1759_v55 = vpack.c.bf16 %v1731_v38, %v1731_v38  ;;  %v6614_v33 = vld [vmem:[#allocation4 + $0x128] sm:$0xf] }
 0x2ee   : > { %2505 = vrot.lane.b32.xlu1 %v8809_v18, %s7891_s20  ;;  %v6567_v56 = vor.u32 %v7577_v53, %v6566_v50  ;;  %2701 = vrot.lane.b32.xlu0 %v8829_v34, %s7892_s21  ;;  %1702 = vst.msk [vmem:[#allocation4 + $0x108] sm:$0xf] %vm1679_vm5, %v8837_v26  ;;  %v6578_v9 = vld [vmem:[#allocation4 + $0xe0] sm:$0xf]  ;;  %v2603_v40 = vld [vmem:[#allocation3 + $0xe0] sm:$0xff]  ;;  %v3700_v53 = vpop.f32.mrf.mxu3 }
 0x2ef   : > { %2699 = vrot.lane.b32.xlu2 %v8837_v26, %s7892_s21  ;;  %2381 = vst.msk [vmem:[#allocation4 + $0x13c] sm:$0xf] %vm1679_vm5, %v8850_v57  ;;  %v6579_v15 = vor.u32 %v7580_v13, %v6578_v9  ;;  %v7583_v50 = vld [vmem:[#allocation4 + $0x100] sm:$0xf0]  ;;  %v7586_v13 = vld [vmem:[#allocation4 + $0x118] sm:$0xf0] }
 0x2f0   : > { %6708 = vmatmul.msk.bf16.gmra.mxu3 %vm1154_vm0, %v6567_v56  ;;  %3880 = vst.msk [vmem:[#allocation6 + $0x4] sm:$0x1] %vm8662_vm10, %v3878_v49  ;;  %v8915_v56 = vpack.c.bf16 %v2603_v40, %v2603_v40 }
 0x2f1   : > { %1706 = vst.msk [vmem:[#allocation4 + $0x138] sm:$0xf] %vm1679_vm5, %v1677_v59 }
 0x2f2   : > { %v2692_v58 = vpop.permute.xlu2 %2691  ;;  %2382 = vst.msk [vmem:[#allocation4 + $0x148] sm:$0xf] %vm1679_vm5, %v8868_v2 }
 0x2f3   : > { %2761 = vst.msk [vmem:[#allocation4 + $0xac] sm:$0xf] %vm2073_vm7, %v2692_v58  ;;  %v8870_v3 = vld [vmem:[#allocation1 + $0x2] ss:$9 sm:$0xff] }
 0x2f4   : > { %3888 = vst [vmem:[#allocation1] sm:$0xff] %v8807_v16 }
 0x2f5   : > { %1707 = vst.msk [vmem:[#allocation4 + $0x144] sm:$0xf] %vm1679_vm5, %v1678_v1 }
 0x2f6   : > { %2895 = vrot.lane.b32.xlu1 %v8835_v39, %s7893_s22  ;;  %2709 = vrot.lane.b32.xlu0 %v8873_v4, %s7892_s21 }
 0x2f7   : > { %2707 = vrot.lane.b32.xlu2 %v8866_v32, %s7892_s21 }
 0x2fa   : > { %v2890_v19 = vpop.permute.xlu2 %2889 }
 0x2fb   : > { %v3890_v11 = vld [vmem:[#allocation1 + $0x3] ss:$9 sm:$0xff] }
 0x2fc   : > { %3893 = vst [vmem:[#allocation1] sm:$0xff] %v8807_v16 }
 0x2fd   : > { %3892 = vst.msk [vmem:[#allocation6 + $0x5] sm:$0x1] %vm8662_vm10, %v3890_v11  ;;  %v6602_v11 = vld [vmem:[#allocation4 + $0x110] sm:$0xf] }
 0x2fe   : > { %2513 = vrot.lane.b32.xlu1 %v8393_v14, %s7891_s20  ;;  %2035 = vrot.lane.b32.xlu0 %v8357_v45, %s7892_s21 }
 0x2ff   : > { %2905 = vrot.lane.b32.xlu2 %v8841_v46, %s7893_s22 }
 0x300   : > { %6709 = vmatmul.msk.bf16.gmra.mxu3 %vm1154_vm0, %v6579_v15  ;;  %v3619_v44 = vpop.f32.mrf.mxu2 }
 0x301   : > { %v3620_v28 = vadd.f32 %v3619_v44, %v3541_v25 }
 0x302   : > { %v2221_v48 = vpop.permute.xlu2 %2220 }
 0x303   : > { %v8901_v6 = vld [vmem:[#allocation1 + $0x4] ss:$9 sm:$0xff]  ;;  %v3699_v31 = vadd.f32 %v3698_v60, %v3620_v28 }
 0x304   : > { %3900 = vst [vmem:[#allocation1] sm:$0xff] %v8807_v16  ;;  %v2604_v60 = vld [vmem:[#allocation3 + $0xe8] sm:$0xff] }
 0x305   : > { %v3756_v45 = vmax.f32 %v3699_v31, 0.0  ;;  %v8948_v28 = vpack.c.bf16 %v2604_v60, %v2604_v60  ;;  %v1732_v31 = vld [vmem:[#allocation3 + $0xc1] sm:$0xff] }
 0x306   : > { %2903 = vrot.lane.b32.xlu1 %v8801_v5, %s7893_s22  ;;  %2515 = vrot.lane.b32.xlu0 %v8776_v47, %s7891_s20 }
 0x307   : > { %2232 = vrot.lane.b32.xlu2 %v8406_v24, %s7893_s22  ;;  %3785 = vst.msk [vmem:[#allocation5 + $0x40] sm:$0xff] %vm3776_vm9, %v3756_v45  ;;  %v6590_v24 = vld [vmem:[#allocation4 + $0xf8] sm:$0xf]  ;;  %v7589_v45 = vld [vmem:[#allocation4 + $0x130] sm:$0xf0] }
 0x308   : > { %v3621_v43 = vpop.f32.mrf.mxu2  ;;  %v6591_v51 = vor.u32 %v7583_v50, %v6590_v24 }
 0x309   : > { %v2498_v36 = vpop.permute.xlu1 %2497  ;;  %v2024_v37 = vpop.permute.xlu0 %2023  ;;  %v3622_v49 = vadd.f32 %v3621_v43, %v3543_v42  ;;  %v6615_v42 = vor.u32 %v7589_v45, %v6614_v33 }
 0x30a   : > { %2566 = vst.msk [vmem:[#allocation4 + $0xb8] sm:$0xf] %vm1876_vm6, %v2498_v36  ;;  %v2026_v1 = vpop.permute.xlu2 %2025  ;;  %v1760_v36 = vpack.c.bf16 %v1732_v31, %v1732_v31 }
 0x30b   : > { %2091 = vst.msk [vmem:[#allocation4 + $0xcc] sm:$0xf] %vm2073_vm7, %v2024_v37  ;;  %v3902_v58 = vld [vmem:[#allocation1 + $0x5] ss:$9 sm:$0xff]  ;;  %v3701_v59 = vadd.f32 %v3700_v53, %v3622_v49  ;;  %v3703_v37 = vpop.f32.mrf.mxu3 }
 0x30c   : > { %2288 = vst.msk [vmem:[#allocation4 + $0xcc] sm:$0xf] %vm2270_vm8, %v2221_v48  ;;  %v3545_v48 = vpop.f32.mrf.mxu1 }
 0x30d   : > { %3905 = vst [vmem:[#allocation1] sm:$0xff] %v8807_v16  ;;  %v3757_v62 = vmax.f32 %v3701_v59, 0.0 }
 0x30e   : > { %1838 = vrot.lane.b32.xlu1 %v1759_v55, %s7891_s20  ;;  %3904 = vst.msk [vmem:[#allocation6 + $0x6] sm:$0x1] %vm8662_vm10, %v3902_v58  ;;  %2507 = vrot.lane.b32.xlu0 %v8813_v23, %s7891_s20  ;;  %v2606_v58 = vld [vmem:[#allocation3 + $0xf8] sm:$0xff] }
 0x30f   : > { %2711 = vrot.lane.b32.xlu2 %v8915_v56, %s7892_s21  ;;  %3786 = vst.msk [vmem:[#allocation5 + $0x48] sm:$0xff] %vm3776_vm9, %v3757_v62 }
 0x310   : > { %6710 = vmatmul.msk.bf16.gmra.mxu3 %vm1154_vm0, %v6591_v51 }
 0x311   : > { %v2888_v22 = vpop.permute.xlu1 %2887  ;;  %v1829_v63 = vpop.permute.xlu0 %1828 }
 0x312   : > { %2957 = vst.msk [vmem:[#allocation4 + $0xac] sm:$0xf] %vm2270_vm8, %v2888_v22 }
 0x313   : > { %1895 = vst.msk [vmem:[#allocation4 + $0xd8] sm:$0xf] %vm1876_vm6, %v1829_v63  ;;  %v7576_v15 = vld [vmem:[#allocation4 + $0xc8] sm:$0xf0]  ;;  %v3705_v22 = vpop.f32.mrf.mxu3 }
 0x314   : > { %2092 = vst.msk [vmem:[#allocation4 + $0xd8] sm:$0xf] %vm2073_vm7, %v2026_v1  ;;  %v3547_v50 = vpop.f32.mrf.mxu1  ;;  %v2634_v1 = vpack.c.bf16 %v2606_v58, %v2606_v58 }
 0x316   : > { %2230 = vrot.lane.b32.xlu1 %v8402_v20, %s7893_s22  ;;  %2031 = vrot.lane.b32.xlu0 %v8809_v18, %s7892_s21  ;;  %v6603_v20 = vor.u32 %v7586_v13, %v6602_v11 }
 0x317   : > { %2228 = vrot.lane.b32.xlu2 %v8829_v34, %s7893_s22 }
 0x319   : > { %v2219_v9 = vpop.permute.xlu1 %2218  ;;  %v2694_v10 = vpop.permute.xlu0 %2693 }
 0x31a   : > { %2287 = vst.msk [vmem:[#allocation4 + $0xc0] sm:$0xf] %vm2270_vm8, %v2219_v9 }
 0x31b   : > { %2762 = vst.msk [vmem:[#allocation4 + $0xb8] sm:$0xf] %vm2073_vm7, %v2694_v10 }
 0x31c   : > { %2958 = vst.msk [vmem:[#allocation4 + $0xb8] sm:$0xf] %vm2270_vm8, %v2890_v19 }
 0x31e   : > { %2226 = vrot.lane.b32.xlu1 %v8837_v26, %s7893_s22  ;;  %1836 = vrot.lane.b32.xlu0 %v8835_v39, %s7891_s20  ;;  %v7572_v26 = vld [vmem:[#allocation4 + $0xac] sm:$0xf] }
 0x31f   : > { %2033 = vrot.lane.b32.xlu2 %v8813_v23, %s7892_s21 }
 0x320   : > { %6711 = vmatmul.msk.bf16.gmra.mxu3 %vm1154_vm0, %v6603_v20 }
 0x321   : > { %v1831_v18 = vpop.permute.xlu1 %1830  ;;  %v6558_v34 = vld [vmem:[#allocation4 + $0xc0] sm:$0xf]  ;;  %v2500_v19 = vpop.permute.xlu0 %2499 }
 0x322   : > { %1896 = vst.msk [vmem:[#allocation4 + $0xe4] sm:$0xf] %vm1876_vm6, %v1831_v18  ;;  %v6559_v25 = vor.u32 %v7576_v15, %v6558_v34  ;;  %v3913_v18 = vld [vmem:[#allocation5 + $0x40] ss:$2 sm:$0x7f] }
 0x323   : > { %2567 = vst.msk [vmem:[#allocation4 + $0xc4] sm:$0xf] %vm1876_vm6, %v2500_v19  ;;  %v6548_v44 = vld [vmem:[#allocation4 + $0xb4] sm:$0xf0] }
 0x324   : > { %3559 = vmatmul.bf16.gmra.mxu1 %v6559_v25  ;;  %v6551_v23 = vor.u32 %v7572_v26, %v6548_v44  ;;  %v3915_v34 = vld [vmem:[#allocation5 + $0x41] ss:$2 sm:$0x7f] }
 0x325   : > { %v3916_v19 = vmax.f32 %v3913_v18, %v3915_v34 }
 0x326   : > { %3633 = vmatmul.bf16.gmra.mxu2 %v6551_v23  ;;  %2517 = vrot.lane.b32.xlu1 %v8789_v61, %s7891_s20 }
 0x327   : > { %2909 = vrot.lane.b32.xlu2 %v8868_v2, %s7893_s22  ;;  %2713 = vrot.lane.b32.xlu0 %v8948_v28, %s7892_s21 }
 0x329   : > { %v2696_v39 = vpop.permute.xlu2 %2695 }
 0x32a   : > { %2763 = vst.msk [vmem:[#allocation4 + $0xc4] sm:$0xf] %vm2073_vm7, %v2696_v39 }
 0x32e   : > { %2907 = vrot.lane.b32.xlu1 %v8850_v57, %s7893_s22  ;;  %v3546_v57 = vadd.f32 %v8898_v21, %v3545_v48 }
 0x32f   : > { %2037 = vrot.lane.b32.xlu2 %v8390_v12, %s7892_s21  ;;  %1840 = vrot.lane.b32.xlu0 %v1760_v36, %s7891_s20  ;;  %v2605_v12 = vld [vmem:[#allocation3 + $0xf0] sm:$0xff] }
 0x330   : > { %6712 = vmatmul.msk.bf16.gmra.mxu3 %vm1154_vm0, %v6615_v42  ;;  %v2633_v49 = vpack.c.bf16 %v2605_v12, %v2605_v12 }
 0x331   : > { %v8963_v2 = vpop.permute.xlu2 %2893 }
 0x336   : > { %1842 = vrot.lane.b32.xlu1 %v8396_v17, %s7891_s20  ;;  %v3548_v17 = vadd.f32 %v8898_v21, %v3547_v50 }
 0x337   : > { %2236 = vrot.lane.b32.xlu2 %v8873_v4, %s7893_s22  ;;  %2039 = vrot.lane.b32.xlu0 %v8393_v14, %s7892_s21  ;;  %v2802_v14 = vld [vmem:[#allocation3 + $0xf9] sm:$0xff] }
 0x339   : > { %v3624_v38 = vpop.f32.mrf.mxu2  ;;  %v2225_v40 = vpop.permute.xlu2 %2224 }
 0x33a   : > { %v3625_v43 = vadd.f32 %v3624_v38, %v3546_v57 }
 0x33c   : > { %v3704_v24 = vadd.f32 %v3703_v37, %v3625_v43 }
 0x33e   : > { %v3758_v53 = vmax.f32 %v3704_v24, 0.0  ;;  %2234 = vrot.lane.b32.xlu1 %v8866_v32, %s7893_s22  ;;  %v2830_v32 = vpack.c.bf16 %v2802_v14, %v2802_v14 }
 0x33f   : > { %2715 = vrot.lane.b32.xlu2 %v2633_v49, %s7892_s21  ;;  %2519 = vrot.lane.b32.xlu0 %v8821_v27, %s7891_s20  ;;  %v2801_v27 = vld [vmem:[#allocation3 + $0xf1] sm:$0xff] }
 0x340   : > { %3787 = vst.msk [vmem:[#allocation5 + $0x50] sm:$0xff] %vm3776_vm9, %v3758_v53  ;;  %v2502_v55 = vpop.permute.xlu1 %2501  ;;  %v2028_v62 = vpop.permute.xlu0 %2027  ;;  %v2829_v20 = vpack.c.bf16 %v2801_v27, %v2801_v27 }
 0x341   : > { %v3626_v4 = vpop.f32.mrf.mxu2  ;;  %2568 = vst.msk [vmem:[#allocation4 + $0xd0] sm:$0xf] %vm1876_vm6, %v2502_v55  ;;  %v2030_v51 = vpop.permute.xlu2 %2029 }
 0x342   : > { %v3627_v59 = vadd.f32 %v3626_v4, %v3548_v17  ;;  %2093 = vst.msk [vmem:[#allocation4 + $0xe4] sm:$0xf] %vm2073_vm7, %v2028_v62 }
 0x343   : > { %2290 = vst.msk [vmem:[#allocation4 + $0xe4] sm:$0xf] %vm2270_vm8, %v2225_v40 }
 0x344   : > { %v3706_v63 = vadd.f32 %v3705_v22, %v3627_v59 }
 0x346   : > { %v3759_v9 = vmax.f32 %v3706_v63, 0.0  ;;  %2521 = vrot.lane.b32.xlu1 %v8827_v29, %s7891_s20 }
 0x347   : > { %2913 = vrot.lane.b32.xlu2 %v2830_v32, %s7893_s22  ;;  %2717 = vrot.lane.b32.xlu0 %v2634_v1, %s7892_s21 }
 0x348   : > { %3788 = vst.msk [vmem:[#allocation5 + $0x58] sm:$0xff] %vm3776_vm9, %v3759_v9  ;;  %v2892_v10 = vpop.permute.xlu1 %2891  ;;  %v1833_v13 = vpop.permute.xlu0 %1832 }
 0x349   : > { %2959 = vst.msk [vmem:[#allocation4 + $0xc4] sm:$0xf] %vm2270_vm8, %v2892_v10  ;;  %v2700_v11 = vpop.permute.xlu2 %2699 }
 0x34a   : > { %1897 = vst.msk [vmem:[#allocation4 + $0xf0] sm:$0xf] %vm1876_vm6, %v1833_v13  ;;  %v7579_v31 = vld [vmem:[#allocation4 + $0xe0] sm:$0xf0] }
 0x34b   : > { %2094 = vst.msk [vmem:[#allocation4 + $0xf0] sm:$0xf] %vm2073_vm7, %v2030_v51 }
 0x34e   : > { %2911 = vrot.lane.b32.xlu1 %v2829_v20, %s7893_s22 }
 0x34f   : > { %v3918_v29 = vld [vmem:[#allocation5 + $0x50] ss:$2 sm:$0x7f]  ;;  %v3920_v15 = vld [vmem:[#allocation5 + $0x51] ss:$2 sm:$0x7f]  ;;  %2041 = vrot.lane.b32.xlu2 %v8776_v47, %s7892_s21  ;;  %1844 = vrot.lane.b32.xlu0 %v8801_v5, %s7891_s20 }
 0x350   : > { %v3921_v25 = vmax.f32 %v3918_v29, %v3920_v15  ;;  %v2223_v60 = vpop.permute.xlu1 %2222  ;;  %v2698_v23 = vpop.permute.xlu0 %2697  ;;  %v3907_v47 = vld [vmem:[#allocation1 + $0x6] ss:$9 sm:$0xff] }
 0x351   : > { %2289 = vst.msk [vmem:[#allocation4 + $0xd8] sm:$0xf] %vm2270_vm8, %v2223_v60  ;;  %v2708_v44 = vpop.permute.xlu2 %2707  ;;  %v6584_v15 = vld [vmem:[#allocation4 + $0xfc] sm:$0xf0] }
 0x352   : > { %v8995_v26 = vmax.f32 %v3916_v19, %v3921_v25  ;;  %2769 = vst.msk [vmem:[#allocation4 + $0x10c] sm:$0xf] %vm2073_vm7, %v2708_v44 }
 0x353   : > { %2764 = vst.msk [vmem:[#allocation4 + $0xd0] sm:$0xf] %vm2073_vm7, %v2698_v23 }
 0x354   : > { %2960 = vst.msk [vmem:[#allocation4 + $0xd0] sm:$0xf] %vm2270_vm8, %v8963_v2 }
 0x355   : > { %3925 = vst [vmem:[#allocation1] sm:$0xff] %v8995_v26 }
 0x356   : > { %1846 = vrot.lane.b32.xlu1 %v8841_v46, %s7891_s20  ;;  %3923 = vst.msk [vmem:[#allocation6 + $0x7] sm:$0x1] %vm8662_vm10, %v8995_v26  ;;  %v7575_v46 = vld [vmem:[#allocation4 + $0xc4] sm:$0xf] }
 0x357   : > { %2240 = vrot.lane.b32.xlu2 %v8948_v28, %s7893_s22  ;;  %2043 = vrot.lane.b32.xlu0 %v8789_v61, %s7892_s21 }
 0x358   : > { %v1835_v5 = vpop.permute.xlu1 %1834  ;;  %v6570_v39 = vld [vmem:[#allocation4 + $0xd8] sm:$0xf]  ;;  %v2504_v45 = vpop.permute.xlu0 %2503 }
 0x359   : > { %1898 = vst.msk [vmem:[#allocation4 + $0xfc] sm:$0xf] %vm1876_vm6, %v1835_v5  ;;  %v2906_v33 = vpop.permute.xlu2 %2905  ;;  %v6571_v36 = vor.u32 %v7579_v31, %v6570_v39  ;;  %v7618_v31 = vld [vmem:[#allocation7 + $0x38] sm:$0xff] }
 0x35a   : > { %2569 = vst.msk [vmem:[#allocation4 + $0xdc] sm:$0xf] %vm1876_vm6, %v2504_v45  ;;  %5818 = vmatpush.bf16.msra.mxu3 %v7618_v31 }
 0x35b   : > { %2765 = vst.msk [vmem:[#allocation4 + $0xdc] sm:$0xf] %vm2073_vm7, %v2700_v11  ;;  %3564 = vmatmul.bf16.gmra.mxu1 %v6571_v36  ;;  %v6560_v28 = vld [vmem:[#allocation4 + $0xcc] sm:$0xf0] }
 0x35c   : > { %v6563_v42 = vor.u32 %v7575_v46, %v6560_v28  ;;  %v3927_v2 = vld [vmem:[#allocation1 + $0x1] ss:$9 sm:$0xff] }
 0x35d   : > { %3932 = vst [vmem:[#allocation1] sm:$0xff] %v8995_v26  ;;  %v7617_v46 = vld [vmem:[#allocation7 + $0x30] sm:$0xff] }
 0x35e   : > { %3638 = vmatmul.bf16.gmra.mxu2 %v6563_v42  ;;  %2238 = vrot.lane.b32.xlu1 %v8915_v56, %s7893_s22  ;;  %v3550_v56 = vpop.f32.mrf.mxu1  ;;  %v7625_v28 = vld [vmem:[#allocation7 + $0x70] sm:$0xff] }
 0x35f   : > { %3824 = vrot.lane.b32.xlu0 %v8677_v41, %s7892_s21  ;;  %3851 = vrot.lane.b32.xlu2 %v8712_v52, %s7892_s21  ;;  %v3551_v38 = vadd.f32 %v8898_v21, %v3550_v56 }
 0x360   : > { %v2506_v61 = vpop.permute.xlu1 %2505  ;;  %v2702_v37 = vpop.permute.xlu0 %2701  ;;  %5819 = vmatpush.bf16.msra.mxu3 %v7617_v46 }
 0x361   : > { %2570 = vst.msk [vmem:[#allocation4 + $0xe8] sm:$0xf] %vm1876_vm6, %v2506_v61  ;;  %v9023_v48 = vpop.permute.xlu2 %2232 }
 0x362   : > { %2766 = vst.msk [vmem:[#allocation4 + $0xe8] sm:$0xf] %vm2073_vm7, %v2702_v37 }
 0x363   : > { %2962 = vst.msk [vmem:[#allocation4 + $0xe8] sm:$0xf] %vm2270_vm8, %v8210_v7 }
 0x364   : > { %v3934_v57 = vld [vmem:[#allocation1 + $0x2] ss:$9 sm:$0xff] }
 0x365   : > { %3937 = vst [vmem:[#allocation1] sm:$0xff] %v8995_v26 }
 0x366   : > { %3839 = vrot.lane.b32.xlu1 %v8690_v0, %s7892_s21  ;;  %3936 = vst.msk [vmem:[#allocation6 + $0x8] sm:$0x1] %vm8662_vm10, %v3934_v57  ;;  %v3708_v0 = vpop.f32.mrf.mxu3  ;;  %v3552_v17 = vpop.f32.mrf.mxu1 }
 0x367   : > { %3872 = vrot.lane.b32.xlu0 %v8807_v16, %s7892_s21  ;;  %3896 = vrot.lane.b32.xlu2 %v8901_v6, %s7892_s21  ;;  %v3553_v55 = vadd.f32 %v8898_v21, %v3552_v17 }
 0x368   : > { %v2896_v41 = vpop.permute.xlu1 %2895  ;;  %v2710_v7 = vpop.permute.xlu0 %2709 }
 0x369   : > { %2961 = vst.msk [vmem:[#allocation4 + $0xdc] sm:$0xf] %vm2270_vm8, %v2896_v41  ;;  %v2712_v52 = vpop.permute.xlu2 %2711 }
 0x36a   : > { %v6572_v43 = vld [vmem:[#allocation4 + $0xe4] sm:$0xf0] }
 0x36c   : > { %v3939_v12 = vld [vmem:[#allocation1 + $0x3] ss:$9 sm:$0xff] }
 0x36d   : > { %3944 = vst [vmem:[#allocation1] sm:$0xff] %v8995_v26 }
 0x36e   : > { %3884 = vrot.lane.b32.xlu1 %v8870_v3, %s7892_s21  ;;  %v3710_v32 = vpop.f32.mrf.mxu3 }
 0x36f   : > { %3908 = vrot.lane.b32.xlu0 %v3907_v47, %s7892_s21  ;;  %3940 = vrot.lane.b32.xlu2 %v3939_v12, %s7892_s21 }
 0x370   : > { %v3629_v16 = vpop.f32.mrf.mxu2  ;;  %v2514_v6 = vpop.permute.xlu1 %2513  ;;  %v7578_v40 = vld [vmem:[#allocation4 + $0xdc] sm:$0xf] }
 0x371   : > { %v3630_v49 = vadd.f32 %v3629_v16, %v3551_v38  ;;  %2574 = vst.msk [vmem:[#allocation4 + $0x118] sm:$0xf] %vm1876_vm6, %v2514_v6  ;;  %v2229_v24 = vpop.permute.xlu2 %2228  ;;  %v2036_v50 = vpop.permute.xlu0 %2035  ;;  %v6575_v53 = vor.u32 %v7578_v40, %v6572_v43 }
 0x372   : > { %2770 = vst.msk [vmem:[#allocation4 + $0x118] sm:$0xf] %vm2073_vm7, %v2710_v7 }
 0x373   : > { %v3709_v3 = vadd.f32 %v3708_v0, %v3630_v49  ;;  %2966 = vst.msk [vmem:[#allocation4 + $0x118] sm:$0xf] %vm2270_vm8, %v2906_v33  ;;  %3643 = vmatmul.bf16.gmra.mxu2 %v6575_v53  ;;  %v7626_v33 = vld [vmem:[#allocation7 + $0x78] sm:$0xff]  ;;  %v7616_v53 = vld [vmem:[#allocation7 + $0x28] sm:$0xff] }
 0x374   : > { %v3946_v14 = vld [vmem:[#allocation1 + $0x4] ss:$9 sm:$0xff]  ;;  %5831 = vmatpush.bf16.msra.mxu1 %v7626_v33  ;;  %5820 = vmatpush.bf16.msra.mxu3 %v7616_v53 }
 0x375   : > { %v3760_v4 = vmax.f32 %v3709_v3, 0.0  ;;  %3949 = vst [vmem:[#allocation1] sm:$0xff] %v8995_v26  ;;  %v7624_v3 = vld [vmem:[#allocation7 + $0x68] sm:$0xff] }
 0x376   : > { %3928 = vrot.lane.b32.xlu1 %v3927_v2, %s7892_s21  ;;  %3948 = vst.msk [vmem:[#allocation6 + $0x9] sm:$0x1] %vm8662_vm10, %v3946_v14  ;;  %v3713_v57 = vpop.f32.mrf.mxu3  ;;  %v7634_v14 = vld [vmem:[#allocation7 + $0xb8] sm:$0xff]  ;;  %v7620_v33 = vld [vmem:[#allocation7 + $0x48] sm:$0xff] }
 0x377   : > { %3789 = vst.msk [vmem:[#allocation5 + $0x60] sm:$0xff] %vm3776_vm9, %v3760_v4  ;;  %5844 = vmatpush.bf16.msra.mxu2 %v7634_v14  ;;  %v7640_v53 = vld [vmem:[#allocation7 + $0xe8] sm:$0xff]  ;;  %v7627_v14 = vld [vmem:[#allocation7 + $0x80] sm:$0xff] }
 0x378   : > { %v3631_v58 = vpop.f32.mrf.mxu2  ;;  %v2904_v59 = vpop.permute.xlu1 %2903  ;;  %5832 = vmatpush.bf16.msra.mxu1 %v7625_v28 }
 0x379   : > { %v3632_v51 = vadd.f32 %v3631_v58, %v3553_v55  ;;  %2965 = vst.msk [vmem:[#allocation4 + $0x10c] sm:$0xf] %vm2270_vm8, %v2904_v59  ;;  %v2034_v62 = vpop.permute.xlu2 %2033  ;;  %v2516_v22 = vpop.permute.xlu0 %2515  ;;  %v7615_v58 = vld [vmem:[#allocation7 + $0x20] sm:$0xff] }
 0x37a   : > { %2575 = vst.msk [vmem:[#allocation4 + $0x124] sm:$0xf] %vm1876_vm6, %v2516_v22  ;;  %v6596_v45 = vld [vmem:[#allocation4 + $0x114] sm:$0xf0]  ;;  %v7623_v22 = vld [vmem:[#allocation7 + $0x60] sm:$0xff]  ;;  %5821 = vmatpush.bf16.msra.mxu3 %v7615_v58 }
 0x37b   : > { %v3711_v63 = vadd.f32 %v3710_v32, %v3632_v51  ;;  %2771 = vst.msk [vmem:[#allocation4 + $0x124] sm:$0xf] %vm2073_vm7, %v2712_v52  ;;  %v7633_v32 = vld [vmem:[#allocation7 + $0xb0] sm:$0xff]  ;;  %v7647_v58 = vld [vmem:[#allocation7 + $0x120] sm:$0xff] }
 0x37c   : > { %v3951_v1 = vld [vmem:[#allocation1 + $0x5] ss:$9 sm:$0xff]  ;;  %5833 = vmatpush.bf16.msra.mxu1 %v7624_v3  ;;  %5845 = vmatpush.bf16.msra.mxu2 %v7633_v32 }
 0x37d   : > { %v3761_v9 = vmax.f32 %v3711_v63, 0.0  ;;  %3952 = vrot.lane.b32.xlu0 %v3951_v1, %s7892_s21  ;;  %3956 = vst [vmem:[#allocation1] sm:$0xff] %v8995_v26  ;;  %v2997_v1 = vld [vmem:[#allocation3 + $0xf2] sm:$0xff]  ;;  %v7648_v3 = vld [vmem:[#allocation7 + $0x128] sm:$0xff] }
 0x37e   : > { %v3715_v63 = vpop.f32.mrf.mxu3 }
 0x37f   : > { %3790 = vst.msk [vmem:[#allocation5 + $0x68] sm:$0xff] %vm3776_vm9, %v3761_v9  ;;  %v2998_v9 = vld [vmem:[#allocation3 + $0xfa] sm:$0xff] }
 0x380   : > { %v1839_v27 = vpop.permute.xlu1 %1838  ;;  %v7584_v39 = vld [vmem:[#allocation4 + $0x10c] sm:$0xf]  ;;  %5834 = vmatpush.bf16.msra.mxu1 %v7623_v22 }
 0x381   : > { %1900 = vst.msk [vmem:[#allocation4 + $0x114] sm:$0xf] %vm1876_vm6, %v1839_v27  ;;  %v2910_v10 = vpop.permute.xlu2 %2909  ;;  %v2508_v11 = vpop.permute.xlu0 %2507  ;;  %v6599_v36 = vor.u32 %v7584_v39, %v6596_v45  ;;  %v7612_v39 = vld [vmem:[#allocation7 + $0x8] sm:$0xff]  ;;  %v7630_v45 = vld [vmem:[#allocation7 + $0x98] sm:$0xff] }
 0x382   : > { %2097 = vst.msk [vmem:[#allocation4 + $0x114] sm:$0xf] %vm2073_vm7, %v2036_v50 }
 0x383   : > { %2294 = vst.msk [vmem:[#allocation4 + $0x114] sm:$0xf] %vm2270_vm8, %v9023_v48  ;;  %v3555_v48 = vpop.f32.mrf.mxu1 }
 0x384   : > { %v3958_v13 = vld [vmem:[#allocation1 + $0x6] ss:$9 sm:$0xff]  ;;  %2571 = vst.msk [vmem:[#allocation4 + $0xf4] sm:$0xf] %vm1876_vm6, %v2508_v11  ;;  %v3556_v41 = vadd.f32 %v8898_v21, %v3555_v48  ;;  %v3026_v11 = vpack.c.bf16 %v2998_v9, %v2998_v9 }
 0x385   : > { %2767 = vst.msk [vmem:[#allocation4 + $0xf4] sm:$0xf] %vm2073_vm7, %v8260_v8  ;;  %v7646_v9 = vld [vmem:[#allocation7 + $0x118] sm:$0xff] }
 0x386   : > { %2963 = vst.msk [vmem:[#allocation4 + $0xf4] sm:$0xf] %vm2270_vm8, %v8310_v54 }
 0x387   : > { %3960 = vst.msk [vmem:[#allocation6 + $0xa] sm:$0x1] %vm8662_vm10, %v3958_v13  ;;  %v7614_v13 = vld [vmem:[#allocation7 + $0x18] sm:$0xff] }
 0x388   : > { %v2231_v20 = vpop.permute.xlu1 %2230  ;;  %3054 = vst.msk [vmem:[#allocation4 + $0x14c] sm:$0xf] %vm1679_vm5, %v3026_v11  ;;  %5822 = vmatpush.bf16.msra.mxu3 %v7614_v13  ;;  %v7657_v11 = vld [vmem:[#allocation7 + $0x170] sm:$0xff] }
 0x389   : > { %v2038_v18 = vpop.permute.xlu2 %2037  ;;  %v2032_v34 = vpop.permute.xlu0 %2031  ;;  %v7637_v13 = vld [vmem:[#allocation7 + $0xd0] sm:$0xff] }
 0x38a   : > { %2095 = vst.msk [vmem:[#allocation4 + $0xfc] sm:$0xf] %vm2073_vm7, %v2032_v34  ;;  %v7585_v56 = vld [vmem:[#allocation4 + $0x110] sm:$0xf0] }
 0x38b   : > { %2292 = vst.msk [vmem:[#allocation4 + $0xfc] sm:$0xf] %vm2270_vm8, %v2229_v24  ;;  %v3557_v43 = vpop.f32.mrf.mxu1  ;;  %v7632_v34 = vld [vmem:[#allocation7 + $0xa8] sm:$0xff] }
 0x38c   : > { %v3558_v17 = vadd.f32 %v8898_v21, %v3557_v43  ;;  %5846 = vmatpush.bf16.msra.mxu2 %v7632_v34  ;;  %v7656_v34 = vld [vmem:[#allocation7 + $0x168] sm:$0xff] }
 0x38d   : > { %v7581_v29 = vld [vmem:[#allocation4 + $0xf4] sm:$0xf] }
 0x38e   : > { %v6587_v19 = vor.u32 %v7581_v29, %v6584_v15 }
 0x38f   : > { %v7592_v31 = vld [vmem:[#allocation4 + $0x148] sm:$0xf0] }
 0x390   : > { %3648 = vmatmul.bf16.gmra.mxu2 %v6587_v19  ;;  %v2227_v25 = vpop.permute.xlu1 %2226 }
 0x391   : > { %2291 = vst.msk [vmem:[#allocation4 + $0xf0] sm:$0xf] %vm2270_vm8, %v2227_v25  ;;  %v2237_v8 = vpop.permute.xlu2 %2236  ;;  %v1837_v60 = vpop.permute.xlu0 %1836  ;;  %v7613_v25 = vld [vmem:[#allocation7 + $0x10] sm:$0xff] }
 0x392   : > { %1899 = vst.msk [vmem:[#allocation4 + $0x108] sm:$0xf] %vm1876_vm6, %v1837_v60  ;;  %v7582_v44 = vld [vmem:[#allocation4 + $0xf8] sm:$0xf0]  ;;  %5823 = vmatpush.bf16.msra.mxu3 %v7613_v25  ;;  %v7655_v25 = vld [vmem:[#allocation7 + $0x160] sm:$0xff] }
 0x393   : > { %2096 = vst.msk [vmem:[#allocation4 + $0x108] sm:$0xf] %vm2073_vm7, %v2034_v62  ;;  %v7793_v60 = vld [vmem:[#allocation7 + $0x5b0] sm:$0xff] }
 0x394   : > { %2293 = vst.msk [vmem:[#allocation4 + $0x108] sm:$0xf] %vm2270_vm8, %v2231_v20 }
 0x396   : > { %5824 = vmatpush.bf16.msra.mxu3 %v7612_v39  ;;  %v7654_v39 = vld [vmem:[#allocation7 + $0x158] sm:$0xff] }
 0x398   : > { %v2518_v54 = vpop.permute.xlu1 %2517  ;;  %v6582_v26 = vld [vmem:[#allocation4 + $0xf0] sm:$0xf] }
 0x399   : > { %2576 = vst.msk [vmem:[#allocation4 + $0x130] sm:$0xf] %vm1876_vm6, %v2518_v54  ;;  %v9077_v23 = vpop.permute.xlu2 %2715  ;;  %v2714_v47 = vpop.permute.xlu0 %2713  ;;  %v6583_v5 = vor.u32 %v7582_v44, %v6582_v26  ;;  %v7631_v44 = vld [vmem:[#allocation7 + $0xa0] sm:$0xff] }
 0x39a   : > { %2772 = vst.msk [vmem:[#allocation4 + $0x130] sm:$0xf] %vm2073_vm7, %v2714_v47  ;;  %v3964_v47 = vld [vmem:[#allocation5 + $0x61] ss:$2 sm:$0x7f]  ;;  %5847 = vmatpush.bf16.msra.mxu2 %v7631_v44 }
 0x39b   : > { %2968 = vst.msk [vmem:[#allocation4 + $0x130] sm:$0xf] %vm2270_vm8, %v2910_v10  ;;  %3569 = vmatmul.bf16.gmra.mxu1 %v6583_v5  ;;  %v6594_v37 = vld [vmem:[#allocation4 + $0x108] sm:$0xf]  ;;  %v3025_v10 = vpack.c.bf16 %v2997_v1, %v2997_v1 }
 0x39c   : > { %v6595_v16 = vor.u32 %v7585_v56, %v6594_v37  ;;  %v7650_v56 = vld [vmem:[#allocation7 + $0x138] sm:$0xff] }
 0x39d   : > { %3053 = vst.msk [vmem:[#allocation4 + $0x140] sm:$0xf] %vm1679_vm5, %v3025_v10  ;;  %v7638_v1 = vld [vmem:[#allocation7 + $0xd8] sm:$0xff] }
 0x39e   : > { %5848 = vmatpush.bf16.msra.mxu2 %v7630_v45 }
 0x3a0   : > { %3653 = vmatmul.bf16.gmra.mxu2 %v6599_v36  ;;  %v2908_v42 = vpop.permute.xlu1 %2907 }
 0x3a1   : > { %2967 = vst.msk [vmem:[#allocation4 + $0x124] sm:$0xf] %vm2270_vm8, %v2908_v42  ;;  %v9082_v2 = vpop.permute.xlu2 %2913  ;;  %v1841_v61 = vpop.permute.xlu0 %1840 }
 0x3a2   : > { %1901 = vst.msk [vmem:[#allocation4 + $0x120] sm:$0xf] %vm1876_vm6, %v1841_v61  ;;  %v6608_v24 = vld [vmem:[#allocation4 + $0x12c] sm:$0xf0] }
 0x3a3   : > { %2098 = vst.msk [vmem:[#allocation4 + $0x120] sm:$0xf] %vm2073_vm7, %v2038_v18  ;;  %v7622_v18 = vld [vmem:[#allocation7 + $0x58] sm:$0xff] }
 0x3a4   : > { %5835 = vmatpush.bf16.msra.mxu1 %v7622_v18  ;;  %v6626_v5 = vld [vmem:[#allocation4 + $0x140] sm:$0xf]  ;;  %v3560_v18 = vpop.f32.mrf.mxu1 }
 0x3a5   : > { %v6627_v28 = vor.u32 %v7592_v31, %v6626_v5  ;;  %v7643_v5 = vld [vmem:[#allocation7 + $0x100] sm:$0xff] }
 0x3a7   : > { %6713 = vmatmul.msk.bf16.gmra.mxu3 %vm1154_vm0, %v6627_v28 }
 0x3a8   : > { %v1843_v7 = vpop.permute.xlu1 %1842  ;;  %v7587_v40 = vld [vmem:[#allocation4 + $0x124] sm:$0xf]  ;;  %5836 = vmatpush.bf16.msra.mxu1 %v7621_v30 }
 0x3a9   : > { %v3634_v52 = vpop.f32.mrf.mxu2  ;;  %1902 = vst.msk [vmem:[#allocation4 + $0x12c] sm:$0xf] %vm1876_vm6, %v1843_v7  ;;  %v9088_v0 = vpop.permute.xlu2 %2041  ;;  %v6611_v50 = vor.u32 %v7587_v40, %v6608_v24  ;;  %v7642_v7 = vld [vmem:[#allocation7 + $0xf8] sm:$0xff] }
 0x3aa   : > { %v3635_v12 = vadd.f32 %v3634_v52, %v3556_v41  ;;  %v2040_v38 = vpop.permute.xlu0 %2039  ;;  %v7611_v41 = vld [vmem:[#allocation7] sm:$0xff] }
 0x3ab   : > { %2099 = vst.msk [vmem:[#allocation4 + $0x12c] sm:$0xf] %vm2073_vm7, %v2040_v38  ;;  %3574 = vmatmul.bf16.gmra.mxu1 %v6595_v16  ;;  %v7619_v52 = vld [vmem:[#allocation7 + $0x40] sm:$0xff]  ;;  %5825 = vmatpush.bf16.msra.mxu3 %v7611_v41  ;;  %v7641_v16 = vld [vmem:[#allocation7 + $0xf0] sm:$0xff] }
 0x3ac   : > { %v3714_v6 = vadd.f32 %v3713_v57, %v3635_v12  ;;  %2296 = vst.msk [vmem:[#allocation4 + $0x12c] sm:$0xf] %vm2270_vm8, %v2237_v8  ;;  %5837 = vmatpush.bf16.msra.mxu1 %v7620_v33  ;;  %v7629_v12 = vld [vmem:[#allocation7 + $0x90] sm:$0xff]  ;;  %v3562_v33 = vpop.f32.mrf.mxu1 }
 0x3ad   : > { %5849 = vmatpush.bf16.msra.mxu2 %v7629_v12  ;;  %v3563_v28 = vadd.f32 %v8898_v21, %v3562_v33 }
 0x3ae   : > { %v3762_v49 = vmax.f32 %v3714_v6, 0.0  ;;  %v7649_v6 = vld [vmem:[#allocation7 + $0x130] sm:$0xff] }
 0x3af   : > { %5857 = vmatpush.bf16.msrb.mxu3 %v7642_v7 }
 0x3b0   : > { %3791 = vst.msk [vmem:[#allocation5 + $0x70] sm:$0xff] %vm3776_vm9, %v3762_v49  ;;  %3658 = vmatmul.bf16.gmra.mxu2 %v6611_v50  ;;  %v2235_v55 = vpop.permute.xlu1 %2234  ;;  %5838 = vmatpush.bf16.msra.mxu1 %v7619_v52 }
 0x3b1   : > { %v3636_v4 = vpop.f32.mrf.mxu2  ;;  %2295 = vst.msk [vmem:[#allocation4 + $0x120] sm:$0xf] %vm2270_vm8, %v2235_v55  ;;  %v9095_v51 = vpop.permute.xlu2 %2240  ;;  %v7639_v55 = vld [vmem:[#allocation7 + $0xe0] sm:$0xff] }
 0x3b2   : > { %v3637_v59 = vadd.f32 %v3636_v4, %v3558_v17  ;;  %v2520_v62 = vpop.permute.xlu0 %2519  ;;  %v7658_v4 = vld [vmem:[#allocation7 + $0x178] sm:$0xff] }
 0x3b3   : > { %2577 = vst.msk [vmem:[#allocation4 + $0x13c] sm:$0xf] %vm1876_vm6, %v2520_v62  ;;  %v7588_v19 = vld [vmem:[#allocation4 + $0x128] sm:$0xf0]  ;;  %5858 = vmatpush.bf16.msrb.mxu3 %v7641_v16 }
 0x3b4   : > { %v3716_v27 = vadd.f32 %v3715_v63, %v3637_v59  ;;  %2773 = vst.msk [vmem:[#allocation4 + $0x13c] sm:$0xf] %vm2073_vm7, %v9077_v23  ;;  %v3962_v23 = vld [vmem:[#allocation5 + $0x60] ss:$2 sm:$0x7f]  ;;  %5870 = vmatpush.bf16.msrb.mxu1 %v7650_v56 }
 0x3b5   : > { %v3965_v42 = vmax.f32 %v3962_v23, %v3964_v47  ;;  %v7635_v47 = vld [vmem:[#allocation7 + $0xc0] sm:$0xff] }
 0x3b6   : > { %v3763_v20 = vmax.f32 %v3716_v27, 0.0 }
 0x3b7   : > { %5859 = vmatpush.bf16.msrb.mxu3 %v7640_v53 }
 0x3b8   : > { %3792 = vst.msk [vmem:[#allocation5 + $0x78] sm:$0xff] %vm3776_vm9, %v3763_v20  ;;  %v2522_v29 = vpop.permute.xlu1 %2521  ;;  %v6606_v15 = vld [vmem:[#allocation4 + $0x120] sm:$0xf]  ;;  %5871 = vmatpush.bf16.msrb.mxu1 %v7649_v6  ;;  %v7652_v6 = vld [vmem:[#allocation7 + $0x148] sm:$0xff] }
 0x3b9   : > { %2578 = vst.msk [vmem:[#allocation4 + $0x148] sm:$0xf] %vm1876_vm6, %v2522_v29  ;;  %v3852_v54 = vpop.permute.xlu2 %3851  ;;  %v6607_v26 = vor.u32 %v7588_v19, %v6606_v15  ;;  %v7645_v20 = vld [vmem:[#allocation7 + $0x110] sm:$0xff]  ;;  %v7636_v15 = vld [vmem:[#allocation7 + $0xc8] sm:$0xff] }
 0x3ba   : > { %v2718_v8 = vpop.permute.xlu0 %2717  ;;  %3854 = vst.msk [vmem:[#allocation6 + $0x2] sm:$0x1] %vm9106_vm13, %v3852_v54  ;;  %v7644_v19 = vld [vmem:[#allocation7 + $0x108] sm:$0xff]  ;;  %v3561_v54 = vadd.f32 %v8898_v21, %v3560_v18 }
 0x3bb   : > { %2774 = vst.msk [vmem:[#allocation4 + $0x148] sm:$0xf] %vm2073_vm7, %v2718_v8  ;;  %3579 = vmatmul.bf16.gmra.mxu1 %v6607_v26  ;;  %5860 = vmatpush.bf16.msrb.mxu3 %v7639_v55  ;;  %v3718_v8 = vpop.f32.mrf.mxu3  ;;  %v7665_v55 = vld [vmem:[#allocation7 + $0x1b0] sm:$0xff] }
 0x3bc   : > { %2970 = vst.msk [vmem:[#allocation4 + $0x148] sm:$0xf] %vm2270_vm8, %v9082_v2  ;;  %5872 = vmatpush.bf16.msrb.mxu1 %v7648_v3 }
 0x3bf   : > { %v3967_v36 = vld [vmem:[#allocation5 + $0x70] ss:$2 sm:$0x7f]  ;;  %v3969_v46 = vld [vmem:[#allocation5 + $0x71] ss:$2 sm:$0x7f]  ;;  %5861 = vmatpush.bf16.msrb.mxu3 %v7638_v1 }
 0x3c0   : > { %v3970_v61 = vmax.f32 %v3967_v36, %v3969_v46  ;;  %v2912_v48 = vpop.permute.xlu1 %2911  ;;  %5873 = vmatpush.bf16.msrb.mxu1 %v7647_v58  ;;  %v7653_v46 = vld [vmem:[#allocation7 + $0x150] sm:$0xff] }
 0x3c1   : > { %2969 = vst.msk [vmem:[#allocation4 + $0x13c] sm:$0xf] %vm2270_vm8, %v2912_v48  ;;  %v3897_v37 = vpop.permute.xlu2 %3896  ;;  %v7673_v58 = vld [vmem:[#allocation7 + $0x1f0] sm:$0xff] }
 0x3c2   : > { %v1845_v2 = vpop.permute.xlu0 %1844  ;;  %v9117_v57 = vmax.f32 %v3965_v42, %v3970_v61  ;;  %3899 = vst.msk [vmem:[#allocation6 + $0x5] sm:$0x1] %vm9106_vm13, %v3897_v37 }
 0x3c3   : > { %1903 = vst.msk [vmem:[#allocation4 + $0x138] sm:$0xf] %vm1876_vm6, %v1845_v2  ;;  %v6620_v38 = vld [vmem:[#allocation4 + $0x144] sm:$0xf0]  ;;  %5862 = vmatpush.bf16.msrb.mxu3 %v7637_v13  ;;  %v3720_v2 = vpop.f32.mrf.mxu3 }
 0x3c4   : > { %2100 = vst.msk [vmem:[#allocation4 + $0x138] sm:$0xf] %vm2073_vm7, %v9088_v0  ;;  %3973 = vrot.lane.b32.xlu1 %v9117_v57, %s7892_s21  ;;  %v7628_v0 = vld [vmem:[#allocation7 + $0x88] sm:$0xff]  ;;  %5874 = vmatpush.bf16.msrb.mxu1 %v7646_v9 }
 0x3c5   : > { %3977 = vst [vmem:[#allocation1] sm:$0xff] %v9117_v57  ;;  %5850 = vmatpush.bf16.msra.mxu2 %v7628_v0  ;;  %v7666_v0 = vld [vmem:[#allocation7 + $0x1b8] sm:$0xff] }
 0x3c7   : > { %5863 = vmatpush.bf16.msrb.mxu3 %v7636_v15 }
 0x3c8   : > { %v1847_v40 = vpop.permute.xlu1 %1846  ;;  %v7590_v43 = vld [vmem:[#allocation4 + $0x13c] sm:$0xf]  ;;  %5875 = vmatpush.bf16.msrb.mxu1 %v7645_v20 }
 0x3c9   : > { %1904 = vst.msk [vmem:[#allocation4 + $0x144] sm:$0xf] %vm1876_vm6, %v1847_v40  ;;  %v3941_v24 = vpop.permute.xlu2 %3940  ;;  %v6623_v50 = vor.u32 %v7590_v43, %v6620_v38  ;;  %5851 = vmatpush.bf16.msra.mxu2 %v7627_v14 }
 0x3ca   : > { %v2044_v49 = vpop.permute.xlu0 %2043  ;;  %3943 = vst.msk [vmem:[#allocation6 + $0x8] sm:$0x1] %vm9106_vm13, %v3941_v24  ;;  %v7651_v24 = vld [vmem:[#allocation7 + $0x140] sm:$0xff] }
 0x3cb   : > { %2101 = vst.msk [vmem:[#allocation4 + $0x144] sm:$0xf] %vm2073_vm7, %v2044_v49  ;;  %3663 = vmatmul.bf16.gmra.mxu2 %v6623_v50  ;;  %5864 = vmatpush.bf16.msrb.mxu3 %v7635_v47  ;;  %v7674_v49 = vld [vmem:[#allocation7 + $0x1f8] sm:$0xff]  ;;  %v9173_v50 = vld [vmem:[%s9326_s4] ss:$0 sm:$0xff] }
 0x3cc   : > { %2298 = vst.msk [vmem:[#allocation4 + $0x144] sm:$0xf] %vm2270_vm8, %v9095_v51  ;;  %v3979_v17 = vld [vmem:[#allocation1 + $0x1] ss:$9 sm:$0xff]  ;;  %5876 = vmatpush.bf16.msrb.mxu1 %v7644_v19 }
 0x3cd   : > { %3981 = vst.msk [vmem:[#allocation6 + $0xb] sm:$0x1] %vm8662_vm10, %v3979_v17  ;;  %5883 = vmatpush.bf16.msrb.mxu2 %v7658_v4  ;;  %v3723_v17 = vpop.f32.mrf.mxu3  ;;  %v7660_v47 = vld [vmem:[#allocation7 + $0x188] sm:$0xff] }
 0x3ce   : > { %3982 = vst [vmem:[#allocation1] sm:$0xff] %v9117_v57 }
 0x3d0   : > { %v2239_v59 = vpop.permute.xlu1 %2238  ;;  %5877 = vmatpush.bf16.msrb.mxu1 %v7643_v5  ;;  %v7668_v5 = vld [vmem:[#allocation7 + $0x1c8] sm:$0xff] }
 0x3d1   : > { %2297 = vst.msk [vmem:[#allocation4 + $0x138] sm:$0xf] %vm2270_vm8, %v2239_v59  ;;  %5884 = vmatpush.bf16.msrb.mxu2 %v7657_v11 }
 0x3d2   : > { %v3825_v51 = vpop.permute.xlu0 %3824 }
 0x3d3   : > { %3830 = vst.msk [vmem:[#allocation6] sm:$0x1] %vm9106_vm13, %v3825_v51  ;;  %v7591_v22 = vld [vmem:[#allocation4 + $0x140] sm:$0xf0] }
 0x3d5   : > { %v3984_v62 = vld [vmem:[#allocation1 + $0x2] ss:$9 sm:$0xff]  ;;  %5885 = vmatpush.bf16.msrb.mxu2 %v7656_v34  ;;  %v3725_v20 = vpop.f32.mrf.mxu3 }
 0x3d6   : > { %3985 = vrot.lane.b32.xlu2 %v3984_v62, %s7892_s21  ;;  %3989 = vst [vmem:[#allocation1] sm:$0xff] %v9117_v57 }
 0x3d8   : > { %v3840_v32 = vpop.permute.xlu1 %3839  ;;  %v6618_v63 = vld [vmem:[#allocation4 + $0x138] sm:$0xf]  ;;  %v3565_v21 = vpop.f32.mrf.mxu1 }
 0x3d9   : > { %3842 = vst.msk [vmem:[#allocation6 + $0x1] sm:$0x1] %vm9106_vm13, %v3840_v32  ;;  %v6619_v10 = vor.u32 %v7591_v22, %v6618_v63  ;;  %5886 = vmatpush.bf16.msrb.mxu2 %v7655_v25  ;;  %v3566_v53 = vadd.f32 %v9173_v50, %v3565_v21  ;;  %v7664_v22 = vld [vmem:[#allocation7 + $0x1a8] sm:$0xff]  ;;  %v7662_v25 = vld [vmem:[#allocation7 + $0x198] sm:$0xff] }
 0x3da   : > { %v3873_v27 = vpop.permute.xlu0 %3872  ;;  %v7672_v32 = vld [vmem:[#allocation7 + $0x1e8] sm:$0xff] }
 0x3db   : > { %3875 = vst.msk [vmem:[#allocation6 + $0x3] sm:$0x1] %vm9106_vm13, %v3873_v27  ;;  %3584 = vmatmul.bf16.gmra.mxu1 %v6619_v10  ;;  %v7663_v27 = vld [vmem:[#allocation7 + $0x1a0] sm:$0xff] }
 0x3dc   : > { %v7671_v10 = vld [vmem:[#allocation7 + $0x1e0] sm:$0xff] }
 0x3dd   : > { %v3991_v29 = vld [vmem:[#allocation1 + $0x3] ss:$9 sm:$0xff]  ;;  %5887 = vmatpush.bf16.msrb.mxu2 %v7654_v39 }
 0x3de   : > { %3994 = vst [vmem:[#allocation1] sm:$0xff] %v9117_v57 }
 0x3df   : > { %3993 = vst.msk [vmem:[#allocation6 + $0xc] sm:$0x1] %vm8662_vm10, %v3991_v29 }
 0x3e0   : > { %v3885_v26 = vpop.permute.xlu1 %3884  ;;  %v3567_v51 = vpop.f32.mrf.mxu1 }
 0x3e1   : > { %v3639_v30 = vpop.f32.mrf.mxu2  ;;  %3887 = vst.msk [vmem:[#allocation6 + $0x4] sm:$0x1] %vm9106_vm13, %v3885_v26  ;;  %5888 = vmatpush.bf16.msrb.mxu2 %v7653_v46  ;;  %v3568_v63 = vadd.f32 %v9173_v50, %v3567_v51  ;;  %v7661_v26 = vld [vmem:[#allocation7 + $0x190] sm:$0xff]  ;;  %v7659_v46 = vld [vmem:[#allocation7 + $0x180] sm:$0xff] }
 0x3e2   : > { %v3909_v44 = vpop.permute.xlu0 %3908  ;;  %v3640_v23 = vadd.f32 %v3639_v30, %v3561_v54  ;;  %v7669_v30 = vld [vmem:[#allocation7 + $0x1d0] sm:$0xff] }
 0x3e3   : > { %3911 = vst.msk [vmem:[#allocation6 + $0x6] sm:$0x1] %vm9106_vm13, %v3909_v44 }
 0x3e4   : > { %v3719_v31 = vadd.f32 %v3718_v8, %v3640_v23  ;;  %v7670_v8 = vld [vmem:[#allocation7 + $0x1d8] sm:$0xff] }
 0x3e5   : > { %v3996_v45 = vld [vmem:[#allocation1 + $0x4] ss:$9 sm:$0xff]  ;;  %5889 = vmatpush.bf16.msrb.mxu2 %v7652_v6 }
 0x3e6   : > { %v3764_v36 = vmax.f32 %v3719_v31, 0.0  ;;  %3997 = vrot.lane.b32.xlu0 %v3996_v45, %s7892_s21  ;;  %4001 = vst [vmem:[#allocation1] sm:$0xff] %v9117_v57 }
 0x3e8   : > { %3793 = vst.msk [vmem:[#allocation5 + $0x80] sm:$0xff] %vm3776_vm9, %v3764_v36  ;;  %v3929_v42 = vpop.permute.xlu1 %3928 }
 0x3e9   : > { %v3641_v61 = vpop.f32.mrf.mxu2  ;;  %3931 = vst.msk [vmem:[#allocation6 + $0x7] sm:$0x1] %vm9106_vm13, %v3929_v42  ;;  %5890 = vmatpush.bf16.msrb.mxu2 %v7651_v24 }
 0x3ea   : > { %v3642_v48 = vadd.f32 %v3641_v61, %v3563_v28  ;;  %v7667_v28 = vld [vmem:[#allocation7 + $0x1c0] sm:$0xff] }
 0x3ec   : > { %v3721_v37 = vadd.f32 %v3720_v2, %v3642_v48  ;;  %v3728_v48 = vpop.f32.mrf.mxu3 }
 0x3ed   : > { %v4003_v41 = vld [vmem:[#allocation1 + $0x5] ss:$9 sm:$0xff] }
 0x3ee   : > { %v3765_v52 = vmax.f32 %v3721_v37, 0.0  ;;  %4006 = vst [vmem:[#allocation1] sm:$0xff] %v9117_v57 }
 0x3ef   : > { %v3953_v7 = vpop.permute.xlu0 %3952  ;;  %4005 = vst.msk [vmem:[#allocation6 + $0xd] sm:$0x1] %vm8662_vm10, %v4003_v41 }
 0x3f0   : > { %3794 = vst.msk [vmem:[#allocation5 + $0x88] sm:$0xff] %vm3776_vm9, %v3765_v52  ;;  %v9163_v56 = vld [vmem:[#allocation6] sm:$0xff] }
 0x3f1   : > { %3955 = vst.msk [vmem:[#allocation6 + $0x9] sm:$0x1] %vm9106_vm13, %v3953_v7  ;;  %v4171_v12 = vperm.slane %v9163_v56, 0  ;;  %v4172_v38 = vperm.slane %v9163_v56, 1  ;;  %v4173_v16 = vperm.slane %v9163_v56, 2  ;;  %v4174_v11 = vperm.slane %v9163_v56, 3 }
 0x3f2   : > { %v4175_v13 = vperm.slane %v9163_v56, 4  ;;  %v4176_v18 = vperm.slane %v9163_v56, 5  ;;  %v4177_v42 = vperm.slane %v9163_v56, 6  ;;  %v4178_v61 = vperm.slane %v9163_v56, 7 }
 0x3f3   : > { %v4221_v57 = vpack.c.bf16 %v4171_v12, %v4171_v12  ;;  %v4222_v40 = vpack.c.bf16 %v4172_v38, %v4172_v38  ;;  %v4223_v43 = vpack.c.bf16 %v4173_v16, %v4173_v16  ;;  %v4224_v15 = vpack.c.bf16 %v4174_v11, %v4174_v11 }
 0x3f4   : > { %v4225_v19 = vpack.c.bf16 %v4175_v13, %v4175_v13  ;;  %v4226_v54 = vpack.c.bf16 %v4176_v18, %v4176_v18  ;;  %v4227_v37 = vpack.c.bf16 %v4177_v42, %v4177_v42  ;;  %v4228_v41 = vpack.c.bf16 %v4178_v61, %v4178_v61  ;;  %v3730_v38 = vpop.f32.mrf.mxu3 }
 0x3f5   : > { %v4008_v3 = vld [vmem:[#allocation1 + $0x6] ss:$9 sm:$0xff]  ;;  %5826 = vmatmul.bf16.vlgmr.msra.gmra.mxu3 %v4221_v57  ;;  %5839 = vmatmul.bf16.vlgmr.msra.gmra.mxu1 %v4222_v40 }
 0x3f6   : > { %4009 = vrot.lane.b32.xlu1 %v4008_v3, %s7892_s21  ;;  %5852 = vmatmul.bf16.vlgmr.msra.gmra.mxu2 %v4223_v43  ;;  %v3644_v14 = vpop.f32.mrf.mxu2 }
 0x3f7   : > { %v3645_v4 = vadd.f32 %v3644_v14, %v3566_v53  ;;  %5896 = vmatpush.bf16.msra.mxu3 %v7666_v0  ;;  %5909 = vmatpush.bf16.msra.mxu1 %v7674_v49  ;;  %v4014_v44 = vld [vmem:[#allocation5 + $0x80] ss:$2 sm:$0x7f]  ;;  %v4016_v23 = vld [vmem:[#allocation5 + $0x81] ss:$2 sm:$0x7f] }
 0x3f8   : > { %v4017_v33 = vmax.f32 %v4014_v44, %v4016_v23 }
 0x3f9   : > { %v3724_v59 = vadd.f32 %v3723_v17, %v3645_v4 }
 0x3fb   : > { %v3766_v62 = vmax.f32 %v3724_v59, 0.0  ;;  %5897 = vmatpush.bf16.msra.mxu3 %v7665_v55  ;;  %5910 = vmatpush.bf16.msra.mxu1 %v7673_v58 }
 0x3fc   : > { %v3733_v53 = vpop.f32.mrf.mxu3 }
 0x3fd   : > { %3795 = vst.msk [vmem:[#allocation5 + $0x90] sm:$0xff] %vm3776_vm9, %v3766_v62 }
 0x3fe   : > { %v3646_v1 = vpop.f32.mrf.mxu2 }
 0x3ff   : > { %v3647_v9 = vadd.f32 %v3646_v1, %v3568_v63  ;;  %5898 = vmatpush.bf16.msra.mxu3 %v7664_v22  ;;  %5911 = vmatpush.bf16.msra.mxu1 %v7672_v32 }
 0x401   : > { %v3726_v34 = vadd.f32 %v3725_v20, %v3647_v9 }
 0x403   : > { %v3767_v29 = vmax.f32 %v3726_v34, 0.0  ;;  %5899 = vmatpush.bf16.msra.mxu3 %v7663_v27  ;;  %5912 = vmatpush.bf16.msra.mxu1 %v7671_v10 }
 0x404   : > { %v3735_v62 = vpop.f32.mrf.mxu3 }
 0x405   : > { %3796 = vst.msk [vmem:[#allocation5 + $0x98] sm:$0xff] %vm3776_vm9, %v3767_v29  ;;  %5865 = vmatmul.bf16.vlgmr.msrb.gmra.mxu3 %v4224_v15  ;;  %5878 = vmatmul.bf16.vlgmr.msrb.gmra.mxu1 %v4225_v19 }
 0x406   : > { %5891 = vmatmul.bf16.vlgmr.msrb.gmra.mxu2 %v4226_v54 }
 0x407   : > { %5900 = vmatpush.bf16.msra.mxu3 %v7662_v25  ;;  %5913 = vmatpush.bf16.msra.mxu1 %v7670_v8 }
 0x40b   : > { %5901 = vmatpush.bf16.msra.mxu3 %v7661_v26  ;;  %5914 = vmatpush.bf16.msra.mxu1 %v7669_v30 }
 0x40c   : > { %v4019_v39 = vld [vmem:[#allocation5 + $0x90] ss:$2 sm:$0x7f]  ;;  %v4021_v31 = vld [vmem:[#allocation5 + $0x91] ss:$2 sm:$0x7f]  ;;  %v3738_v34 = vpop.f32.mrf.mxu3 }
 0x40d   : > { %v4022_v45 = vmax.f32 %v4019_v39, %v4021_v31 }
 0x40f   : > { %v9183_v36 = vmax.f32 %v4017_v33, %v4022_v45  ;;  %5902 = vmatpush.bf16.msra.mxu3 %v7660_v47  ;;  %5915 = vmatpush.bf16.msra.mxu1 %v7668_v5 }
 0x411   : > { %4024 = vst.msk [vmem:[#allocation6 + $0xe] sm:$0x1] %vm8662_vm10, %v9183_v36 }
 0x412   : > { %4026 = vst [vmem:[#allocation1] sm:$0xff] %v9183_v36 }
 0x413   : > { %v3649_v2 = vpop.f32.mrf.mxu2  ;;  %5903 = vmatpush.bf16.msra.mxu3 %v7659_v46  ;;  %5916 = vmatpush.bf16.msra.mxu1 %v7667_v28 }
 0x416   : > { %5904 = vmatmul.bf16.vlgmr.msra.gmra.mxu3 %v4227_v37  ;;  %5917 = vmatmul.bf16.vlgmr.msra.gmra.mxu1 %v4228_v41  ;;  %v7681_v41 = vld [vmem:[#allocation7 + $0x230] sm:$0xff] }
 0x418   : > { %v3570_v52 = vpop.f32.mrf.mxu1 }
 0x419   : > { %v3571_v7 = vadd.f32 %v9173_v50, %v3570_v52  ;;  %v4028_v21 = vld [vmem:[#allocation1 + $0x1] ss:$9 sm:$0xff] }
 0x41a   : > { %4029 = vrot.lane.b32.xlu2 %v4028_v21, %s7892_s21  ;;  %4033 = vst [vmem:[#allocation1] sm:$0xff] %v9183_v36  ;;  %v7689_v52 = vld [vmem:[#allocation7 + $0x270] sm:$0xff] }
 0x41b   : > { %v3650_v56 = vadd.f32 %v3649_v2, %v3571_v7  ;;  %v3651_v12 = vpop.f32.mrf.mxu2  ;;  %v7690_v2 = vld [vmem:[#allocation7 + $0x278] sm:$0xff] }
 0x41c   : > { %5935 = vmatpush.bf16.msrb.mxu3 %v7690_v2  ;;  %v7712_v2 = vld [vmem:[#allocation7 + $0x328] sm:$0xff] }
 0x41d   : > { %v3729_v16 = vadd.f32 %v3728_v48, %v3650_v56  ;;  %v7682_v48 = vld [vmem:[#allocation7 + $0x238] sm:$0xff] }
 0x41e   : > { %5922 = vmatpush.bf16.msra.mxu2 %v7682_v48  ;;  %v7704_v48 = vld [vmem:[#allocation7 + $0x2e8] sm:$0xff] }
 0x41f   : > { %v3768_v6 = vmax.f32 %v3729_v16, 0.0  ;;  %v7680_v16 = vld [vmem:[#allocation7 + $0x228] sm:$0xff] }
 0x420   : > { %v3572_v57 = vpop.f32.mrf.mxu1  ;;  %5936 = vmatpush.bf16.msrb.mxu3 %v7689_v52  ;;  %v7691_v52 = vld [vmem:[#allocation7 + $0x280] sm:$0xff] }
 0x421   : > { %3797 = vst.msk [vmem:[#allocation5 + $0xa0] sm:$0xff] %vm3776_vm9, %v3768_v6  ;;  %v3573_v40 = vadd.f32 %v9173_v50, %v3572_v57  ;;  %v4035_v43 = vld [vmem:[#allocation1 + $0x2] ss:$9 sm:$0xff] }
 0x422   : > { %4038 = vst [vmem:[#allocation1] sm:$0xff] %v9183_v36  ;;  %5923 = vmatpush.bf16.msra.mxu2 %v7681_v41  ;;  %v7688_v6 = vld [vmem:[#allocation7 + $0x268] sm:$0xff] }
 0x423   : > { %v3652_v0 = vadd.f32 %v3651_v12, %v3573_v40  ;;  %4037 = vst.msk [vmem:[#allocation6 + $0xf] sm:$0x1] %vm8662_vm10, %v4035_v43  ;;  %v3654_v49 = vpop.f32.mrf.mxu2  ;;  %v7698_v43 = vld [vmem:[#allocation7 + $0x2b8] sm:$0xff] }
 0x424   : > { %5937 = vmatpush.bf16.msrb.mxu3 %v7688_v6  ;;  %5948 = vmatpush.bf16.msrb.mxu1 %v7698_v43  ;;  %v7702_v6 = vld [vmem:[#allocation7 + $0x2d8] sm:$0xff] }
 0x425   : > { %v3731_v24 = vadd.f32 %v3730_v38, %v3652_v0 }
 0x426   : > { %5924 = vmatpush.bf16.msra.mxu2 %v7680_v16 }
 0x427   : > { %v3769_v3 = vmax.f32 %v3731_v24, 0.0  ;;  %v7687_v24 = vld [vmem:[#allocation7 + $0x260] sm:$0xff] }
 0x428   : > { %v3575_v17 = vpop.f32.mrf.mxu1  ;;  %5938 = vmatpush.bf16.msrb.mxu3 %v7687_v24  ;;  %v7709_v24 = vld [vmem:[#allocation7 + $0x310] sm:$0xff] }
 0x429   : > { %3798 = vst.msk [vmem:[#allocation5 + $0xa8] sm:$0xff] %vm3776_vm9, %v3769_v3  ;;  %v3576_v14 = vadd.f32 %v9173_v50, %v3575_v17  ;;  %v4040_v4 = vld [vmem:[#allocation1 + $0x3] ss:$9 sm:$0xff] }
 0x42a   : > { %4041 = vrot.lane.b32.xlu0 %v4040_v4, %s7892_s21  ;;  %4045 = vst [vmem:[#allocation1] sm:$0xff] %v9183_v36 }
 0x42b   : > { %v3655_v55 = vadd.f32 %v3654_v49, %v3576_v14  ;;  %v3656_v59 = vpop.f32.mrf.mxu2  ;;  %v7679_v49 = vld [vmem:[#allocation7 + $0x220] sm:$0xff] }
 0x42c   : > { %5925 = vmatpush.bf16.msra.mxu2 %v7679_v49  ;;  %v7701_v49 = vld [vmem:[#allocation7 + $0x2d0] sm:$0xff] }
 0x42d   : > { %v3734_v58 = vadd.f32 %v3733_v53, %v3655_v55 }
 0x42f   : > { %v3770_v51 = vmax.f32 %v3734_v58, 0.0 }
 0x430   : > { %v3577_v22 = vpop.f32.mrf.mxu1  ;;  %v3986_v63 = vpop.permute.xlu2 %3985  ;;  %v4063_v25 = vld [vmem:[#allocation5 + $0xa0] ss:$2 sm:$0x7f]  ;;  %v4065_v8 = vld [vmem:[#allocation5 + $0xa1] ss:$2 sm:$0x7f] }
 0x431   : > { %3799 = vst.msk [vmem:[#allocation5 + $0xb0] sm:$0xff] %vm3776_vm9, %v3770_v51  ;;  %v4047_v32 = vld [vmem:[#allocation1 + $0x4] ss:$9 sm:$0xff]  ;;  %v3578_v1 = vadd.f32 %v9173_v50, %v3577_v22  ;;  %v4066_v47 = vmax.f32 %v4063_v25, %v4065_v8 }
 0x432   : > { %4049 = vst.msk [vmem:[#allocation6 + $0x10] sm:$0x1] %vm8662_vm10, %v4047_v32  ;;  %v7686_v22 = vld [vmem:[#allocation7 + $0x258] sm:$0xff]  ;;  %v7697_v32 = vld [vmem:[#allocation7 + $0x2b0] sm:$0xff]  ;;  %v7675_v25 = vld [vmem:[#allocation7 + $0x200] sm:$0xff] }
 0x433   : > { %4050 = vst [vmem:[#allocation1] sm:$0xff] %v9183_v36  ;;  %v3657_v9 = vadd.f32 %v3656_v59, %v3578_v1  ;;  %v3659_v13 = vpop.f32.mrf.mxu2  ;;  %5939 = vmatpush.bf16.msrb.mxu3 %v7686_v22  ;;  %5949 = vmatpush.bf16.msrb.mxu1 %v7697_v32  ;;  %v7696_v1 = vld [vmem:[#allocation7 + $0x2a8] sm:$0xff]  ;;  %v7699_v32 = vld [vmem:[#allocation7 + $0x2c0] sm:$0xff] }
 0x434   : > { %3988 = vst.msk [vmem:[#allocation6 + $0xb] sm:$0x1] %vm9106_vm13, %v3986_v63  ;;  %v7685_v63 = vld [vmem:[#allocation7 + $0x250] sm:$0xff] }
 0x435   : > { %v3736_v27 = vadd.f32 %v3735_v62, %v3657_v9  ;;  %v7678_v62 = vld [vmem:[#allocation7 + $0x218] sm:$0xff] }
 0x436   : > { %v3974_v10 = vpop.permute.xlu1 %3973  ;;  %5926 = vmatpush.bf16.msra.mxu2 %v7678_v62 }
 0x437   : > { %3976 = vst.msk [vmem:[#allocation6 + $0xa] sm:$0x1] %vm9106_vm13, %v3974_v10  ;;  %v3771_v11 = vmax.f32 %v3736_v27, 0.0  ;;  %5940 = vmatpush.bf16.msrb.mxu3 %v7685_v63  ;;  %5950 = vmatpush.bf16.msrb.mxu1 %v7696_v1  ;;  %v7707_v63 = vld [vmem:[#allocation7 + $0x300] sm:$0xff]  ;;  %v7718_v1 = vld [vmem:[#allocation7 + $0x358] sm:$0xff] }
 0x438   : > { %v3580_v20 = vpop.f32.mrf.mxu1 }
 0x439   : > { %3800 = vst.msk [vmem:[#allocation5 + $0xb8] sm:$0xff] %vm3776_vm9, %v3771_v11  ;;  %v3581_v18 = vadd.f32 %v9173_v50, %v3580_v20  ;;  %v7676_v11 = vld [vmem:[#allocation7 + $0x208] sm:$0xff]  ;;  %v7695_v20 = vld [vmem:[#allocation7 + $0x2a0] sm:$0xff] }
 0x43a   : > { %v4052_v29 = vld [vmem:[#allocation1 + $0x5] ss:$9 sm:$0xff] }
 0x43b   : > { %v3660_v15 = vadd.f32 %v3659_v13, %v3581_v18  ;;  %4053 = vrot.lane.b32.xlu1 %v4052_v29, %s7892_s21  ;;  %4057 = vst [vmem:[#allocation1] sm:$0xff] %v9183_v36  ;;  %v3661_v39 = vpop.f32.mrf.mxu2  ;;  %v3740_v36 = vpop.f32.mrf.mxu3  ;;  %v7684_v13 = vld [vmem:[#allocation7 + $0x248] sm:$0xff]  ;;  %5951 = vmatpush.bf16.msrb.mxu1 %v7695_v20 }
 0x43c   : > { %5941 = vmatpush.bf16.msrb.mxu3 %v7684_v13  ;;  %v7716_v13 = vld [vmem:[#allocation7 + $0x348] sm:$0xff] }
 0x43d   : > { %v3739_v19 = vadd.f32 %v3738_v34, %v3660_v15 }
 0x43f   : > { %v3772_v54 = vmax.f32 %v3739_v19, 0.0 }
 0x440   : > { %v3582_v26 = vpop.f32.mrf.mxu1  ;;  %v4068_v30 = vld [vmem:[#allocation5 + $0xb0] ss:$2 sm:$0x7f]  ;;  %v4070_v44 = vld [vmem:[#allocation5 + $0xb1] ss:$2 sm:$0x7f] }
 0x441   : > { %3801 = vst.msk [vmem:[#allocation5 + $0xc0] sm:$0xff] %vm3776_vm9, %v3772_v54  ;;  %v3583_v23 = vadd.f32 %v9173_v50, %v3582_v26  ;;  %v4071_v5 = vmax.f32 %v4068_v30, %v4070_v44  ;;  %v7683_v54 = vld [vmem:[#allocation7 + $0x240] sm:$0xff]  ;;  %v7694_v26 = vld [vmem:[#allocation7 + $0x298] sm:$0xff] }
 0x442   : > { %v4059_v31 = vld [vmem:[#allocation1 + $0x6] ss:$9 sm:$0xff]  ;;  %5942 = vmatpush.bf16.msrb.mxu3 %v7683_v54  ;;  %5952 = vmatpush.bf16.msrb.mxu1 %v7694_v26 }
 0x443   : > { %v3662_v33 = vadd.f32 %v3661_v39, %v3583_v23  ;;  %v9218_v45 = vmax.f32 %v4066_v47, %v4071_v5  ;;  %4061 = vst.msk [vmem:[#allocation6 + $0x11] sm:$0x1] %vm8662_vm10, %v4059_v31  ;;  %v3743_v12 = vpop.f32.mrf.mxu3  ;;  %v7706_v44 = vld [vmem:[#allocation7 + $0x2f8] sm:$0xff]  ;;  %v4638_v5 = vld [vmem:[%s9328_s6] sm:$0x1]  ;;  %v7693_v39 = vld [vmem:[#allocation7 + $0x290] sm:$0xff] }
 0x444   : > { %v7714_v23 = vld [vmem:[#allocation7 + $0x338] sm:$0xff] }
 0x445   : > { %v3741_v46 = vadd.f32 %v3740_v36, %v3662_v33  ;;  %4074 = vrot.lane.b32.xlu2 %v9218_v45, %s7892_s21  ;;  %4078 = vst [vmem:[#allocation1] sm:$0xff] %v9218_v45  ;;  %v7705_v33 = vld [vmem:[#allocation7 + $0x2f0] sm:$0xff] }
 0x446   : > { %5974 = vmatpush.bf16.msra.mxu3 %v7714_v23  ;;  %5953 = vmatpush.bf16.msrb.mxu1 %v7693_v39 }
 0x447   : > { %v3773_v28 = vmax.f32 %v3741_v46, 0.0 }
 0x449   : > { %3802 = vst.msk [vmem:[#allocation5 + $0xc8] sm:$0xff] %vm3776_vm9, %v3773_v28 }
 0x44b   : > { %v3745_v4 = vpop.f32.mrf.mxu3 }
 0x44c   : > { %v4080_v42 = vld [vmem:[#allocation1 + $0x1] ss:$9 sm:$0xff] }
 0x44d   : > { %4083 = vst [vmem:[#allocation1] sm:$0xff] %v9218_v45 }
 0x44e   : > { %4082 = vst.msk [vmem:[#allocation6 + $0x12] sm:$0x1] %vm8662_vm10, %v4080_v42  ;;  %v3664_v37 = vpop.f32.mrf.mxu2 }
 0x450   : > { %v4115_v27 = vld [vmem:[#allocation5 + $0xc0] ss:$2 sm:$0x7f]  ;;  %v4117_v10 = vld [vmem:[#allocation5 + $0xc1] ss:$2 sm:$0x7f] }
 0x451   : > { %v4118_v29 = vmax.f32 %v4115_v27, %v4117_v10  ;;  %v7717_v27 = vld [vmem:[#allocation7 + $0x350] sm:$0xff] }
 0x454   : > { %v4085_v61 = vld [vmem:[#allocation1 + $0x2] ss:$9 sm:$0xff] }
 0x455   : > { %4086 = vrot.lane.b32.xlu0 %v4085_v61, %s7892_s21  ;;  %4090 = vst [vmem:[#allocation1] sm:$0xff] %v9218_v45  ;;  %v7692_v61 = vld [vmem:[#allocation7 + $0x288] sm:$0xff] }
 0x456   : > { %v3666_v17 = vpop.f32.mrf.mxu2  ;;  %5954 = vmatpush.bf16.msrb.mxu1 %v7692_v61  ;;  %v7746_v61 = vld [vmem:[#allocation7 + $0x438] sm:$0xff] }
 0x458   : > { %v3998_v7 = vpop.permute.xlu0 %3997  ;;  %v3585_v21 = vpop.f32.mrf.mxu1 }
 0x459   : > { %4000 = vst.msk [vmem:[#allocation6 + $0xc] sm:$0x1] %vm9106_vm13, %v3998_v7  ;;  %v3586_v56 = vadd.f32 %v9173_v50, %v3585_v21  ;;  %v7703_v21 = vld [vmem:[#allocation7 + $0x2e0] sm:$0xff] }
 0x45a   : > { %5955 = vmatpush.bf16.msrb.mxu1 %v7691_v52  ;;  %v7726_v52 = vld [vmem:[#allocation7 + $0x398] sm:$0xff] }
 0x45b   : > { %v3665_v38 = vadd.f32 %v3664_v37, %v3586_v56  ;;  %v7711_v56 = vld [vmem:[#allocation7 + $0x320] sm:$0xff] }
 0x45c   : > { %v4092_v57 = vld [vmem:[#allocation1 + $0x3] ss:$9 sm:$0xff] }
 0x45d   : > { %v3744_v40 = vadd.f32 %v3743_v12, %v3665_v38  ;;  %4095 = vst [vmem:[#allocation1] sm:$0xff] %v9218_v45  ;;  %v7722_v38 = vld [vmem:[#allocation7 + $0x378] sm:$0xff] }
 0x45e   : > { %4094 = vst.msk [vmem:[#allocation6 + $0x13] sm:$0x1] %vm8662_vm10, %v4092_v57  ;;  %v7710_v57 = vld [vmem:[#allocation7 + $0x318] sm:$0xff]  ;;  %5987 = vmatpush.bf16.msra.mxu1 %v7722_v38  ;;  %v7745_v38 = vld [vmem:[#allocation7 + $0x430] sm:$0xff] }
 0x45f   : > { %v3774_v0 = vmax.f32 %v3744_v40, 0.0  ;;  %v7721_v40 = vld [vmem:[#allocation7 + $0x370] sm:$0xff] }
 0x460   : > { %v3587_v53 = vpop.f32.mrf.mxu1 }
 0x461   : > { %3803 = vst.msk [vmem:[#allocation5 + $0xd0] sm:$0xff] %vm3776_vm9, %v3774_v0  ;;  %v3588_v3 = vadd.f32 %v9173_v50, %v3587_v53  ;;  %v7677_v50 = vld [vmem:[#allocation7 + $0x210] sm:$0xff] }
 0x462   : > { %5927 = vmatpush.bf16.msra.mxu2 %v7677_v50  ;;  %5988 = vmatpush.bf16.msra.mxu1 %v7721_v40  ;;  %v7724_v40 = vld [vmem:[#allocation7 + $0x388] sm:$0xff] }
 0x463   : > { %v3667_v14 = vadd.f32 %v3666_v17, %v3588_v3  ;;  %v7720_v17 = vld [vmem:[#allocation7 + $0x368] sm:$0xff] }
 0x464   : > { %v4097_v55 = vld [vmem:[#allocation1 + $0x4] ss:$9 sm:$0xff] }
 0x465   : > { %v3746_v58 = vadd.f32 %v3745_v4, %v3667_v14  ;;  %4098 = vrot.lane.b32.xlu1 %v4097_v55, %s7892_s21  ;;  %4102 = vst [vmem:[#allocation1] sm:$0xff] %v9218_v45  ;;  %v7700_v55 = vld [vmem:[#allocation7 + $0x2c8] sm:$0xff] }
 0x466   : > { %5928 = vmatpush.bf16.msra.mxu2 %v7676_v11  ;;  %5989 = vmatpush.bf16.msra.mxu1 %v7720_v17 }
 0x467   : > { %v3775_v59 = vmax.f32 %v3746_v58, 0.0 }
 0x468   : > { %v4010_v51 = vpop.permute.xlu1 %4009 }
 0x469   : > { %3804 = vst.msk [vmem:[#allocation5 + $0xd8] sm:$0xff] %vm3776_vm9, %v3775_v59  ;;  %v7708_v59 = vld [vmem:[#allocation7 + $0x308] sm:$0xff] }
 0x46a   : > { %4012 = vst.msk [vmem:[#allocation6 + $0xd] sm:$0x1] %vm9106_vm13, %v4010_v51  ;;  %5929 = vmatpush.bf16.msra.mxu2 %v7675_v25  ;;  %v7719_v51 = vld [vmem:[#allocation7 + $0x360] sm:$0xff] }
 0x46b   : > { %5990 = vmatpush.bf16.msra.mxu1 %v7719_v51 }
 0x46c   : > { %v4104_v9 = vld [vmem:[#allocation1 + $0x5] ss:$9 sm:$0xff] }
 0x46d   : > { %4106 = vst.msk [vmem:[#allocation6 + $0x14] sm:$0x1] %vm8662_vm10, %v4104_v9 }
 0x46e   : > { %4107 = vst [vmem:[#allocation1] sm:$0xff] %v9218_v45  ;;  %5961 = vmatpush.bf16.msrb.mxu2 %v7706_v44  ;;  %v7713_v45 = vld [vmem:[#allocation7 + $0x330] sm:$0xff] }
 0x46f   : > { %5975 = vmatpush.bf16.msra.mxu3 %v7713_v45  ;;  %5991 = vmatpush.bf16.msra.mxu1 %v7718_v1  ;;  %v7751_v1 = vld [vmem:[#allocation7 + $0x460] sm:$0xff] }
 0x470   : > { %v4120_v18 = vld [vmem:[#allocation5 + $0xd0] ss:$2 sm:$0x7f]  ;;  %v4122_v34 = vld [vmem:[#allocation5 + $0xd1] ss:$2 sm:$0x7f] }
 0x471   : > { %v4123_v15 = vmax.f32 %v4120_v18, %v4122_v34 }
 0x472   : > { %v5840_v19 = vpop.f32.mrf.mxu1  ;;  %5962 = vmatpush.bf16.msrb.mxu2 %v7705_v33  ;;  %v7738_v33 = vld [vmem:[#allocation7 + $0x3f8] sm:$0xff] }
 0x473   : > { %v9247_v8 = vmax.f32 %v4118_v29, %v4123_v15  ;;  %5976 = vmatpush.bf16.msra.mxu3 %v7712_v2  ;;  %5992 = vmatpush.bf16.msra.mxu1 %v7717_v27  ;;  %v7715_v15 = vld [vmem:[#allocation7 + $0x340] sm:$0xff] }
 0x474   : > { %v4030_v30 = vpop.permute.xlu2 %4029  ;;  %v7759_v27 = vld [vmem:[#allocation7 + $0x4a0] sm:$0xff] }
 0x475   : > { %4125 = vst.msk [vmem:[#allocation6 + $0x15] sm:$0x1] %vm8662_vm10, %v9247_v8  ;;  %v4109_v47 = vld [vmem:[#allocation1 + $0x6] ss:$9 sm:$0xff] }
 0x476   : > { %4032 = vst.msk [vmem:[#allocation6 + $0xe] sm:$0x1] %vm9106_vm13, %v4030_v30  ;;  %4110 = vrot.lane.b32.xlu2 %v4109_v47, %s7892_s21  ;;  %5963 = vmatpush.bf16.msrb.mxu2 %v7704_v48  ;;  %v7730_v47 = vld [vmem:[#allocation7 + $0x3b8] sm:$0xff]  ;;  %v7727_v48 = vld [vmem:[#allocation7 + $0x3a0] sm:$0xff] }
 0x477   : > { %4127 = vst [vmem:[#allocation1] sm:$0xff] %v9247_v8  ;;  %5977 = vmatpush.bf16.msra.mxu3 %v7711_v56  ;;  %5993 = vmatpush.bf16.msra.mxu1 %v7716_v13  ;;  %v7734_v56 = vld [vmem:[#allocation7 + $0x3d8] sm:$0xff] }
 0x478   : > { %v5827_v31 = vpop.f32.mrf.mxu3  ;;  %v7770_v13 = vld [vmem:[#allocation7 + $0x4f8] sm:$0xff] }
 0x479   : > { %v5828_v36 = vadd.f32 %v5827_v31, %v4638_v5  ;;  %v5853_v46 = vpop.f32.mrf.mxu2 }
 0x47a   : > { %v5842_v28 = vpop.f32.mrf.mxu1  ;;  %5964 = vmatpush.bf16.msrb.mxu2 %v7703_v21 }
 0x47b   : > { %v5841_v42 = vadd.f32 %v5840_v19, %v5828_v36  ;;  %5978 = vmatpush.bf16.msra.mxu3 %v7710_v57  ;;  %5994 = vmatpush.bf16.msra.mxu1 %v7715_v15  ;;  %v7737_v36 = vld [vmem:[#allocation7 + $0x3f0] sm:$0xff]  ;;  %v7728_v28 = vld [vmem:[#allocation7 + $0x3a8] sm:$0xff] }
 0x47c   : > { %v7744_v57 = vld [vmem:[#allocation7 + $0x428] sm:$0xff]  ;;  %v7749_v15 = vld [vmem:[#allocation7 + $0x450] sm:$0xff] }
 0x47d   : > { %v5854_v37 = vadd.f32 %v5853_v46, %v5841_v42  ;;  %v7736_v42 = vld [vmem:[#allocation7 + $0x3e8] sm:$0xff] }
 0x47e   : > { %v4129_v41 = vld [vmem:[#allocation1 + $0x1] ss:$9 sm:$0xff]  ;;  %5965 = vmatpush.bf16.msrb.mxu2 %v7702_v6 }
 0x47f   : > { %4130 = vrot.lane.b32.xlu0 %v4129_v41, %s7892_s21  ;;  %4134 = vst [vmem:[#allocation1] sm:$0xff] %v9247_v8  ;;  %5979 = vmatpush.bf16.msra.mxu3 %v7709_v24  ;;  %v7733_v6 = vld [vmem:[#allocation7 + $0x3d0] sm:$0xff]  ;;  %v7731_v24 = vld [vmem:[#allocation7 + $0x3c0] sm:$0xff] }
 0x480   : > { %v5829_v7 = vpop.f32.mrf.mxu3 }
 0x481   : > { %v5855_v12 = vpop.f32.mrf.mxu2 }
 0x482   : > { %v5879_v16 = vpop.f32.mrf.mxu1  ;;  %5966 = vmatpush.bf16.msrb.mxu2 %v7701_v49  ;;  %v7723_v49 = vld [vmem:[#allocation7 + $0x380] sm:$0xff] }
 0x483   : > { %5980 = vmatpush.bf16.msra.mxu3 %v7708_v59  ;;  %v7753_v59 = vld [vmem:[#allocation7 + $0x470] sm:$0xff] }
 0x486   : > { %v4136_v43 = vld [vmem:[#allocation1 + $0x2] ss:$9 sm:$0xff]  ;;  %5967 = vmatpush.bf16.msrb.mxu2 %v7700_v55 }
 0x487   : > { %4138 = vst.msk [vmem:[#allocation6 + $0x16] sm:$0x1] %vm8662_vm10, %v4136_v43  ;;  %5981 = vmatpush.bf16.msra.mxu3 %v7707_v63  ;;  %v7732_v43 = vld [vmem:[#allocation7 + $0x3c8] sm:$0xff] }
 0x488   : > { %4139 = vst [vmem:[#allocation1] sm:$0xff] %v9247_v8  ;;  %v5866_v0 = vpop.f32.mrf.mxu3  ;;  %v7740_v63 = vld [vmem:[#allocation7 + $0x408] sm:$0xff] }
 0x489   : > { %v5867_v53 = vadd.f32 %v5866_v0, %v5854_v37  ;;  %v5892_v3 = vpop.f32.mrf.mxu2  ;;  %v7743_v0 = vld [vmem:[#allocation7 + $0x420] sm:$0xff] }
 0x48a   : > { %v5881_v14 = vpop.f32.mrf.mxu1  ;;  %5968 = vmatpush.bf16.msrb.mxu2 %v7699_v32  ;;  %v7752_v32 = vld [vmem:[#allocation7 + $0x468] sm:$0xff] }
 0x48b   : > { %v5880_v4 = vadd.f32 %v5879_v16, %v5867_v53  ;;  %v7725_v16 = vld [vmem:[#allocation7 + $0x390] sm:$0xff]  ;;  %v7762_v14 = vld [vmem:[#allocation7 + $0x4b8] sm:$0xff] }
 0x48d   : > { %v5893_v58 = vadd.f32 %v5892_v3, %v5880_v4  ;;  %v7754_v3 = vld [vmem:[#allocation7 + $0x478] sm:$0xff] }
 0x48e   : > { %v7742_v4 = vld [vmem:[#allocation7 + $0x418] sm:$0xff] }
 0x48f   : > { %v4141_v62 = vld [vmem:[#allocation1 + $0x3] ss:$9 sm:$0xff] }
 0x490   : > { %4142 = vrot.lane.b32.xlu1 %v4141_v62, %s7892_s21  ;;  %4146 = vst [vmem:[#allocation1] sm:$0xff] %v9247_v8  ;;  %v5868_v22 = vpop.f32.mrf.mxu3  ;;  %v7761_v62 = vld [vmem:[#allocation7 + $0x4b0] sm:$0xff] }
 0x491   : > { %v5894_v50 = vpop.f32.mrf.mxu2  ;;  %v7741_v22 = vld [vmem:[#allocation7 + $0x410] sm:$0xff] }
 0x492   : > { %v7760_v50 = vld [vmem:[#allocation7 + $0x4a8] sm:$0xff] }
 0x493   : > { %v5918_v9 = vpop.f32.mrf.mxu1 }
 0x497   : > { %v4148_v10 = vld [vmem:[#allocation1 + $0x4] ss:$9 sm:$0xff] }
 0x498   : > { %4151 = vst [vmem:[#allocation1] sm:$0xff] %v9247_v8 }
 0x499   : > { %v5905_v11 = vpop.f32.mrf.mxu3  ;;  %4150 = vst.msk [vmem:[#allocation6 + $0x17] sm:$0x1] %vm8662_vm10, %v4148_v10  ;;  %v7739_v10 = vld [vmem:[#allocation7 + $0x400] sm:$0xff] }
 0x49a   : > { %v5906_v20 = vadd.f32 %v5905_v11, %v5893_v58  ;;  %v7750_v11 = vld [vmem:[#allocation7 + $0x458] sm:$0xff] }
 0x49b   : > { %v5920_v18 = vpop.f32.mrf.mxu1 }
 0x49c   : > { %v4042_v34 = vpop.permute.xlu0 %4041  ;;  %v9269_v29 = vadd.f32 %v5918_v9, %v5906_v20  ;;  %v7758_v20 = vld [vmem:[#allocation7 + $0x498] sm:$0xff]  ;;  %v7769_v18 = vld [vmem:[#allocation7 + $0x4f0] sm:$0xff] }
 0x49d   : > { %4044 = vst.msk [vmem:[#allocation6 + $0xf] sm:$0x1] %vm9106_vm13, %v4042_v34 }
 0x49f   : > { %v4153_v19 = vld [vmem:[#allocation1 + $0x5] ss:$9 sm:$0xff]  ;;  %v4075_v25 = vpop.permute.xlu2 %4074 }
 0x4a0   : > { %4154 = vrot.lane.b32.xlu2 %v4153_v19, %s7892_s21  ;;  %4158 = vst [vmem:[#allocation1] sm:$0xff] %v9247_v8  ;;  %v7729_v8 = vld [vmem:[#allocation7 + $0x3b0] sm:$0xff] }
 0x4a1   : > { %4077 = vst.msk [vmem:[#allocation6 + $0x11] sm:$0x1] %vm9106_vm13, %v4075_v25  ;;  %v5907_v54 = vpop.f32.mrf.mxu3  ;;  %v7757_v19 = vld [vmem:[#allocation7 + $0x490] sm:$0xff]  ;;  %v7748_v25 = vld [vmem:[#allocation7 + $0x448] sm:$0xff] }
 0x4a2   : > { %v7768_v54 = vld [vmem:[#allocation7 + $0x4e8] sm:$0xff] }
 0x4a4   : > { %v9277_v26 = vld [vmem:[#allocation6 + $0x8] sm:$0xff] }
 0x4a5   : > { %v4179_v30 = vperm.slane %v9277_v26, 0  ;;  %v4180_v44 = vperm.slane %v9277_v26, 1  ;;  %v4181_v23 = vperm.slane %v9277_v26, 2  ;;  %v4182_v2 = vperm.slane %v9277_v26, 3 }
 0x4a6   : > { %v4183_v37 = vperm.slane %v9277_v26, 4  ;;  %v4184_v41 = vperm.slane %v9277_v26, 5  ;;  %v4185_v53 = vperm.slane %v9277_v26, 6  ;;  %v4186_v17 = vperm.slane %v9277_v26, 7  ;;  %v7756_v26 = vld [vmem:[#allocation7 + $0x488] sm:$0xff] }
 0x4a7   : > { %v4229_v5 = vpack.c.bf16 %v4179_v30, %v4179_v30  ;;  %v4230_v39 = vpack.c.bf16 %v4180_v44, %v4180_v44  ;;  %v4231_v31 = vpack.c.bf16 %v4181_v23, %v4181_v23  ;;  %v4160_v45 = vld [vmem:[#allocation1 + $0x6] ss:$9 sm:$0xff]  ;;  %v4232_v7 = vpack.c.bf16 %v4182_v2, %v4182_v2 }
 0x4a8   : > { %4162 = vst.msk [vmem:[#allocation6 + $0x18] sm:$0x1] %vm8662_vm10, %v4160_v45  ;;  %v4233_v21 = vpack.c.bf16 %v4183_v37, %v4183_v37  ;;  %v4234_v12 = vpack.c.bf16 %v4184_v41, %v4184_v41  ;;  %v4235_v58 = vpack.c.bf16 %v4185_v53, %v4185_v53  ;;  %v4236_v51 = vpack.c.bf16 %v4186_v17, %v4186_v17  ;;  %v7767_v30 = vld [vmem:[#allocation7 + $0x4e0] sm:$0xff]  ;;  %v7778_v23 = vld [vmem:[#allocation7 + $0x538] sm:$0xff]  ;;  %v7765_v45 = vld [vmem:[#allocation7 + $0x4d0] sm:$0xff] }
 0x4a9   : > { %5930 = vmatmul.bf16.vlgmr.msra.gmra.mxu2 %v4229_v5  ;;  %5943 = vmatmul.bf16.vlgmr.msrb.gmra.mxu3 %v4230_v39  ;;  %v7747_v44 = vld [vmem:[#allocation7 + $0x440] sm:$0xff]  ;;  %v7786_v5 = vld [vmem:[#allocation7 + $0x578] sm:$0xff]  ;;  %v7773_v37 = vld [vmem:[#allocation7 + $0x510] sm:$0xff] }
 0x4aa   : > { %5956 = vmatmul.bf16.vlgmr.msrb.gmra.mxu1 %v4231_v31  ;;  %6000 = vmatpush.bf16.msra.mxu2 %v7730_v47  ;;  %v7755_v47 = vld [vmem:[#allocation7 + $0x480] sm:$0xff]  ;;  %v7766_v39 = vld [vmem:[#allocation7 + $0x4d8] sm:$0xff]  ;;  %v7777_v31 = vld [vmem:[#allocation7 + $0x530] sm:$0xff] }
 0x4ab   : > { %6013 = vmatpush.bf16.msrb.mxu3 %v7738_v33  ;;  %6026 = vmatpush.bf16.msrb.mxu1 %v7746_v61  ;;  %v7785_v33 = vld [vmem:[#allocation7 + $0x570] sm:$0xff]  ;;  %v7774_v61 = vld [vmem:[#allocation7 + $0x518] sm:$0xff] }
 0x4ac   : > { %v7782_v2 = vld [vmem:[#allocation7 + $0x558] sm:$0xff]  ;;  %v7781_v41 = vld [vmem:[#allocation7 + $0x550] sm:$0xff] }
 0x4ad   : > { %v4054_v46 = vpop.permute.xlu1 %4053  ;;  %v7802_v53 = vld [vmem:[#allocation7 + $0x5f8] sm:$0xff]  ;;  %v7801_v17 = vld [vmem:[#allocation7 + $0x5f0] sm:$0xff] }
 0x4ae   : > { %4056 = vst.msk [vmem:[#allocation6 + $0x10] sm:$0x1] %vm9106_vm13, %v4054_v46  ;;  %6001 = vmatpush.bf16.msra.mxu2 %v7729_v8  ;;  %v7776_v8 = vld [vmem:[#allocation7 + $0x528] sm:$0xff] }
 0x4af   : > { %6014 = vmatpush.bf16.msrb.mxu3 %v7737_v36  ;;  %6027 = vmatpush.bf16.msrb.mxu1 %v7745_v38  ;;  %v7784_v36 = vld [vmem:[#allocation7 + $0x568] sm:$0xff] }
 0x4b0   : > { %v7764_v46 = vld [vmem:[#allocation7 + $0x4c8] sm:$0xff] }
 0x4b2   : > { %6002 = vmatpush.bf16.msra.mxu2 %v7728_v28  ;;  %v7775_v28 = vld [vmem:[#allocation7 + $0x520] sm:$0xff] }
 0x4b3   : > { %6015 = vmatpush.bf16.msrb.mxu3 %v7736_v42  ;;  %6028 = vmatpush.bf16.msrb.mxu1 %v7744_v57  ;;  %v7783_v42 = vld [vmem:[#allocation7 + $0x560] sm:$0xff] }
 0x4b6   : > { %6003 = vmatpush.bf16.msra.mxu2 %v7727_v48  ;;  %v7763_v48 = vld [vmem:[#allocation7 + $0x4c0] sm:$0xff] }
 0x4b7   : > { %6016 = vmatpush.bf16.msrb.mxu3 %v7735_v35  ;;  %6029 = vmatpush.bf16.msrb.mxu1 %v7743_v0 }
 0x4b9   : > { %5969 = vmatmul.bf16.vlgmr.msrb.gmra.mxu2 %v4232_v7  ;;  %5982 = vmatmul.bf16.vlgmr.msra.gmra.mxu3 %v4233_v21  ;;  %v7780_v7 = vld [vmem:[#allocation7 + $0x548] sm:$0xff] }
 0x4ba   : > { %5995 = vmatmul.bf16.vlgmr.msra.gmra.mxu1 %v4234_v12  ;;  %6004 = vmatpush.bf16.msra.mxu2 %v7726_v52  ;;  %v7772_v52 = vld [vmem:[#allocation7 + $0x508] sm:$0xff]  ;;  %v7779_v12 = vld [vmem:[#allocation7 + $0x540] sm:$0xff] }
 0x4bb   : > { %6017 = vmatpush.bf16.msrb.mxu3 %v7734_v56  ;;  %6030 = vmatpush.bf16.msrb.mxu1 %v7742_v4  ;;  %v7771_v56 = vld [vmem:[#allocation7 + $0x500] sm:$0xff]  ;;  %v7792_v4 = vld [vmem:[#allocation7 + $0x5a8] sm:$0xff] }
 0x4be   : > { %6005 = vmatpush.bf16.msra.mxu2 %v7725_v16 }
 0x4bf   : > { %6018 = vmatpush.bf16.msrb.mxu3 %v7733_v6  ;;  %6031 = vmatpush.bf16.msrb.mxu1 %v7741_v22 }
 0x4c2   : > { %6006 = vmatpush.bf16.msra.mxu2 %v7724_v40 }
 0x4c3   : > { %6019 = vmatpush.bf16.msrb.mxu3 %v7732_v43  ;;  %6032 = vmatpush.bf16.msrb.mxu1 %v7740_v63  ;;  %v7794_v43 = vld [vmem:[#allocation7 + $0x5b8] sm:$0xff] }
 0x4c4   : > { %v7790_v63 = vld [vmem:[#allocation7 + $0x598] sm:$0xff] }
 0x4c6   : > { %6007 = vmatpush.bf16.msra.mxu2 %v7723_v49 }
 0x4c7   : > { %6020 = vmatpush.bf16.msrb.mxu3 %v7731_v24  ;;  %v4087_v55 = vpop.permute.xlu0 %4086  ;;  %6033 = vmatpush.bf16.msrb.mxu1 %v7739_v10 }
 0x4c8   : > { %4089 = vst.msk [vmem:[#allocation6 + $0x12] sm:$0x1] %vm9106_vm13, %v4087_v55  ;;  %v7800_v55 = vld [vmem:[#allocation7 + $0x5e8] sm:$0xff] }
 0x4c9   : > { %6008 = vmatmul.bf16.vlgmr.msra.gmra.mxu2 %v4235_v58  ;;  %v7804_v58 = vld [vmem:[#allocation7 + $0x608] sm:$0xff] }
 0x4ca   : > { %6039 = vmatpush.bf16.msrb.mxu2 %v7754_v3  ;;  %6021 = vmatmul.bf16.vlgmr.msrb.gmra.mxu3 %v4236_v51  ;;  %v7806_v3 = vld [vmem:[#allocation7 + $0x618] sm:$0xff]  ;;  %v7799_v51 = vld [vmem:[#allocation7 + $0x5e0] sm:$0xff] }
 0x4cb   : > { %6052 = vmatpush.bf16.msra.mxu3 %v7762_v14  ;;  %6065 = vmatpush.bf16.msra.mxu1 %v7770_v13  ;;  %v7805_v14 = vld [vmem:[#allocation7 + $0x610] sm:$0xff] }
 0x4cc   : > { %v7797_v13 = vld [vmem:[#allocation7 + $0x5d0] sm:$0xff] }
 0x4ce   : > { %6040 = vmatpush.bf16.msrb.mxu2 %v7753_v59  ;;  %v7791_v59 = vld [vmem:[#allocation7 + $0x5a0] sm:$0xff] }
 0x4cf   : > { %6053 = vmatpush.bf16.msra.mxu3 %v7761_v62  ;;  %6066 = vmatpush.bf16.msra.mxu1 %v7769_v18  ;;  %v7796_v18 = vld [vmem:[#allocation7 + $0x5c8] sm:$0xff] }
 0x4d0   : > { %v4111_v9 = vpop.permute.xlu2 %4110 }
 0x4d1   : > { %4113 = vst.msk [vmem:[#allocation6 + $0x14] sm:$0x1] %vm9106_vm13, %v4111_v9 }
 0x4d2   : > { %6041 = vmatpush.bf16.msrb.mxu2 %v7752_v32  ;;  %v7803_v32 = vld [vmem:[#allocation7 + $0x600] sm:$0xff] }
 0x4d3   : > { %6054 = vmatpush.bf16.msra.mxu3 %v7760_v50  ;;  %6067 = vmatpush.bf16.msra.mxu1 %v7768_v54 }
 0x4d6   : > { %6042 = vmatpush.bf16.msrb.mxu2 %v7751_v1 }
 0x4d7   : > { %6055 = vmatpush.bf16.msra.mxu3 %v7759_v27  ;;  %v4099_v34 = vpop.permute.xlu1 %4098  ;;  %6068 = vmatpush.bf16.msra.mxu1 %v7767_v30  ;;  %v7798_v27 = vld [vmem:[#allocation7 + $0x5d8] sm:$0xff] }
 0x4d8   : > { %4101 = vst.msk [vmem:[#allocation6 + $0x13] sm:$0x1] %vm9106_vm13, %v4099_v34 }
 0x4da   : > { %6043 = vmatpush.bf16.msrb.mxu2 %v7750_v11  ;;  %v7789_v11 = vld [vmem:[#allocation7 + $0x590] sm:$0xff] }
 0x4db   : > { %6056 = vmatpush.bf16.msra.mxu3 %v7758_v20  ;;  %6069 = vmatpush.bf16.msra.mxu1 %v7766_v39  ;;  %v7788_v20 = vld [vmem:[#allocation7 + $0x588] sm:$0xff] }
 0x4de   : > { %6044 = vmatpush.bf16.msrb.mxu2 %v7749_v15  ;;  %v7787_v15 = vld [vmem:[#allocation7 + $0x580] sm:$0xff] }
 0x4df   : > { %6057 = vmatpush.bf16.msra.mxu3 %v7757_v19  ;;  %6070 = vmatpush.bf16.msra.mxu1 %v7765_v45  ;;  %v7795_v19 = vld [vmem:[#allocation7 + $0x5c0] sm:$0xff] }
 0x4e2   : > { %6045 = vmatpush.bf16.msrb.mxu2 %v7748_v25 }
 0x4e3   : > { %6058 = vmatpush.bf16.msra.mxu3 %v7756_v26  ;;  %6071 = vmatpush.bf16.msra.mxu1 %v7764_v46  ;;  %v7839_v26 = vld [vmem:[#allocation6 + $0x18] ss:$0 sm:$0xff] }
 0x4e4   : > { %v4245_v39 = vpack.c.bf16 %v7839_v26, %v7839_v26 }
 0x4e6   : > { %6046 = vmatpush.bf16.msrb.mxu2 %v7747_v44 }
 0x4e7   : > { %6059 = vmatpush.bf16.msra.mxu3 %v7755_v47  ;;  %6072 = vmatpush.bf16.msra.mxu1 %v7763_v48 }
 0x4ea   : > { %6078 = vmatpush.bf16.msra.mxu2 %v7778_v23 }
 0x4eb   : > { %6091 = vmatpush.bf16.msrb.mxu3 %v7786_v5 }
 0x4ee   : > { %6079 = vmatpush.bf16.msra.mxu2 %v7777_v31 }
 0x4ef   : > { %6092 = vmatpush.bf16.msrb.mxu3 %v7785_v33 }
 0x4f1   : > { %v4131_v35 = vpop.permute.xlu0 %4130 }
 0x4f2   : > { %6080 = vmatpush.bf16.msra.mxu2 %v7776_v8  ;;  %4133 = vst.msk [vmem:[#allocation6 + $0x15] sm:$0x1] %vm9106_vm13, %v4131_v35 }
 0x4f3   : > { %6093 = vmatpush.bf16.msrb.mxu3 %v7784_v36 }
 0x4f6   : > { %6081 = vmatpush.bf16.msra.mxu2 %v7775_v28 }
 0x4f7   : > { %6094 = vmatpush.bf16.msrb.mxu3 %v7783_v42 }
 0x4fa   : > { %6082 = vmatpush.bf16.msra.mxu2 %v7774_v61  ;;  %v4155_v21 = vpop.permute.xlu2 %4154 }
 0x4fb   : > { %6095 = vmatpush.bf16.msrb.mxu3 %v7782_v2  ;;  %4157 = vst.msk [vmem:[#allocation6 + $0x17] sm:$0x1] %vm9106_vm13, %v4155_v21 }
 0x4fe   : > { %6083 = vmatpush.bf16.msra.mxu2 %v7773_v37 }
 0x4ff   : > { %6096 = vmatpush.bf16.msrb.mxu3 %v7781_v41 }
 0x502   : > { %6084 = vmatpush.bf16.msra.mxu2 %v7772_v52  ;;  %v4143_v38 = vpop.permute.xlu1 %4142 }
 0x503   : > { %6097 = vmatpush.bf16.msrb.mxu3 %v7780_v7  ;;  %4145 = vst.msk [vmem:[#allocation6 + $0x16] sm:$0x1] %vm9106_vm13, %v4143_v38 }
 0x506   : > { %6085 = vmatpush.bf16.msra.mxu2 %v7771_v56 }
 0x507   : > { %6098 = vmatpush.bf16.msrb.mxu3 %v7779_v12 }
 0x50a   : > { %v9303_v16 = vld [vmem:[#allocation6 + $0x10] sm:$0xff] }
 0x50b   : > { %v4187_v6 = vperm.slane %v9303_v16, 0  ;;  %v4188_v57 = vperm.slane %v9303_v16, 1  ;;  %v4189_v40 = vperm.slane %v9303_v16, 2  ;;  %v4190_v62 = vperm.slane %v9303_v16, 3 }
 0x50c   : > { %v4191_v22 = vperm.slane %v9303_v16, 4  ;;  %v4192_v50 = vperm.slane %v9303_v16, 5  ;;  %v4193_v25 = vperm.slane %v9303_v16, 6  ;;  %v4194_v54 = vperm.slane %v9303_v16, 7 }
 0x50d   : > { %v4237_v0 = vpack.c.bf16 %v4187_v6, %v4187_v6  ;;  %v4238_v49 = vpack.c.bf16 %v4188_v57, %v4188_v57  ;;  %v4239_v24 = vpack.c.bf16 %v4189_v40, %v4189_v40  ;;  %v4240_v1 = vpack.c.bf16 %v4190_v62, %v4190_v62 }
 0x50e   : > { %v4241_v9 = vpack.c.bf16 %v4191_v22, %v4191_v22  ;;  %v4242_v10 = vpack.c.bf16 %v4192_v50, %v4192_v50  ;;  %v4243_v47 = vpack.c.bf16 %v4193_v25, %v4193_v25  ;;  %v4244_v5 = vpack.c.bf16 %v4194_v54, %v4194_v54 }
 0x50f   : > { %6034 = vmatmul.bf16.vlgmr.msrb.gmra.mxu1 %v4237_v0  ;;  %6047 = vmatmul.bf16.vlgmr.msrb.gmra.mxu2 %v4238_v49 }
 0x510   : > { %6060 = vmatmul.bf16.vlgmr.msra.gmra.mxu3 %v4239_v24  ;;  %6104 = vmatpush.bf16.msrb.mxu1 %v7794_v43 }
 0x511   : > { %6117 = vmatpush.bf16.msrb.mxu2 %v7802_v53  ;;  %6134 = vmatpush.bf16.msra.mxu3 %v7806_v3 }
 0x514   : > { %6105 = vmatpush.bf16.msrb.mxu1 %v7793_v60 }
 0x515   : > { %6118 = vmatpush.bf16.msrb.mxu2 %v7801_v17  ;;  %6135 = vmatpush.bf16.msra.mxu3 %v7805_v14 }
 0x518   : > { %6106 = vmatpush.bf16.msrb.mxu1 %v7792_v4 }
 0x519   : > { %6119 = vmatpush.bf16.msrb.mxu2 %v7800_v55  ;;  %6136 = vmatpush.bf16.msra.mxu3 %v7804_v58 }
 0x51c   : > { %6107 = vmatpush.bf16.msrb.mxu1 %v7791_v59 }
 0x51d   : > { %6120 = vmatpush.bf16.msrb.mxu2 %v7799_v51  ;;  %6137 = vmatpush.bf16.msra.mxu3 %v7803_v32 }
 0x51f   : > { %6073 = vmatmul.bf16.vlgmr.msra.gmra.mxu1 %v4240_v1  ;;  %6086 = vmatmul.bf16.vlgmr.msra.gmra.mxu2 %v4241_v9 }
 0x520   : > { %6099 = vmatmul.bf16.vlgmr.msrb.gmra.mxu3 %v4242_v10  ;;  %6108 = vmatpush.bf16.msrb.mxu1 %v7790_v63 }
 0x521   : > { %6121 = vmatpush.bf16.msrb.mxu2 %v7798_v27 }
 0x524   : > { %6109 = vmatpush.bf16.msrb.mxu1 %v7789_v11 }
 0x525   : > { %6122 = vmatpush.bf16.msrb.mxu2 %v7797_v13 }
 0x527   : > { %v5957_v34 = vpop.f32.mrf.mxu1 }
 0x528   : > { %6110 = vmatpush.bf16.msrb.mxu1 %v7788_v20 }
 0x529   : > { %6123 = vmatpush.bf16.msrb.mxu2 %v7796_v18 }
 0x52c   : > { %6111 = vmatpush.bf16.msrb.mxu1 %v7787_v15  ;;  %v5931_v30 = vpop.f32.mrf.mxu2  ;;  %v5944_v44 = vpop.f32.mrf.mxu3 }
 0x52d   : > { %6124 = vmatpush.bf16.msrb.mxu2 %v7795_v19  ;;  %v5932_v23 = vadd.f32 %v5931_v30, %v9269_v29 }
 0x52f   : > { %v5945_v31 = vadd.f32 %v5944_v44, %v5932_v23  ;;  %6112 = vmatmul.bf16.vlgmr.msrb.gmra.mxu1 %v4243_v47  ;;  %v5959_v33 = vpop.f32.mrf.mxu1 }
 0x530   : > { %6125 = vmatmul.bf16.vlgmr.msrb.gmra.mxu2 %v4244_v5  ;;  %7498 = vmatmul.msk.bf16.vlgmr.msra.gmra.mxu3 %vm3776_vm9, %v4245_v39 }
 0x531   : > { %v5958_v45 = vadd.f32 %v5957_v34, %v5945_v31 }
 0x534   : > { %v5933_v8 = vpop.f32.mrf.mxu2  ;;  %v5946_v36 = vpop.f32.mrf.mxu3 }
 0x537   : > { %v5996_v46 = vpop.f32.mrf.mxu1 }
 0x53c   : > { %v5970_v28 = vpop.f32.mrf.mxu2  ;;  %v5983_v42 = vpop.f32.mrf.mxu3 }
 0x53d   : > { %v5971_v61 = vadd.f32 %v5970_v28, %v5958_v45 }
 0x53f   : > { %v5984_v48 = vadd.f32 %v5983_v42, %v5971_v61  ;;  %v5998_v35 = vpop.f32.mrf.mxu1 }
 0x541   : > { %v5997_v2 = vadd.f32 %v5996_v46, %v5984_v48 }
 0x544   : > { %v5972_v29 = vpop.f32.mrf.mxu2  ;;  %v5985_v37 = vpop.f32.mrf.mxu3 }
 0x54c   : > { %v6009_v41 = vpop.f32.mrf.mxu2 }
 0x54d   : > { %v6010_v52 = vadd.f32 %v6009_v41, %v5997_v2  ;;  %v6022_v7 = vpop.f32.mrf.mxu3 }
 0x54f   : > { %v6023_v21 = vadd.f32 %v6022_v7, %v6010_v52 }
 0x554   : > { %v6011_v56 = vpop.f32.mrf.mxu2 }
 0x555   : > { %v6024_v12 = vpop.f32.mrf.mxu3 }
 0x58c   : > { %v6035_v38 = vpop.f32.mrf.mxu1 }
 0x58d   : > { %v6036_v49 = vadd.f32 %v6035_v38, %v6023_v21 }
 0x592   : > { %v6048_v16 = vpop.f32.mrf.mxu2 }
 0x593   : > { %v6061_v6 = vpop.f32.mrf.mxu3  ;;  %v6049_v3 = vadd.f32 %v6048_v16, %v6036_v49 }
 0x594   : > { %v6037_v57 = vpop.f32.mrf.mxu1 }
 0x595   : > { %v6062_v17 = vadd.f32 %v6061_v6, %v6049_v3 }
 0x59a   : > { %v6050_v40 = vpop.f32.mrf.mxu2 }
 0x59b   : > { %v6063_v43 = vpop.f32.mrf.mxu3 }
 0x59c   : > { %v6074_v0 = vpop.f32.mrf.mxu1 }
 0x59d   : > { %v6075_v14 = vadd.f32 %v6074_v0, %v6062_v17 }
 0x5a2   : > { %v6087_v24 = vpop.f32.mrf.mxu2 }
 0x5a3   : > { %v6100_v53 = vpop.f32.mrf.mxu3  ;;  %v6088_v58 = vadd.f32 %v6087_v24, %v6075_v14 }
 0x5a4   : > { %v6076_v60 = vpop.f32.mrf.mxu1 }
 0x5a5   : > { %v6101_v51 = vadd.f32 %v6100_v53, %v6088_v58 }
 0x5aa   : > { %v6089_v4 = vpop.f32.mrf.mxu2 }
 0x5ab   : > { %v6102_v55 = vpop.f32.mrf.mxu3 }
 0x5ac   : > { %v6113_v59 = vpop.f32.mrf.mxu1 }
 0x5ad   : > { %v6114_v62 = vadd.f32 %v6113_v59, %v6101_v51 }
 0x5b3   : > { %v6126_v22 = vpop.f32.mrf.mxu2  ;;  %v6139_v32 = vpop.f32.mrf.mxu3 }
 0x5b4   : > { %v6127_v50 = vadd.f32 %v6126_v22, %v6114_v62  ;;  %v6115_v63 = vpop.f32.mrf.mxu1 }
 0x5b6   : > { %v6140_v1 = vadd.f32 %v6139_v32, %v6127_v50 }
 0x5b8   : > { %6143 = vst [vmem:[%s291_s14] sm:$0x1] %v6140_v1 }
 0x5bb   : > { %v6128_v9 = vpop.f32.mrf.mxu2  ;;  %v6141_v27 = vpop.f32.mrf.mxu3 }
 0x5bc PF: > { %s18_s24 = sadd.s32 1, %s7884_s24  }
 0x5bd   : > { %p15_p7 = scmp.ge.s32.totalorder %s18_s24, 4  }
 0x5bf   :  { %17 = sbr.rel (!%p15_p7) target bundleno = 1 (0x1), region = 263 }
 0x5c4   :  { %6161 = vsyncpa [#allocation8], 1 }
 0x5c5   :  { %6163 = vsyncpa [#allocation8 + $0x1], 1 }

</bundles_post_ra>
